<compile_context>
chip_gen: v6e
topology: v6e:2x2x1
jax: 0.10.0
libtpu: 0.0.40
codegen_flags: <defaults>
</compile_context>

<pallas_src>
import functools
import math

import numpy as np

import jax
import jax.numpy as jnp
from jax.experimental import pallas as pl
from jax.experimental.pallas import tpu as pltpu


def _round_up(v, m):
    return (v + m - 1) // m * m


def _vmem_capacity_bytes():
    try:
        return int(pltpu.get_tpu_info().vmem_capacity_bytes)
    except Exception:
        return 128 * 1024 * 1024


def _choose_tile_p(P, HWp, C_out, K, y_rows, idx_rows, w_bytes, mxu_bytes, vmem_cap):
    """Largest 128-aligned output-pixel tile whose working set fits the budget."""
    p_pad = _round_up(P, 128)
    budget = int(vmem_cap * 0.55)
    # Resident per image (double-buffered across the batch axis): the Y slab.
    fixed = 2 * K * y_rows * HWp * mxu_bytes
    # Scales with TP: double-buffered idx / weight / out blocks, one-hot (or
    # scatter) temp + iota, gather result + tap temps.
    per_tp = (2 * idx_rows * 4 + 2 * 4 * K * w_bytes + 2 * C_out * 4
              + HWp * (mxu_bytes + 4) + (y_rows + 2 * C_out) * 4)
    # v5e / v6e have 128 MiB VMEM -> allow bigger tiles; v7x (64 MiB) stays lower.
    cap_tp = 2048 if vmem_cap >= 96 * 1024 * 1024 else 1024
    avail = budget - fixed
    if avail < 128 * per_tp:
        # TODO(synk): shapes whose per-image Y slab alone exceeds VMEM need HW
        # tiling (or skipping the Y hoist); fall back to the minimal tile here.
        avail = 128 * per_tp
    tp = min(cap_tp, avail // per_tp, p_pad)
    return max(128, int(tp) // 128 * 128)


def _deform_conv_onehot_kernel(idx_ref, w4_ref, y4_ref, o_ref,
                               *, K, C_out, HWp, mxu_dtype):
    """Small-C_out regime: shared exact one-hot gather against replicated Y4."""
    TP = o_ref.shape[-1]
    sub_iota = jax.lax.broadcasted_iota(jnp.int32, (HWp, TP), 0)
    for k in range(K):                                          # K static & small
        idx_k = idx_ref[0, pl.ds(k, 1), :]                      # (1, TP) int32
        # Exact one-hot built directly in mxu_dtype (0/1 are exact in bf16).
        onehot = (sub_iota == idx_k).astype(mxu_dtype)          # (HWp, TP)
        # One MXU matmul gathers all 4 bilinear corner values for every pixel.
        g4 = jnp.dot(y4_ref[0, k], onehot,
                     preferred_element_type=jnp.float32)        # (4*C_out, TP)
        tap = jnp.zeros((C_out, TP), jnp.float32)
        for c in range(4):
            wgt = w4_ref[0, pl.ds(4 * k + c, 1), :]             # (1, TP) f32
            tap = tap + wgt * jax.lax.slice(
                g4, (c * C_out, 0), ((c + 1) * C_out, TP))
        if k == 0:
            o_ref[0] = tap                                      # f32 VMEM block
        else:
            o_ref[0] += tap


def _deform_conv_scatter_kernel(idx4_ref, w4_ref, y_ref, o_ref,
                                *, K, C_out, HWp, mxu_dtype):
    """Large-C_out regime: bilinear weights baked into the RHS, unreplicated Y."""
    TP = o_ref.shape[-1]
    sub_iota = jax.lax.broadcasted_iota(jnp.int32, (HWp, TP), 0)
    zero = jnp.zeros((), mxu_dtype)
    for k in range(K):
        s = None
        for c in range(4):
            idx_c = idx4_ref[0, pl.ds(4 * k + c, 1), :]         # (1, TP) int32
            w_c = w4_ref[0, pl.ds(4 * k + c, 1), :]             # (1, TP) mxu_dtype
            term = jnp.where(sub_iota == idx_c, w_c, zero)      # (HWp, TP)
            s = term if s is None else s + term                 # disjoint rows
        g = jnp.dot(y_ref[0, k], s,
                    preferred_element_type=jnp.float32)         # (C_out, TP)
        if k == 0:
            o_ref[0] = g
        else:
            o_ref[0] += g


def deform_conv_forward(x, offset, weight, stride=(1, 1), padding=(0, 0),
                        dilation=(1, 1), groups=1, deformable_groups=1,
                        mxu_dtype=jnp.bfloat16, scheme=None):
    """DeformConv (v1, no mask, no bias) forward, NCHW in / NCHW out."""
    # TODO(synk): groups > 1 / deformable_groups > 1 not implemented (the CPU
    # path of the reference module also rejects deformable_groups != 1).
    assert groups == 1 and deformable_groups == 1

    N, C_in, H, W = x.shape
    C_out, C_in_w, kH, kW = weight.shape
    assert C_in_w == C_in
    sh, sw = stride
    ph, pw = padding
    dh, dw = dilation
    Ho = (H + 2 * ph - (dh * (kH - 1) + 1)) // sh + 1
    Wo = (W + 2 * pw - (dw * (kW - 1) + 1)) // sw + 1
    K = kH * kW
    P = Ho * Wo
    HW = H * W
    assert offset.shape == (N, 2 * K, Ho, Wo)

    if scheme is None:
        scheme = "scatter" if C_out >= 64 else "onehot"

    # ---- pure-JAX glue: fractional coords -> masked bilinear weights + indices.
    off = offset.reshape(N, K, 2, Ho, Wo).astype(jnp.float32)
    ky, kx = jnp.meshgrid(jnp.arange(kH), jnp.arange(kW), indexing="ij")
    ky = ky.reshape(K).astype(jnp.float32)
    kx = kx.reshape(K).astype(jnp.float32)
    ho = jnp.arange(Ho, dtype=jnp.float32)
    wo = jnp.arange(Wo, dtype=jnp.float32)
    base_y = ho[None, :, None] * sh - ph + ky[:, None, None] * dh      # (K,Ho,1)
    base_x = wo[None, None, :] * sw - pw + kx[:, None, None] * dw      # (K,1,Wo)
    py = (base_y[None] + off[:, :, 0]).reshape(N, K, P)
    px = (base_x[None] + off[:, :, 1]).reshape(N, K, P)

    # mmcv / detectron2 deformable_im2col_bilinear semantics.
    valid = (py > -1.0) & (px > -1.0) & (py < float(H)) & (px < float(W))
    hl = jnp.floor(py)
    wl = jnp.floor(px)
    lh = py - hl
    lw = px - wl
    hh = 1.0 - lh
    hw_ = 1.0 - lw
    w_corners = []
    for dy, dx, wgt in ((0.0, 0.0, hh * hw_), (0.0, 1.0, hh * lw),
                        (1.0, 0.0, lh * hw_), (1.0, 1.0, lh * lw)):
        hc = hl + dy
        wc = wl + dx
        cv = (valid & (hc >= 0.0) & (hc <= float(H - 1))
              & (wc >= 0.0) & (wc <= float(W - 1)))
        # Invalid / padded corners must carry EXACT zeros (see invariant above).
        w_corners.append(jnp.where(cv, wgt, 0.0))
    w4 = jnp.stack(w_corners, axis=2).reshape(N, 4 * K, P)             # row = 4k+c
    # Top-left linear index, wrapped into [0, HW).  For every VALID corner the
    # shifted index (idx_tl + dy*W + dx) mod HW equals the corner's true index;
    # invalid corners alias arbitrarily but carry weight 0.
    hl_i = jnp.clip(hl, -1.0, float(H)).astype(jnp.int32)
    wl_i = jnp.clip(wl, -1.0, float(W)).astype(jnp.int32)
    idx_tl = jnp.mod(hl_i * W + wl_i, HW).astype(jnp.int32)            # (N,K,P)

    # ---- hoisted per-image channel contraction (plain XLA, not in the kernel).
    HWp = _round_up(HW, 256)      # aligned MXU contraction / (8,128) one-hot tiles
    corners = (0, 1, W, W + 1)
    x_flat = x.reshape(N, C_in, HW).astype(jnp.float32)
    w_k = weight.astype(jnp.float32).reshape(C_out, C_in, K)
    y = jnp.einsum("oik,nis->nkos", w_k, x_flat)                       # (N,K,C_out,HW)

    mxu_bytes = int(np.dtype(mxu_dtype).itemsize)
    vmem_cap = _vmem_capacity_bytes()

    if scheme == "onehot":
        # Replicated Y4: rows [c*C_out:(c+1)*C_out] = Y circularly shifted by the
        # corner offset d_c; shared exact one-hot gathers all 4 corners at once.
        y4 = jnp.stack([jnp.roll(y, -d, axis=-1) for d in corners], axis=2)
        y_in = y4.reshape(N, K, 4 * C_out, HW)
        y_rows, idx_rows, w_bytes = 4 * C_out, K, 4
        idx_in = idx_tl
        w_in = w4                                                       # f32 weights
        kernel = functools.partial(_deform_conv_onehot_kernel, K=K, C_out=C_out,
                                   HWp=HWp, mxu_dtype=mxu_dtype)
    else:
        # Unreplicated Y + per-corner shifted indices; bilinear weights are baked
        # into the RHS scatter matrix (rounded to mxu_dtype; zeros stay exact).
        y_in = y
        y_rows, idx_rows, w_bytes = C_out, 4 * K, mxu_bytes
        d_arr = jnp.asarray(corners, dtype=jnp.int32).reshape(1, 1, 4, 1)
        idx_in = jnp.mod(idx_tl[:, :, None, :] + d_arr, HW).astype(jnp.int32)
        idx_in = idx_in.reshape(N, 4 * K, P)
        w_in = w4.astype(mxu_dtype)
        kernel = functools.partial(_deform_conv_scatter_kernel, K=K, C_out=C_out,
                                   HWp=HWp, mxu_dtype=mxu_dtype)

    y_in = jnp.pad(y_in, ((0, 0), (0, 0), (0, 0), (0, HWp - HW))).astype(mxu_dtype)

    # ---- P tiling: lane-dense, 128-aligned, VMEM-budgeted, generation-aware.
    TP = _choose_tile_p(P, HWp, C_out, K, y_rows, idx_rows, w_bytes,
                        mxu_bytes, vmem_cap)
    Pp = _round_up(P, TP)
    if Pp != P:
        pad = ((0, 0), (0, 0), (0, Pp - P))
        idx_in = jnp.pad(idx_in, pad)    # idx=0 & weight=0 -> padded columns are 0
        w_in = jnp.pad(w_in, pad)

    flops = 2 * N * K * y_rows * HWp * Pp
    bytes_accessed = (int(idx_in.size) * 4 + int(w_in.size) * w_bytes
                      + int(y_in.size) * mxu_bytes + N * C_out * Pp * 4)

    out = pl.pallas_call(
        kernel,
        out_shape=jax.ShapeDtypeStruct((N, C_out, Pp), jnp.float32),
        grid=(N, Pp // TP),
        in_specs=[
            pl.BlockSpec((1, idx_rows, TP), lambda n, t: (n, 0, t)),       # indices
            pl.BlockSpec((1, 4 * K, TP), lambda n, t: (n, 0, t)),          # weights
            pl.BlockSpec((1, K, y_rows, HWp), lambda n, t: (n, 0, 0, 0)),  # Y / image
        ],
        out_specs=pl.BlockSpec((1, C_out, TP), lambda n, t: (n, 0, t)),    # lane-dense
        compiler_params=pltpu.CompilerParams(
            # No cross-tile state anymore: both axes are parallel (v7x megacore
            # can split the P axis even when N == 1).
            dimension_semantics=("parallel", "parallel"),
            vmem_limit_bytes=int(min(vmem_cap * 0.85, 112 * 1024 * 1024))),
        cost_estimate=pl.CostEstimate(flops=int(flops), transcendentals=0,
                                      bytes_accessed=int(bytes_accessed)),
    )(idx_in, w_in, y_in)

    return out[:, :, :P].reshape(N, C_out, Ho, Wo)                     # already NCHW


def deform_conv_ref(x, offset, weight, stride, padding, dilation):
    """Pure-JAX reference (gather-based bilinear sampling), NCHW."""
    N, C_in, H, W = x.shape
    C_out, _, kH, kW = weight.shape
    sh, sw = stride
    ph, pw = padding
    dh, dw = dilation
    Ho = (H + 2 * ph - (dh * (kH - 1) + 1)) // sh + 1
    Wo = (W + 2 * pw - (dw * (kW - 1) + 1)) // sw + 1
    K = kH * kW

    off = offset.reshape(N, K, 2, Ho, Wo).astype(jnp.float32)
    ky, kx = jnp.meshgrid(jnp.arange(kH), jnp.arange(kW), indexing="ij")
    ky = ky.reshape(K).astype(jnp.float32)
    kx = kx.reshape(K).astype(jnp.float32)
    ho = jnp.arange(Ho, dtype=jnp.float32)
    wo = jnp.arange(Wo, dtype=jnp.float32)
    py = ho[None, :, None] * sh - ph + ky[:, None, None] * dh + off[:, :, 0]
    px = wo[None, None, :] * sw - pw + kx[:, None, None] * dw + off[:, :, 1]

    valid = (py > -1) & (px > -1) & (py < H) & (px < W)
    hl = jnp.floor(py)
    wl = jnp.floor(px)
    lh = py - hl
    lw = px - wl

    x_flat = x.reshape(N, C_in, H * W).astype(jnp.float32)
    cols = jnp.zeros((N, C_in, K, Ho, Wo), jnp.float32)
    for dy, dx, wgt in ((0, 0, (1 - lh) * (1 - lw)), (0, 1, (1 - lh) * lw),
                        (1, 0, lh * (1 - lw)), (1, 1, lh * lw)):
        hc = hl + dy
        wc = wl + dx
        cv = valid & (hc >= 0) & (hc <= H - 1) & (wc >= 0) & (wc <= W - 1)
        idx = jnp.clip((hc * W + wc).astype(jnp.int32), 0, H * W - 1)
        gathered = jax.vmap(lambda xf, id_: xf[:, id_])(x_flat, idx)
        cols = cols + jnp.where(cv, wgt, 0.0)[:, None] * gathered

    w_r = weight.reshape(C_out, C_in, K).astype(jnp.float32)
    return jnp.einsum("nikpq,oik->nopq", cols, w_r)


if __name__ == "__main__":
    key = jax.random.PRNGKey(0)
    N, C_in, H, W = 2, 4, 16, 16
    C_out, kH, kW = 8, 3, 3
    stride, padding, dilation = (1, 1), (1, 1), (1, 1)
    Ho = (H + 2 * padding[0] - (dilation[0] * (kH - 1) + 1)) // stride[0] + 1
    Wo = (W + 2 * padding[1] - (dilation[1] * (kW - 1) + 1)) // stride[1] + 1

    k_x, k_off, k_w = jax.random.split(key, 3)
    x = jax.random.normal(k_x, (N, C_in, H, W), jnp.float32)
    offset = 0.5 * jax.random.normal(k_off, (N, 2 * kH * kW, Ho, Wo), jnp.float32)

    # kaiming_uniform_(nonlinearity='relu'): bound = sqrt(6 / fan_in)
    fan_in = C_in * kH * kW
    bound = math.sqrt(6.0 / fan_in)
    weight = jax.random.uniform(k_w, (C_out, C_in, kH, kW), jnp.float32, -bound, bound)

    ref = deform_conv_ref(x, offset, weight, stride, padding, dilation)

    # Default (small-C_out) path: shared one-hot gather, bf16 MXU, f32 weights.
    out = deform_conv_forward(x, offset, weight, stride, padding, dilation)
    out = jax.block_until_ready(out)
    assert out.shape == (N, C_out, Ho, Wo)
    err = float(jnp.max(jnp.abs(out - ref)))
    assert jnp.allclose(out, ref, atol=5e-2, rtol=5e-2), f"onehot/bf16 err = {err}"

    # f32 MXU fallback: tight tolerance (bit-accurate gather).
    out32 = deform_conv_forward(x, offset, weight, stride, padding, dilation,
                                mxu_dtype=jnp.float32)
    out32 = jax.block_until_ready(out32)
    err32 = float(jnp.max(jnp.abs(out32 - ref)))
    assert jnp.allclose(out32, ref, atol=1e-3, rtol=1e-3), f"onehot/f32 err = {err32}"

    # Large-C_out regime (weighted-scatter RHS, unreplicated Y), forced here so
    # both code paths are exercised at the small test shape.
    out_sc = deform_conv_forward(x, offset, weight, stride, padding, dilation,
                                 scheme="scatter")
    out_sc = jax.block_until_ready(out_sc)
    err_sc = float(jnp.max(jnp.abs(out_sc - ref)))
    assert jnp.allclose(out_sc, ref, atol=5e-2, rtol=5e-2), f"scatter/bf16 err = {err_sc}"

    out_sc32 = deform_conv_forward(x, offset, weight, stride, padding, dilation,
                                   mxu_dtype=jnp.float32, scheme="scatter")
    out_sc32 = jax.block_until_ready(out_sc32)
    err_sc32 = float(jnp.max(jnp.abs(out_sc32 - ref)))
    assert jnp.allclose(out_sc32, ref, atol=1e-3, rtol=1e-3), f"scatter/f32 err = {err_sc32}"

    print("KERNEL_OK")
</pallas_src>

<mosaic_0001>
module attributes {stable_mosaic.version = 11 : i64} {
  func.func @_deform_conv_onehot_kernel(%arg0: i32, %arg1: i32, %arg2: memref<1x9x256xi32, #tpu.memory_space<vmem>>, %arg3: memref<1x36x256xf32, #tpu.memory_space<vmem>>, %arg4: memref<1x9x32x256xbf16, #tpu.memory_space<vmem>>, %arg5: memref<1x8x256xf32, #tpu.memory_space<vmem>>) attributes {dimension_semantics = [#tpu.dimension_semantics<parallel>, #tpu.dimension_semantics<parallel>], iteration_bounds = array<i64: 2, 1>, scalar_prefetch = 0 : i64, scratch_operands = 0 : i64, tpu.core_type = #tpu.core_type<tc>, window_params = [{transform_indices = @transform_0, window_bounds = array<i64: 1, 9, 256>}, {transform_indices = @transform_1, window_bounds = array<i64: 1, 36, 256>}, {transform_indices = @transform_2, window_bounds = array<i64: 1, 9, 32, 256>}, {transform_indices = @transform_3, window_bounds = array<i64: 1, 8, 256>}]} {
    %0 = tpu.iota {dimensions = array<i32: 0>} : vector<256x256xi32>
    %c0 = arith.constant 0 : index
    %c0_0 = arith.constant 0 : index
    %c0_1 = arith.constant 0 : index
    %1 = vector.load %arg2[%c0, %c0_0, %c0_1] : memref<1x9x256xi32, #tpu.memory_space<vmem>>, vector<1x1x256xi32>
    %2 = vector.shape_cast %1 : vector<1x1x256xi32> to vector<1x256xi32>
    %3 = vector.broadcast %2 : vector<1x256xi32> to vector<256x256xi32>
    %4 = arith.cmpi eq, %0, %3 : vector<256x256xi32>
    %5 = arith.extui %4 : vector<256x256xi1> to vector<256x256xi32>
    %6 = arith.sitofp %5 : vector<256x256xi32> to vector<256x256xf32>
    %7 = arith.truncf %6 : vector<256x256xf32> to vector<256x256xbf16>
    %c0_2 = arith.constant 0 : index
    %c0_3 = arith.constant 0 : index
    %c0_4 = arith.constant 0 : index
    %c0_5 = arith.constant 0 : index
    %8 = vector.load %arg4[%c0_2, %c0_3, %c0_4, %c0_5] : memref<1x9x32x256xbf16, #tpu.memory_space<vmem>>, vector<1x1x32x256xbf16>
    %9 = vector.shape_cast %8 : vector<1x1x32x256xbf16> to vector<32x256xbf16>
    %cst = arith.constant dense<0.000000e+00> : vector<32x256xf32>
    %10 = tpu.matmul %9, %7, %cst {dimension_numbers = #tpu.dot_dimension_numbers<[1], [0], [0], [1], [0, 0, 1, 1], [], []>} : vector<32x256xbf16>, vector<256x256xbf16>, vector<32x256xf32> -> vector<32x256xf32>
    %cst_6 = arith.constant 0.000000e+00 : f32
    %11 = vector.broadcast %cst_6 : f32 to vector<8x256xf32>
    %c0_7 = arith.constant 0 : index
    %c0_8 = arith.constant 0 : index
    %c0_9 = arith.constant 0 : index
    %12 = vector.load %arg3[%c0_7, %c0_8, %c0_9] : memref<1x36x256xf32, #tpu.memory_space<vmem>>, vector<1x1x256xf32>
    %13 = vector.shape_cast %12 : vector<1x1x256xf32> to vector<1x256xf32>
    %14 = vector.extract_strided_slice %10 {offsets = [0, 0], sizes = [8, 256], strides = [1, 1]} : vector<32x256xf32> to vector<8x256xf32>
    %15 = vector.broadcast %13 : vector<1x256xf32> to vector<8x256xf32>
    %16 = arith.mulf %15, %14 : vector<8x256xf32>
    %17 = arith.addf %11, %16 : vector<8x256xf32>
    %c0_10 = arith.constant 0 : index
    %c1 = arith.constant 1 : index
    %c0_11 = arith.constant 0 : index
    %18 = vector.load %arg3[%c0_10, %c1, %c0_11] : memref<1x36x256xf32, #tpu.memory_space<vmem>>, vector<1x1x256xf32>
    %19 = vector.shape_cast %18 : vector<1x1x256xf32> to vector<1x256xf32>
    %20 = vector.extract_strided_slice %10 {offsets = [8, 0], sizes = [8, 256], strides = [1, 1]} : vector<32x256xf32> to vector<8x256xf32>
    %21 = vector.broadcast %19 : vector<1x256xf32> to vector<8x256xf32>
    %22 = arith.mulf %21, %20 : vector<8x256xf32>
    %23 = arith.addf %17, %22 : vector<8x256xf32>
    %c0_12 = arith.constant 0 : index
    %c2 = arith.constant 2 : index
    %c0_13 = arith.constant 0 : index
    %24 = vector.load %arg3[%c0_12, %c2, %c0_13] : memref<1x36x256xf32, #tpu.memory_space<vmem>>, vector<1x1x256xf32>
    %25 = vector.shape_cast %24 : vector<1x1x256xf32> to vector<1x256xf32>
    %26 = vector.extract_strided_slice %10 {offsets = [16, 0], sizes = [8, 256], strides = [1, 1]} : vector<32x256xf32> to vector<8x256xf32>
    %27 = vector.broadcast %25 : vector<1x256xf32> to vector<8x256xf32>
    %28 = arith.mulf %27, %26 : vector<8x256xf32>
    %29 = arith.addf %23, %28 : vector<8x256xf32>
    %c0_14 = arith.constant 0 : index
    %c3 = arith.constant 3 : index
    %c0_15 = arith.constant 0 : index
    %30 = vector.load %arg3[%c0_14, %c3, %c0_15] : memref<1x36x256xf32, #tpu.memory_space<vmem>>, vector<1x1x256xf32>
    %31 = vector.shape_cast %30 : vector<1x1x256xf32> to vector<1x256xf32>
    %32 = vector.extract_strided_slice %10 {offsets = [24, 0], sizes = [8, 256], strides = [1, 1]} : vector<32x256xf32> to vector<8x256xf32>
    %33 = vector.broadcast %31 : vector<1x256xf32> to vector<8x256xf32>
    %34 = arith.mulf %33, %32 : vector<8x256xf32>
    %35 = arith.addf %29, %34 : vector<8x256xf32>
    %c0_16 = arith.constant 0 : index
    %c0_17 = arith.constant 0 : index
    %c0_18 = arith.constant 0 : index
    %36 = vector.load %arg5[%c0_16, %c0_17, %c0_18] : memref<1x8x256xf32, #tpu.memory_space<vmem>>, vector<1x8x256xf32>
    %37 = vector.shape_cast %36 : vector<1x8x256xf32> to vector<8x256xf32>
    %38 = vector.shape_cast %35 : vector<8x256xf32> to vector<1x8x256xf32>
    tpu.vector_store %arg5[%c0_16, %c0_17, %c0_18], %38 {strides = array<i32>} : memref<1x8x256xf32, #tpu.memory_space<vmem>>, vector<1x8x256xf32>,
    %c0_19 = arith.constant 0 : index
    %c1_20 = arith.constant 1 : index
    %c0_21 = arith.constant 0 : index
    %39 = vector.load %arg2[%c0_19, %c1_20, %c0_21] : memref<1x9x256xi32, #tpu.memory_space<vmem>>, vector<1x1x256xi32>
    %40 = vector.shape_cast %39 : vector<1x1x256xi32> to vector<1x256xi32>
    %41 = vector.broadcast %40 : vector<1x256xi32> to vector<256x256xi32>
    %42 = arith.cmpi eq, %0, %41 : vector<256x256xi32>
    %43 = arith.extui %42 : vector<256x256xi1> to vector<256x256xi32>
    %44 = arith.sitofp %43 : vector<256x256xi32> to vector<256x256xf32>
    %45 = arith.truncf %44 : vector<256x256xf32> to vector<256x256xbf16>
    %c0_22 = arith.constant 0 : index
    %c1_23 = arith.constant 1 : index
    %c0_24 = arith.constant 0 : index
    %c0_25 = arith.constant 0 : index
    %46 = vector.load %arg4[%c0_22, %c1_23, %c0_24, %c0_25] : memref<1x9x32x256xbf16, #tpu.memory_space<vmem>>, vector<1x1x32x256xbf16>
    %47 = vector.shape_cast %46 : vector<1x1x32x256xbf16> to vector<32x256xbf16>
    %cst_26 = arith.constant dense<0.000000e+00> : vector<32x256xf32>
    %48 = tpu.matmul %47, %45, %cst_26 {dimension_numbers = #tpu.dot_dimension_numbers<[1], [0], [0], [1], [0, 0, 1, 1], [], []>} : vector<32x256xbf16>, vector<256x256xbf16>, vector<32x256xf32> -> vector<32x256xf32>
    %cst_27 = arith.constant 0.000000e+00 : f32
    %49 = vector.broadcast %cst_27 : f32 to vector<8x256xf32>
    %c0_28 = arith.constant 0 : index
    %c4 = arith.constant 4 : index
    %c0_29 = arith.constant 0 : index
    %50 = vector.load %arg3[%c0_28, %c4, %c0_29] : memref<1x36x256xf32, #tpu.memory_space<vmem>>, vector<1x1x256xf32>
    %51 = vector.shape_cast %50 : vector<1x1x256xf32> to vector<1x256xf32>
    %52 = vector.extract_strided_slice %48 {offsets = [0, 0], sizes = [8, 256], strides = [1, 1]} : vector<32x256xf32> to vector<8x256xf32>
    %53 = vector.broadcast %51 : vector<1x256xf32> to vector<8x256xf32>
    %54 = arith.mulf %53, %52 : vector<8x256xf32>
    %55 = arith.addf %49, %54 : vector<8x256xf32>
    %c0_30 = arith.constant 0 : index
    %c5 = arith.constant 5 : index
    %c0_31 = arith.constant 0 : index
    %56 = vector.load %arg3[%c0_30, %c5, %c0_31] : memref<1x36x256xf32, #tpu.memory_space<vmem>>, vector<1x1x256xf32>
    %57 = vector.shape_cast %56 : vector<1x1x256xf32> to vector<1x256xf32>
    %58 = vector.extract_strided_slice %48 {offsets = [8, 0], sizes = [8, 256], strides = [1, 1]} : vector<32x256xf32> to vector<8x256xf32>
    %59 = vector.broadcast %57 : vector<1x256xf32> to vector<8x256xf32>
    %60 = arith.mulf %59, %58 : vector<8x256xf32>
    %61 = arith.addf %55, %60 : vector<8x256xf32>
    %c0_32 = arith.constant 0 : index
    %c6 = arith.constant 6 : index
    %c0_33 = arith.constant 0 : index
    %62 = vector.load %arg3[%c0_32, %c6, %c0_33] : memref<1x36x256xf32, #tpu.memory_space<vmem>>, vector<1x1x256xf32>
    %63 = vector.shape_cast %62 : vector<1x1x256xf32> to vector<1x256xf32>
    %64 = vector.extract_strided_slice %48 {offsets = [16, 0], sizes = [8, 256], strides = [1, 1]} : vector<32x256xf32> to vector<8x256xf32>
    %65 = vector.broadcast %63 : vector<1x256xf32> to vector<8x256xf32>
    %66 = arith.mulf %65, %64 : vector<8x256xf32>
    %67 = arith.addf %61, %66 : vector<8x256xf32>
    %c0_34 = arith.constant 0 : index
    %c7 = arith.constant 7 : index
    %c0_35 = arith.constant 0 : index
    %68 = vector.load %arg3[%c0_34, %c7, %c0_35] : memref<1x36x256xf32, #tpu.memory_space<vmem>>, vector<1x1x256xf32>
    %69 = vector.shape_cast %68 : vector<1x1x256xf32> to vector<1x256xf32>
    %70 = vector.extract_strided_slice %48 {offsets = [24, 0], sizes = [8, 256], strides = [1, 1]} : vector<32x256xf32> to vector<8x256xf32>
    %71 = vector.broadcast %69 : vector<1x256xf32> to vector<8x256xf32>
    %72 = arith.mulf %71, %70 : vector<8x256xf32>
    %73 = arith.addf %67, %72 : vector<8x256xf32>
    %c0_36 = arith.constant 0 : index
    %c0_37 = arith.constant 0 : index
    %c0_38 = arith.constant 0 : index
    %74 = vector.load %arg5[%c0_36, %c0_37, %c0_38] : memref<1x8x256xf32, #tpu.memory_space<vmem>>, vector<1x8x256xf32>
    %75 = vector.shape_cast %74 : vector<1x8x256xf32> to vector<8x256xf32>
    %76 = arith.addf %75, %73 : vector<8x256xf32>
    %c0_39 = arith.constant 0 : index
    %c0_40 = arith.constant 0 : index
    %c0_41 = arith.constant 0 : index
    %77 = vector.load %arg5[%c0_39, %c0_40, %c0_41] : memref<1x8x256xf32, #tpu.memory_space<vmem>>, vector<1x8x256xf32>
    %78 = vector.shape_cast %77 : vector<1x8x256xf32> to vector<8x256xf32>
    %79 = vector.shape_cast %76 : vector<8x256xf32> to vector<1x8x256xf32>
    tpu.vector_store %arg5[%c0_39, %c0_40, %c0_41], %79 {strides = array<i32>} : memref<1x8x256xf32, #tpu.memory_space<vmem>>, vector<1x8x256xf32>,
    %c0_42 = arith.constant 0 : index
    %c2_43 = arith.constant 2 : index
    %c0_44 = arith.constant 0 : index
    %80 = vector.load %arg2[%c0_42, %c2_43, %c0_44] : memref<1x9x256xi32, #tpu.memory_space<vmem>>, vector<1x1x256xi32>
    %81 = vector.shape_cast %80 : vector<1x1x256xi32> to vector<1x256xi32>
    %82 = vector.broadcast %81 : vector<1x256xi32> to vector<256x256xi32>
    %83 = arith.cmpi eq, %0, %82 : vector<256x256xi32>
    %84 = arith.extui %83 : vector<256x256xi1> to vector<256x256xi32>
    %85 = arith.sitofp %84 : vector<256x256xi32> to vector<256x256xf32>
    %86 = arith.truncf %85 : vector<256x256xf32> to vector<256x256xbf16>
    %c0_45 = arith.constant 0 : index
    %c2_46 = arith.constant 2 : index
    %c0_47 = arith.constant 0 : index
    %c0_48 = arith.constant 0 : index
    %87 = vector.load %arg4[%c0_45, %c2_46, %c0_47, %c0_48] : memref<1x9x32x256xbf16, #tpu.memory_space<vmem>>, vector<1x1x32x256xbf16>
    %88 = vector.shape_cast %87 : vector<1x1x32x256xbf16> to vector<32x256xbf16>
    %cst_49 = arith.constant dense<0.000000e+00> : vector<32x256xf32>
    %89 = tpu.matmul %88, %86, %cst_49 {dimension_numbers = #tpu.dot_dimension_numbers<[1], [0], [0], [1], [0, 0, 1, 1], [], []>} : vector<32x256xbf16>, vector<256x256xbf16>, vector<32x256xf32> -> vector<32x256xf32>
    %cst_50 = arith.constant 0.000000e+00 : f32
    %90 = vector.broadcast %cst_50 : f32 to vector<8x256xf32>
    %c0_51 = arith.constant 0 : index
    %c8 = arith.constant 8 : index
    %c0_52 = arith.constant 0 : index
    %91 = vector.load %arg3[%c0_51, %c8, %c0_52] : memref<1x36x256xf32, #tpu.memory_space<vmem>>, vector<1x1x256xf32>
    %92 = vector.shape_cast %91 : vector<1x1x256xf32> to vector<1x256xf32>
    %93 = vector.extract_strided_slice %89 {offsets = [0, 0], sizes = [8, 256], strides = [1, 1]} : vector<32x256xf32> to vector<8x256xf32>
    %94 = vector.broadcast %92 : vector<1x256xf32> to vector<8x256xf32>
    %95 = arith.mulf %94, %93 : vector<8x256xf32>
    %96 = arith.addf %90, %95 : vector<8x256xf32>
    %c0_53 = arith.constant 0 : index
    %c9 = arith.constant 9 : index
    %c0_54 = arith.constant 0 : index
    %97 = vector.load %arg3[%c0_53, %c9, %c0_54] : memref<1x36x256xf32, #tpu.memory_space<vmem>>, vector<1x1x256xf32>
    %98 = vector.shape_cast %97 : vector<1x1x256xf32> to vector<1x256xf32>
    %99 = vector.extract_strided_slice %89 {offsets = [8, 0], sizes = [8, 256], strides = [1, 1]} : vector<32x256xf32> to vector<8x256xf32>
    %100 = vector.broadcast %98 : vector<1x256xf32> to vector<8x256xf32>
    %101 = arith.mulf %100, %99 : vector<8x256xf32>
    %102 = arith.addf %96, %101 : vector<8x256xf32>
    %c0_55 = arith.constant 0 : index
    %c10 = arith.constant 10 : index
    %c0_56 = arith.constant 0 : index
    %103 = vector.load %arg3[%c0_55, %c10, %c0_56] : memref<1x36x256xf32, #tpu.memory_space<vmem>>, vector<1x1x256xf32>
    %104 = vector.shape_cast %103 : vector<1x1x256xf32> to vector<1x256xf32>
    %105 = vector.extract_strided_slice %89 {offsets = [16, 0], sizes = [8, 256], strides = [1, 1]} : vector<32x256xf32> to vector<8x256xf32>
    %106 = vector.broadcast %104 : vector<1x256xf32> to vector<8x256xf32>
    %107 = arith.mulf %106, %105 : vector<8x256xf32>
    %108 = arith.addf %102, %107 : vector<8x256xf32>
    %c0_57 = arith.constant 0 : index
    %c11 = arith.constant 11 : index
    %c0_58 = arith.constant 0 : index
    %109 = vector.load %arg3[%c0_57, %c11, %c0_58] : memref<1x36x256xf32, #tpu.memory_space<vmem>>, vector<1x1x256xf32>
    %110 = vector.shape_cast %109 : vector<1x1x256xf32> to vector<1x256xf32>
    %111 = vector.extract_strided_slice %89 {offsets = [24, 0], sizes = [8, 256], strides = [1, 1]} : vector<32x256xf32> to vector<8x256xf32>
    %112 = vector.broadcast %110 : vector<1x256xf32> to vector<8x256xf32>
    %113 = arith.mulf %112, %111 : vector<8x256xf32>
    %114 = arith.addf %108, %113 : vector<8x256xf32>
    %c0_59 = arith.constant 0 : index
    %c0_60 = arith.constant 0 : index
    %c0_61 = arith.constant 0 : index
    %115 = vector.load %arg5[%c0_59, %c0_60, %c0_61] : memref<1x8x256xf32, #tpu.memory_space<vmem>>, vector<1x8x256xf32>
    %116 = vector.shape_cast %115 : vector<1x8x256xf32> to vector<8x256xf32>
    %117 = arith.addf %116, %114 : vector<8x256xf32>
    %c0_62 = arith.constant 0 : index
    %c0_63 = arith.constant 0 : index
    %c0_64 = arith.constant 0 : index
    %118 = vector.load %arg5[%c0_62, %c0_63, %c0_64] : memref<1x8x256xf32, #tpu.memory_space<vmem>>, vector<1x8x256xf32>
    %119 = vector.shape_cast %118 : vector<1x8x256xf32> to vector<8x256xf32>
    %120 = vector.shape_cast %117 : vector<8x256xf32> to vector<1x8x256xf32>
    tpu.vector_store %arg5[%c0_62, %c0_63, %c0_64], %120 {strides = array<i32>} : memref<1x8x256xf32, #tpu.memory_space<vmem>>, vector<1x8x256xf32>,
    %c0_65 = arith.constant 0 : index
    %c3_66 = arith.constant 3 : index
    %c0_67 = arith.constant 0 : index
    %121 = vector.load %arg2[%c0_65, %c3_66, %c0_67] : memref<1x9x256xi32, #tpu.memory_space<vmem>>, vector<1x1x256xi32>
    %122 = vector.shape_cast %121 : vector<1x1x256xi32> to vector<1x256xi32>
    %123 = vector.broadcast %122 : vector<1x256xi32> to vector<256x256xi32>
    %124 = arith.cmpi eq, %0, %123 : vector<256x256xi32>
    %125 = arith.extui %124 : vector<256x256xi1> to vector<256x256xi32>
    %126 = arith.sitofp %125 : vector<256x256xi32> to vector<256x256xf32>
    %127 = arith.truncf %126 : vector<256x256xf32> to vector<256x256xbf16>
    %c0_68 = arith.constant 0 : index
    %c3_69 = arith.constant 3 : index
    %c0_70 = arith.constant 0 : index
    %c0_71 = arith.constant 0 : index
    %128 = vector.load %arg4[%c0_68, %c3_69, %c0_70, %c0_71] : memref<1x9x32x256xbf16, #tpu.memory_space<vmem>>, vector<1x1x32x256xbf16>
    %129 = vector.shape_cast %128 : vector<1x1x32x256xbf16> to vector<32x256xbf16>
    %cst_72 = arith.constant dense<0.000000e+00> : vector<32x256xf32>
    %130 = tpu.matmul %129, %127, %cst_72 {dimension_numbers = #tpu.dot_dimension_numbers<[1], [0], [0], [1], [0, 0, 1, 1], [], []>} : vector<32x256xbf16>, vector<256x256xbf16>, vector<32x256xf32> -> vector<32x256xf32>
    %cst_73 = arith.constant 0.000000e+00 : f32
    %131 = vector.broadcast %cst_73 : f32 to vector<8x256xf32>
    %c0_74 = arith.constant 0 : index
    %c12 = arith.constant 12 : index
    %c0_75 = arith.constant 0 : index
    %132 = vector.load %arg3[%c0_74, %c12, %c0_75] : memref<1x36x256xf32, #tpu.memory_space<vmem>>, vector<1x1x256xf32>
    %133 = vector.shape_cast %132 : vector<1x1x256xf32> to vector<1x256xf32>
    %134 = vector.extract_strided_slice %130 {offsets = [0, 0], sizes = [8, 256], strides = [1, 1]} : vector<32x256xf32> to vector<8x256xf32>
    %135 = vector.broadcast %133 : vector<1x256xf32> to vector<8x256xf32>
    %136 = arith.mulf %135, %134 : vector<8x256xf32>
    %137 = arith.addf %131, %136 : vector<8x256xf32>
    %c0_76 = arith.constant 0 : index
    %c13 = arith.constant 13 : index
    %c0_77 = arith.constant 0 : index
    %138 = vector.load %arg3[%c0_76, %c13, %c0_77] : memref<1x36x256xf32, #tpu.memory_space<vmem>>, vector<1x1x256xf32>
    %139 = vector.shape_cast %138 : vector<1x1x256xf32> to vector<1x256xf32>
    %140 = vector.extract_strided_slice %130 {offsets = [8, 0], sizes = [8, 256], strides = [1, 1]} : vector<32x256xf32> to vector<8x256xf32>
    %141 = vector.broadcast %139 : vector<1x256xf32> to vector<8x256xf32>
    %142 = arith.mulf %141, %140 : vector<8x256xf32>
    %143 = arith.addf %137, %142 : vector<8x256xf32>
    %c0_78 = arith.constant 0 : index
    %c14 = arith.constant 14 : index
    %c0_79 = arith.constant 0 : index
    %144 = vector.load %arg3[%c0_78, %c14, %c0_79] : memref<1x36x256xf32, #tpu.memory_space<vmem>>, vector<1x1x256xf32>
    %145 = vector.shape_cast %144 : vector<1x1x256xf32> to vector<1x256xf32>
    %146 = vector.extract_strided_slice %130 {offsets = [16, 0], sizes = [8, 256], strides = [1, 1]} : vector<32x256xf32> to vector<8x256xf32>
    %147 = vector.broadcast %145 : vector<1x256xf32> to vector<8x256xf32>
    %148 = arith.mulf %147, %146 : vector<8x256xf32>
    %149 = arith.addf %143, %148 : vector<8x256xf32>
    %c0_80 = arith.constant 0 : index
    %c15 = arith.constant 15 : index
    %c0_81 = arith.constant 0 : index
    %150 = vector.load %arg3[%c0_80, %c15, %c0_81] : memref<1x36x256xf32, #tpu.memory_space<vmem>>, vector<1x1x256xf32>
    %151 = vector.shape_cast %150 : vector<1x1x256xf32> to vector<1x256xf32>
    %152 = vector.extract_strided_slice %130 {offsets = [24, 0], sizes = [8, 256], strides = [1, 1]} : vector<32x256xf32> to vector<8x256xf32>
    %153 = vector.broadcast %151 : vector<1x256xf32> to vector<8x256xf32>
    %154 = arith.mulf %153, %152 : vector<8x256xf32>
    %155 = arith.addf %149, %154 : vector<8x256xf32>
    %c0_82 = arith.constant 0 : index
    %c0_83 = arith.constant 0 : index
    %c0_84 = arith.constant 0 : index
    %156 = vector.load %arg5[%c0_82, %c0_83, %c0_84] : memref<1x8x256xf32, #tpu.memory_space<vmem>>, vector<1x8x256xf32>
    %157 = vector.shape_cast %156 : vector<1x8x256xf32> to vector<8x256xf32>
    %158 = arith.addf %157, %155 : vector<8x256xf32>
    %c0_85 = arith.constant 0 : index
    %c0_86 = arith.constant 0 : index
    %c0_87 = arith.constant 0 : index
    %159 = vector.load %arg5[%c0_85, %c0_86, %c0_87] : memref<1x8x256xf32, #tpu.memory_space<vmem>>, vector<1x8x256xf32>
    %160 = vector.shape_cast %159 : vector<1x8x256xf32> to vector<8x256xf32>
    %161 = vector.shape_cast %158 : vector<8x256xf32> to vector<1x8x256xf32>
    tpu.vector_store %arg5[%c0_85, %c0_86, %c0_87], %161 {strides = array<i32>} : memref<1x8x256xf32, #tpu.memory_space<vmem>>, vector<1x8x256xf32>,
    %c0_88 = arith.constant 0 : index
    %c4_89 = arith.constant 4 : index
    %c0_90 = arith.constant 0 : index
    %162 = vector.load %arg2[%c0_88, %c4_89, %c0_90] : memref<1x9x256xi32, #tpu.memory_space<vmem>>, vector<1x1x256xi32>
    %163 = vector.shape_cast %162 : vector<1x1x256xi32> to vector<1x256xi32>
    %164 = vector.broadcast %163 : vector<1x256xi32> to vector<256x256xi32>
    %165 = arith.cmpi eq, %0, %164 : vector<256x256xi32>
    %166 = arith.extui %165 : vector<256x256xi1> to vector<256x256xi32>
    %167 = arith.sitofp %166 : vector<256x256xi32> to vector<256x256xf32>
    %168 = arith.truncf %167 : vector<256x256xf32> to vector<256x256xbf16>
    %c0_91 = arith.constant 0 : index
    %c4_92 = arith.constant 4 : index
    %c0_93 = arith.constant 0 : index
    %c0_94 = arith.constant 0 : index
    %169 = vector.load %arg4[%c0_91, %c4_92, %c0_93, %c0_94] : memref<1x9x32x256xbf16, #tpu.memory_space<vmem>>, vector<1x1x32x256xbf16>
    %170 = vector.shape_cast %169 : vector<1x1x32x256xbf16> to vector<32x256xbf16>
    %cst_95 = arith.constant dense<0.000000e+00> : vector<32x256xf32>
    %171 = tpu.matmul %170, %168, %cst_95 {dimension_numbers = #tpu.dot_dimension_numbers<[1], [0], [0], [1], [0, 0, 1, 1], [], []>} : vector<32x256xbf16>, vector<256x256xbf16>, vector<32x256xf32> -> vector<32x256xf32>
    %cst_96 = arith.constant 0.000000e+00 : f32
    %172 = vector.broadcast %cst_96 : f32 to vector<8x256xf32>
    %c0_97 = arith.constant 0 : index
    %c16 = arith.constant 16 : index
    %c0_98 = arith.constant 0 : index
    %173 = vector.load %arg3[%c0_97, %c16, %c0_98] : memref<1x36x256xf32, #tpu.memory_space<vmem>>, vector<1x1x256xf32>
    %174 = vector.shape_cast %173 : vector<1x1x256xf32> to vector<1x256xf32>
    %175 = vector.extract_strided_slice %171 {offsets = [0, 0], sizes = [8, 256], strides = [1, 1]} : vector<32x256xf32> to vector<8x256xf32>
    %176 = vector.broadcast %174 : vector<1x256xf32> to vector<8x256xf32>
    %177 = arith.mulf %176, %175 : vector<8x256xf32>
    %178 = arith.addf %172, %177 : vector<8x256xf32>
    %c0_99 = arith.constant 0 : index
    %c17 = arith.constant 17 : index
    %c0_100 = arith.constant 0 : index
    %179 = vector.load %arg3[%c0_99, %c17, %c0_100] : memref<1x36x256xf32, #tpu.memory_space<vmem>>, vector<1x1x256xf32>
    %180 = vector.shape_cast %179 : vector<1x1x256xf32> to vector<1x256xf32>
    %181 = vector.extract_strided_slice %171 {offsets = [8, 0], sizes = [8, 256], strides = [1, 1]} : vector<32x256xf32> to vector<8x256xf32>
    %182 = vector.broadcast %180 : vector<1x256xf32> to vector<8x256xf32>
    %183 = arith.mulf %182, %181 : vector<8x256xf32>
    %184 = arith.addf %178, %183 : vector<8x256xf32>
    %c0_101 = arith.constant 0 : index
    %c18 = arith.constant 18 : index
    %c0_102 = arith.constant 0 : index
    %185 = vector.load %arg3[%c0_101, %c18, %c0_102] : memref<1x36x256xf32, #tpu.memory_space<vmem>>, vector<1x1x256xf32>
    %186 = vector.shape_cast %185 : vector<1x1x256xf32> to vector<1x256xf32>
    %187 = vector.extract_strided_slice %171 {offsets = [16, 0], sizes = [8, 256], strides = [1, 1]} : vector<32x256xf32> to vector<8x256xf32>
    %188 = vector.broadcast %186 : vector<1x256xf32> to vector<8x256xf32>
    %189 = arith.mulf %188, %187 : vector<8x256xf32>
    %190 = arith.addf %184, %189 : vector<8x256xf32>
    %c0_103 = arith.constant 0 : index
    %c19 = arith.constant 19 : index
    %c0_104 = arith.constant 0 : index
    %191 = vector.load %arg3[%c0_103, %c19, %c0_104] : memref<1x36x256xf32, #tpu.memory_space<vmem>>, vector<1x1x256xf32>
    %192 = vector.shape_cast %191 : vector<1x1x256xf32> to vector<1x256xf32>
    %193 = vector.extract_strided_slice %171 {offsets = [24, 0], sizes = [8, 256], strides = [1, 1]} : vector<32x256xf32> to vector<8x256xf32>
    %194 = vector.broadcast %192 : vector<1x256xf32> to vector<8x256xf32>
    %195 = arith.mulf %194, %193 : vector<8x256xf32>
    %196 = arith.addf %190, %195 : vector<8x256xf32>
    %c0_105 = arith.constant 0 : index
    %c0_106 = arith.constant 0 : index
    %c0_107 = arith.constant 0 : index
    %197 = vector.load %arg5[%c0_105, %c0_106, %c0_107] : memref<1x8x256xf32, #tpu.memory_space<vmem>>, vector<1x8x256xf32>
    %198 = vector.shape_cast %197 : vector<1x8x256xf32> to vector<8x256xf32>
    %199 = arith.addf %198, %196 : vector<8x256xf32>
    %c0_108 = arith.constant 0 : index
    %c0_109 = arith.constant 0 : index
    %c0_110 = arith.constant 0 : index
    %200 = vector.load %arg5[%c0_108, %c0_109, %c0_110] : memref<1x8x256xf32, #tpu.memory_space<vmem>>, vector<1x8x256xf32>
    %201 = vector.shape_cast %200 : vector<1x8x256xf32> to vector<8x256xf32>
    %202 = vector.shape_cast %199 : vector<8x256xf32> to vector<1x8x256xf32>
    tpu.vector_store %arg5[%c0_108, %c0_109, %c0_110], %202 {strides = array<i32>} : memref<1x8x256xf32, #tpu.memory_space<vmem>>, vector<1x8x256xf32>,
    %c0_111 = arith.constant 0 : index
    %c5_112 = arith.constant 5 : index
    %c0_113 = arith.constant 0 : index
    %203 = vector.load %arg2[%c0_111, %c5_112, %c0_113] : memref<1x9x256xi32, #tpu.memory_space<vmem>>, vector<1x1x256xi32>
    %204 = vector.shape_cast %203 : vector<1x1x256xi32> to vector<1x256xi32>
    %205 = vector.broadcast %204 : vector<1x256xi32> to vector<256x256xi32>
    %206 = arith.cmpi eq, %0, %205 : vector<256x256xi32>
    %207 = arith.extui %206 : vector<256x256xi1> to vector<256x256xi32>
    %208 = arith.sitofp %207 : vector<256x256xi32> to vector<256x256xf32>
    %209 = arith.truncf %208 : vector<256x256xf32> to vector<256x256xbf16>
    %c0_114 = arith.constant 0 : index
    %c5_115 = arith.constant 5 : index
    %c0_116 = arith.constant 0 : index
    %c0_117 = arith.constant 0 : index
    %210 = vector.load %arg4[%c0_114, %c5_115, %c0_116, %c0_117] : memref<1x9x32x256xbf16, #tpu.memory_space<vmem>>, vector<1x1x32x256xbf16>
    %211 = vector.shape_cast %210 : vector<1x1x32x256xbf16> to vector<32x256xbf16>
    %cst_118 = arith.constant dense<0.000000e+00> : vector<32x256xf32>
    %212 = tpu.matmul %211, %209, %cst_118 {dimension_numbers = #tpu.dot_dimension_numbers<[1], [0], [0], [1], [0, 0, 1, 1], [], []>} : vector<32x256xbf16>, vector<256x256xbf16>, vector<32x256xf32> -> vector<32x256xf32>
    %cst_119 = arith.constant 0.000000e+00 : f32
    %213 = vector.broadcast %cst_119 : f32 to vector<8x256xf32>
    %c0_120 = arith.constant 0 : index
    %c20 = arith.constant 20 : index
    %c0_121 = arith.constant 0 : index
    %214 = vector.load %arg3[%c0_120, %c20, %c0_121] : memref<1x36x256xf32, #tpu.memory_space<vmem>>, vector<1x1x256xf32>
    %215 = vector.shape_cast %214 : vector<1x1x256xf32> to vector<1x256xf32>
    %216 = vector.extract_strided_slice %212 {offsets = [0, 0], sizes = [8, 256], strides = [1, 1]} : vector<32x256xf32> to vector<8x256xf32>
    %217 = vector.broadcast %215 : vector<1x256xf32> to vector<8x256xf32>
    %218 = arith.mulf %217, %216 : vector<8x256xf32>
    %219 = arith.addf %213, %218 : vector<8x256xf32>
    %c0_122 = arith.constant 0 : index
    %c21 = arith.constant 21 : index
    %c0_123 = arith.constant 0 : index
    %220 = vector.load %arg3[%c0_122, %c21, %c0_123] : memref<1x36x256xf32, #tpu.memory_space<vmem>>, vector<1x1x256xf32>
    %221 = vector.shape_cast %220 : vector<1x1x256xf32> to vector<1x256xf32>
    %222 = vector.extract_strided_slice %212 {offsets = [8, 0], sizes = [8, 256], strides = [1, 1]} : vector<32x256xf32> to vector<8x256xf32>
    %223 = vector.broadcast %221 : vector<1x256xf32> to vector<8x256xf32>
    %224 = arith.mulf %223, %222 : vector<8x256xf32>
    %225 = arith.addf %219, %224 : vector<8x256xf32>
    %c0_124 = arith.constant 0 : index
    %c22 = arith.constant 22 : index
    %c0_125 = arith.constant 0 : index
    %226 = vector.load %arg3[%c0_124, %c22, %c0_125] : memref<1x36x256xf32, #tpu.memory_space<vmem>>, vector<1x1x256xf32>
    %227 = vector.shape_cast %226 : vector<1x1x256xf32> to vector<1x256xf32>
    %228 = vector.extract_strided_slice %212 {offsets = [16, 0], sizes = [8, 256], strides = [1, 1]} : vector<32x256xf32> to vector<8x256xf32>
    %229 = vector.broadcast %227 : vector<1x256xf32> to vector<8x256xf32>
    %230 = arith.mulf %229, %228 : vector<8x256xf32>
    %231 = arith.addf %225, %230 : vector<8x256xf32>
    %c0_126 = arith.constant 0 : index
    %c23 = arith.constant 23 : index
    %c0_127 = arith.constant 0 : index
    %232 = vector.load %arg3[%c0_126, %c23, %c0_127] : memref<1x36x256xf32, #tpu.memory_space<vmem>>, vector<1x1x256xf32>
    %233 = vector.shape_cast %232 : vector<1x1x256xf32> to vector<1x256xf32>
    %234 = vector.extract_strided_slice %212 {offsets = [24, 0], sizes = [8, 256], strides = [1, 1]} : vector<32x256xf32> to vector<8x256xf32>
    %235 = vector.broadcast %233 : vector<1x256xf32> to vector<8x256xf32>
    %236 = arith.mulf %235, %234 : vector<8x256xf32>
    %237 = arith.addf %231, %236 : vector<8x256xf32>
    %c0_128 = arith.constant 0 : index
    %c0_129 = arith.constant 0 : index
    %c0_130 = arith.constant 0 : index
    %238 = vector.load %arg5[%c0_128, %c0_129, %c0_130] : memref<1x8x256xf32, #tpu.memory_space<vmem>>, vector<1x8x256xf32>
    %239 = vector.shape_cast %238 : vector<1x8x256xf32> to vector<8x256xf32>
    %240 = arith.addf %239, %237 : vector<8x256xf32>
    %c0_131 = arith.constant 0 : index
    %c0_132 = arith.constant 0 : index
    %c0_133 = arith.constant 0 : index
    %241 = vector.load %arg5[%c0_131, %c0_132, %c0_133] : memref<1x8x256xf32, #tpu.memory_space<vmem>>, vector<1x8x256xf32>
    %242 = vector.shape_cast %241 : vector<1x8x256xf32> to vector<8x256xf32>
    %243 = vector.shape_cast %240 : vector<8x256xf32> to vector<1x8x256xf32>
    tpu.vector_store %arg5[%c0_131, %c0_132, %c0_133], %243 {strides = array<i32>} : memref<1x8x256xf32, #tpu.memory_space<vmem>>, vector<1x8x256xf32>,
    %c0_134 = arith.constant 0 : index
    %c6_135 = arith.constant 6 : index
    %c0_136 = arith.constant 0 : index
    %244 = vector.load %arg2[%c0_134, %c6_135, %c0_136] : memref<1x9x256xi32, #tpu.memory_space<vmem>>, vector<1x1x256xi32>
    %245 = vector.shape_cast %244 : vector<1x1x256xi32> to vector<1x256xi32>
    %246 = vector.broadcast %245 : vector<1x256xi32> to vector<256x256xi32>
    %247 = arith.cmpi eq, %0, %246 : vector<256x256xi32>
    %248 = arith.extui %247 : vector<256x256xi1> to vector<256x256xi32>
    %249 = arith.sitofp %248 : vector<256x256xi32> to vector<256x256xf32>
    %250 = arith.truncf %249 : vector<256x256xf32> to vector<256x256xbf16>
    %c0_137 = arith.constant 0 : index
    %c6_138 = arith.constant 6 : index
    %c0_139 = arith.constant 0 : index
    %c0_140 = arith.constant 0 : index
    %251 = vector.load %arg4[%c0_137, %c6_138, %c0_139, %c0_140] : memref<1x9x32x256xbf16, #tpu.memory_space<vmem>>, vector<1x1x32x256xbf16>
    %252 = vector.shape_cast %251 : vector<1x1x32x256xbf16> to vector<32x256xbf16>
    %cst_141 = arith.constant dense<0.000000e+00> : vector<32x256xf32>
    %253 = tpu.matmul %252, %250, %cst_141 {dimension_numbers = #tpu.dot_dimension_numbers<[1], [0], [0], [1], [0, 0, 1, 1], [], []>} : vector<32x256xbf16>, vector<256x256xbf16>, vector<32x256xf32> -> vector<32x256xf32>
    %cst_142 = arith.constant 0.000000e+00 : f32
    %254 = vector.broadcast %cst_142 : f32 to vector<8x256xf32>
    %c0_143 = arith.constant 0 : index
    %c24 = arith.constant 24 : index
    %c0_144 = arith.constant 0 : index
    %255 = vector.load %arg3[%c0_143, %c24, %c0_144] : memref<1x36x256xf32, #tpu.memory_space<vmem>>, vector<1x1x256xf32>
    %256 = vector.shape_cast %255 : vector<1x1x256xf32> to vector<1x256xf32>
    %257 = vector.extract_strided_slice %253 {offsets = [0, 0], sizes = [8, 256], strides = [1, 1]} : vector<32x256xf32> to vector<8x256xf32>
    %258 = vector.broadcast %256 : vector<1x256xf32> to vector<8x256xf32>
    %259 = arith.mulf %258, %257 : vector<8x256xf32>
    %260 = arith.addf %254, %259 : vector<8x256xf32>
    %c0_145 = arith.constant 0 : index
    %c25 = arith.constant 25 : index
    %c0_146 = arith.constant 0 : index
    %261 = vector.load %arg3[%c0_145, %c25, %c0_146] : memref<1x36x256xf32, #tpu.memory_space<vmem>>, vector<1x1x256xf32>
    %262 = vector.shape_cast %261 : vector<1x1x256xf32> to vector<1x256xf32>
    %263 = vector.extract_strided_slice %253 {offsets = [8, 0], sizes = [8, 256], strides = [1, 1]} : vector<32x256xf32> to vector<8x256xf32>
    %264 = vector.broadcast %262 : vector<1x256xf32> to vector<8x256xf32>
    %265 = arith.mulf %264, %263 : vector<8x256xf32>
    %266 = arith.addf %260, %265 : vector<8x256xf32>
    %c0_147 = arith.constant 0 : index
    %c26 = arith.constant 26 : index
    %c0_148 = arith.constant 0 : index
    %267 = vector.load %arg3[%c0_147, %c26, %c0_148] : memref<1x36x256xf32, #tpu.memory_space<vmem>>, vector<1x1x256xf32>
    %268 = vector.shape_cast %267 : vector<1x1x256xf32> to vector<1x256xf32>
    %269 = vector.extract_strided_slice %253 {offsets = [16, 0], sizes = [8, 256], strides = [1, 1]} : vector<32x256xf32> to vector<8x256xf32>
    %270 = vector.broadcast %268 : vector<1x256xf32> to vector<8x256xf32>
    %271 = arith.mulf %270, %269 : vector<8x256xf32>
    %272 = arith.addf %266, %271 : vector<8x256xf32>
    %c0_149 = arith.constant 0 : index
    %c27 = arith.constant 27 : index
    %c0_150 = arith.constant 0 : index
    %273 = vector.load %arg3[%c0_149, %c27, %c0_150] : memref<1x36x256xf32, #tpu.memory_space<vmem>>, vector<1x1x256xf32>
    %274 = vector.shape_cast %273 : vector<1x1x256xf32> to vector<1x256xf32>
    %275 = vector.extract_strided_slice %253 {offsets = [24, 0], sizes = [8, 256], strides = [1, 1]} : vector<32x256xf32> to vector<8x256xf32>
    %276 = vector.broadcast %274 : vector<1x256xf32> to vector<8x256xf32>
    %277 = arith.mulf %276, %275 : vector<8x256xf32>
    %278 = arith.addf %272, %277 : vector<8x256xf32>
    %c0_151 = arith.constant 0 : index
    %c0_152 = arith.constant 0 : index
    %c0_153 = arith.constant 0 : index
    %279 = vector.load %arg5[%c0_151, %c0_152, %c0_153] : memref<1x8x256xf32, #tpu.memory_space<vmem>>, vector<1x8x256xf32>
    %280 = vector.shape_cast %279 : vector<1x8x256xf32> to vector<8x256xf32>
    %281 = arith.addf %280, %278 : vector<8x256xf32>
    %c0_154 = arith.constant 0 : index
    %c0_155 = arith.constant 0 : index
    %c0_156 = arith.constant 0 : index
    %282 = vector.load %arg5[%c0_154, %c0_155, %c0_156] : memref<1x8x256xf32, #tpu.memory_space<vmem>>, vector<1x8x256xf32>
    %283 = vector.shape_cast %282 : vector<1x8x256xf32> to vector<8x256xf32>
    %284 = vector.shape_cast %281 : vector<8x256xf32> to vector<1x8x256xf32>
    tpu.vector_store %arg5[%c0_154, %c0_155, %c0_156], %284 {strides = array<i32>} : memref<1x8x256xf32, #tpu.memory_space<vmem>>, vector<1x8x256xf32>,
    %c0_157 = arith.constant 0 : index
    %c7_158 = arith.constant 7 : index
    %c0_159 = arith.constant 0 : index
    %285 = vector.load %arg2[%c0_157, %c7_158, %c0_159] : memref<1x9x256xi32, #tpu.memory_space<vmem>>, vector<1x1x256xi32>
    %286 = vector.shape_cast %285 : vector<1x1x256xi32> to vector<1x256xi32>
    %287 = vector.broadcast %286 : vector<1x256xi32> to vector<256x256xi32>
    %288 = arith.cmpi eq, %0, %287 : vector<256x256xi32>
    %289 = arith.extui %288 : vector<256x256xi1> to vector<256x256xi32>
    %290 = arith.sitofp %289 : vector<256x256xi32> to vector<256x256xf32>
    %291 = arith.truncf %290 : vector<256x256xf32> to vector<256x256xbf16>
    %c0_160 = arith.constant 0 : index
    %c7_161 = arith.constant 7 : index
    %c0_162 = arith.constant 0 : index
    %c0_163 = arith.constant 0 : index
    %292 = vector.load %arg4[%c0_160, %c7_161, %c0_162, %c0_163] : memref<1x9x32x256xbf16, #tpu.memory_space<vmem>>, vector<1x1x32x256xbf16>
    %293 = vector.shape_cast %292 : vector<1x1x32x256xbf16> to vector<32x256xbf16>
    %cst_164 = arith.constant dense<0.000000e+00> : vector<32x256xf32>
    %294 = tpu.matmul %293, %291, %cst_164 {dimension_numbers = #tpu.dot_dimension_numbers<[1], [0], [0], [1], [0, 0, 1, 1], [], []>} : vector<32x256xbf16>, vector<256x256xbf16>, vector<32x256xf32> -> vector<32x256xf32>
    %cst_165 = arith.constant 0.000000e+00 : f32
    %295 = vector.broadcast %cst_165 : f32 to vector<8x256xf32>
    %c0_166 = arith.constant 0 : index
    %c28 = arith.constant 28 : index
    %c0_167 = arith.constant 0 : index
    %296 = vector.load %arg3[%c0_166, %c28, %c0_167] : memref<1x36x256xf32, #tpu.memory_space<vmem>>, vector<1x1x256xf32>
    %297 = vector.shape_cast %296 : vector<1x1x256xf32> to vector<1x256xf32>
    %298 = vector.extract_strided_slice %294 {offsets = [0, 0], sizes = [8, 256], strides = [1, 1]} : vector<32x256xf32> to vector<8x256xf32>
    %299 = vector.broadcast %297 : vector<1x256xf32> to vector<8x256xf32>
    %300 = arith.mulf %299, %298 : vector<8x256xf32>
    %301 = arith.addf %295, %300 : vector<8x256xf32>
    %c0_168 = arith.constant 0 : index
    %c29 = arith.constant 29 : index
    %c0_169 = arith.constant 0 : index
    %302 = vector.load %arg3[%c0_168, %c29, %c0_169] : memref<1x36x256xf32, #tpu.memory_space<vmem>>, vector<1x1x256xf32>
    %303 = vector.shape_cast %302 : vector<1x1x256xf32> to vector<1x256xf32>
    %304 = vector.extract_strided_slice %294 {offsets = [8, 0], sizes = [8, 256], strides = [1, 1]} : vector<32x256xf32> to vector<8x256xf32>
    %305 = vector.broadcast %303 : vector<1x256xf32> to vector<8x256xf32>
    %306 = arith.mulf %305, %304 : vector<8x256xf32>
    %307 = arith.addf %301, %306 : vector<8x256xf32>
    %c0_170 = arith.constant 0 : index
    %c30 = arith.constant 30 : index
    %c0_171 = arith.constant 0 : index
    %308 = vector.load %arg3[%c0_170, %c30, %c0_171] : memref<1x36x256xf32, #tpu.memory_space<vmem>>, vector<1x1x256xf32>
    %309 = vector.shape_cast %308 : vector<1x1x256xf32> to vector<1x256xf32>
    %310 = vector.extract_strided_slice %294 {offsets = [16, 0], sizes = [8, 256], strides = [1, 1]} : vector<32x256xf32> to vector<8x256xf32>
    %311 = vector.broadcast %309 : vector<1x256xf32> to vector<8x256xf32>
    %312 = arith.mulf %311, %310 : vector<8x256xf32>
    %313 = arith.addf %307, %312 : vector<8x256xf32>
    %c0_172 = arith.constant 0 : index
    %c31 = arith.constant 31 : index
    %c0_173 = arith.constant 0 : index
    %314 = vector.load %arg3[%c0_172, %c31, %c0_173] : memref<1x36x256xf32, #tpu.memory_space<vmem>>, vector<1x1x256xf32>
    %315 = vector.shape_cast %314 : vector<1x1x256xf32> to vector<1x256xf32>
    %316 = vector.extract_strided_slice %294 {offsets = [24, 0], sizes = [8, 256], strides = [1, 1]} : vector<32x256xf32> to vector<8x256xf32>
    %317 = vector.broadcast %315 : vector<1x256xf32> to vector<8x256xf32>
    %318 = arith.mulf %317, %316 : vector<8x256xf32>
    %319 = arith.addf %313, %318 : vector<8x256xf32>
    %c0_174 = arith.constant 0 : index
    %c0_175 = arith.constant 0 : index
    %c0_176 = arith.constant 0 : index
    %320 = vector.load %arg5[%c0_174, %c0_175, %c0_176] : memref<1x8x256xf32, #tpu.memory_space<vmem>>, vector<1x8x256xf32>
    %321 = vector.shape_cast %320 : vector<1x8x256xf32> to vector<8x256xf32>
    %322 = arith.addf %321, %319 : vector<8x256xf32>
    %c0_177 = arith.constant 0 : index
    %c0_178 = arith.constant 0 : index
    %c0_179 = arith.constant 0 : index
    %323 = vector.load %arg5[%c0_177, %c0_178, %c0_179] : memref<1x8x256xf32, #tpu.memory_space<vmem>>, vector<1x8x256xf32>
    %324 = vector.shape_cast %323 : vector<1x8x256xf32> to vector<8x256xf32>
    %325 = vector.shape_cast %322 : vector<8x256xf32> to vector<1x8x256xf32>
    tpu.vector_store %arg5[%c0_177, %c0_178, %c0_179], %325 {strides = array<i32>} : memref<1x8x256xf32, #tpu.memory_space<vmem>>, vector<1x8x256xf32>,
    %c0_180 = arith.constant 0 : index
    %c8_181 = arith.constant 8 : index
    %c0_182 = arith.constant 0 : index
    %326 = vector.load %arg2[%c0_180, %c8_181, %c0_182] : memref<1x9x256xi32, #tpu.memory_space<vmem>>, vector<1x1x256xi32>
    %327 = vector.shape_cast %326 : vector<1x1x256xi32> to vector<1x256xi32>
    %328 = vector.broadcast %327 : vector<1x256xi32> to vector<256x256xi32>
    %329 = arith.cmpi eq, %0, %328 : vector<256x256xi32>
    %330 = arith.extui %329 : vector<256x256xi1> to vector<256x256xi32>
    %331 = arith.sitofp %330 : vector<256x256xi32> to vector<256x256xf32>
    %332 = arith.truncf %331 : vector<256x256xf32> to vector<256x256xbf16>
    %c0_183 = arith.constant 0 : index
    %c8_184 = arith.constant 8 : index
    %c0_185 = arith.constant 0 : index
    %c0_186 = arith.constant 0 : index
    %333 = vector.load %arg4[%c0_183, %c8_184, %c0_185, %c0_186] : memref<1x9x32x256xbf16, #tpu.memory_space<vmem>>, vector<1x1x32x256xbf16>
    %334 = vector.shape_cast %333 : vector<1x1x32x256xbf16> to vector<32x256xbf16>
    %cst_187 = arith.constant dense<0.000000e+00> : vector<32x256xf32>
    %335 = tpu.matmul %334, %332, %cst_187 {dimension_numbers = #tpu.dot_dimension_numbers<[1], [0], [0], [1], [0, 0, 1, 1], [], []>} : vector<32x256xbf16>, vector<256x256xbf16>, vector<32x256xf32> -> vector<32x256xf32>
    %cst_188 = arith.constant 0.000000e+00 : f32
    %336 = vector.broadcast %cst_188 : f32 to vector<8x256xf32>
    %c0_189 = arith.constant 0 : index
    %c32 = arith.constant 32 : index
    %c0_190 = arith.constant 0 : index
    %337 = vector.load %arg3[%c0_189, %c32, %c0_190] : memref<1x36x256xf32, #tpu.memory_space<vmem>>, vector<1x1x256xf32>
    %338 = vector.shape_cast %337 : vector<1x1x256xf32> to vector<1x256xf32>
    %339 = vector.extract_strided_slice %335 {offsets = [0, 0], sizes = [8, 256], strides = [1, 1]} : vector<32x256xf32> to vector<8x256xf32>
    %340 = vector.broadcast %338 : vector<1x256xf32> to vector<8x256xf32>
    %341 = arith.mulf %340, %339 : vector<8x256xf32>
    %342 = arith.addf %336, %341 : vector<8x256xf32>
    %c0_191 = arith.constant 0 : index
    %c33 = arith.constant 33 : index
    %c0_192 = arith.constant 0 : index
    %343 = vector.load %arg3[%c0_191, %c33, %c0_192] : memref<1x36x256xf32, #tpu.memory_space<vmem>>, vector<1x1x256xf32>
    %344 = vector.shape_cast %343 : vector<1x1x256xf32> to vector<1x256xf32>
    %345 = vector.extract_strided_slice %335 {offsets = [8, 0], sizes = [8, 256], strides = [1, 1]} : vector<32x256xf32> to vector<8x256xf32>
    %346 = vector.broadcast %344 : vector<1x256xf32> to vector<8x256xf32>
    %347 = arith.mulf %346, %345 : vector<8x256xf32>
    %348 = arith.addf %342, %347 : vector<8x256xf32>
    %c0_193 = arith.constant 0 : index
    %c34 = arith.constant 34 : index
    %c0_194 = arith.constant 0 : index
    %349 = vector.load %arg3[%c0_193, %c34, %c0_194] : memref<1x36x256xf32, #tpu.memory_space<vmem>>, vector<1x1x256xf32>
    %350 = vector.shape_cast %349 : vector<1x1x256xf32> to vector<1x256xf32>
    %351 = vector.extract_strided_slice %335 {offsets = [16, 0], sizes = [8, 256], strides = [1, 1]} : vector<32x256xf32> to vector<8x256xf32>
    %352 = vector.broadcast %350 : vector<1x256xf32> to vector<8x256xf32>
    %353 = arith.mulf %352, %351 : vector<8x256xf32>
    %354 = arith.addf %348, %353 : vector<8x256xf32>
    %c0_195 = arith.constant 0 : index
    %c35 = arith.constant 35 : index
    %c0_196 = arith.constant 0 : index
    %355 = vector.load %arg3[%c0_195, %c35, %c0_196] : memref<1x36x256xf32, #tpu.memory_space<vmem>>, vector<1x1x256xf32>
    %356 = vector.shape_cast %355 : vector<1x1x256xf32> to vector<1x256xf32>
    %357 = vector.extract_strided_slice %335 {offsets = [24, 0], sizes = [8, 256], strides = [1, 1]} : vector<32x256xf32> to vector<8x256xf32>
    %358 = vector.broadcast %356 : vector<1x256xf32> to vector<8x256xf32>
    %359 = arith.mulf %358, %357 : vector<8x256xf32>
    %360 = arith.addf %354, %359 : vector<8x256xf32>
    %c0_197 = arith.constant 0 : index
    %c0_198 = arith.constant 0 : index
    %c0_199 = arith.constant 0 : index
    %361 = vector.load %arg5[%c0_197, %c0_198, %c0_199] : memref<1x8x256xf32, #tpu.memory_space<vmem>>, vector<1x8x256xf32>
    %362 = vector.shape_cast %361 : vector<1x8x256xf32> to vector<8x256xf32>
    %363 = arith.addf %362, %360 : vector<8x256xf32>
    %c0_200 = arith.constant 0 : index
    %c0_201 = arith.constant 0 : index
    %c0_202 = arith.constant 0 : index
    %364 = vector.load %arg5[%c0_200, %c0_201, %c0_202] : memref<1x8x256xf32, #tpu.memory_space<vmem>>, vector<1x8x256xf32>
    %365 = vector.shape_cast %364 : vector<1x8x256xf32> to vector<8x256xf32>
    %366 = vector.shape_cast %363 : vector<8x256xf32> to vector<1x8x256xf32>
    tpu.vector_store %arg5[%c0_200, %c0_201, %c0_202], %366 {strides = array<i32>} : memref<1x8x256xf32, #tpu.memory_space<vmem>>, vector<1x8x256xf32>,
    return
  }
  func.func @transform_0(%arg0: i32, %arg1: i32) -> (i32, i32, i32) {
    %c0_i32 = arith.constant 0 : i32
    %c0_i32_0 = arith.constant 0 : i32
    return %arg0, %c0_i32, %arg1 : i32, i32, i32
  }
  func.func @transform_1(%arg0: i32, %arg1: i32) -> (i32, i32, i32) {
    %c0_i32 = arith.constant 0 : i32
    %c0_i32_0 = arith.constant 0 : i32
    return %arg0, %c0_i32, %arg1 : i32, i32, i32
  }
  func.func @transform_2(%arg0: i32, %arg1: i32) -> (i32, i32, i32, i32) {
    %c0_i32 = arith.constant 0 : i32
    %c0_i32_0 = arith.constant 0 : i32
    %c0_i32_1 = arith.constant 0 : i32
    %c0_i32_2 = arith.constant 0 : i32
    return %arg0, %c0_i32, %c0_i32_0, %c0_i32_1 : i32, i32, i32, i32
  }
  func.func @transform_3(%arg0: i32, %arg1: i32) -> (i32, i32, i32) {
    %c0_i32 = arith.constant 0 : i32
    %c0_i32_0 = arith.constant 0 : i32
    return %arg0, %c0_i32, %arg1 : i32, i32, i32
  }
}

</mosaic_0001>

<bundles_post_ra>
// kernel: tpu_custom_call.1
= control target key start
LH: loop header
LB: loop body
LE: loop exit
PB: predicated region body
PF: predicated region fallthrough
CT: control target
= control target key end

     0   :  { %8 = vsyncpa [#allocation3], 0  ;;  %s7862_s0 = inlined_call_operand.vmem [shape: s32[2,9,256], index: 0, kind: input, shape index: {}]   ;;  %s7863_s1 = inlined_call_operand.vmem [shape: f32[2,36,256], index: 1, kind: input, shape index: {}]   ;;  %s7864_s2 = inlined_call_operand.hbm [shape: bf16[2,9,32,256], index: 2, kind: input, shape index: {}]   ;;  %s7865_s3 = inlined_call_operand.hbm [shape: f32[2,8,256], index: 3, kind: output, shape index: {}]  }
   0x1   :  { %10 = vsyncpa [#allocation3 + $0x1], 0 }
   0x2   :  { %11 = vsyncpa [#allocation4], 0 }
   0x3   :  { %13 = vsyncpa [#allocation4 + $0x1], 0  ;;  %s5480_s12 = smov 0   ;;  %s5482_s13 = smov 0  }
   0x4   :  { %s5484_s14 = smov 0   ;;  %s5486_s15 = smov 0  }
   0x5   :  { %s5488_s16 = smov 0   ;;  %s5490_s17 = smov 0  }
   0x6 LB: > { %s3910_s18 = sadd.s32 4294967295, %s5453_s17   ;;  %s3911_s19 = sadd.s32 4294967294, %s5453_s17   ;;  %s5453_s17 = sphi %s5490_s17, %s19_s17   ;;  %s5449_s16 = sphi %s5488_s16, %s7934_s16   ;;  %s5445_s15 = sphi %s5486_s15, %s7933_s15   ;;  %s5441_s14 = sphi %s5484_s14, %s7932_s14   ;;  %s5437_s13 = sphi %s5482_s13, %s7931_s13   ;;  %s5433_s12 = sphi %s5480_s12, %s7930_s12  }
   0x7   : > { %s31_s20 = sadd.s32 1, %s5449_s16  ;;  %s94_s21 = sadd.s32 1, %s5441_s14 }
   0x8   : > { %p33_p0 = scmp.ge.s32.totalorder %s31_s20, 2  ;;  %p101_p1 = scmp.ne.s32.totalorder %s5441_s14, %s5437_s13 }
   0x9   : > { %p102_p2 = scmp.eq.s32.totalorder %s5453_s17, 0  ;;  %p107_p3 = scmp.ne.s32.totalorder %s5437_s13, %s5433_s12 }
   0xa   : > { %s7936_s20 = smov (%p33_p0, %s31_s20), 0  ;;  %p108_p5 = scmp.eq.s32.totalorder %s3910_s18, 0 }
   0xb   : > { %p5521_p4 = por %p102_p2, %p101_p1  ;;  %s91_s23 = ssub.s32 %s5449_s16, %s7936_s20 }
   0xc   : > { %p133_p6 = scmp.eq.s32.totalorder %s3910_s18, 1  ;;  %p92_p7 = scmp.eq.s32.totalorder %s91_s23, 0 }
   0xd   : > { %p5527_p8 = por %p108_p5, %p107_p3  ;;  %p139_p10 = scmp.eq.s32.totalorder %s3911_s19, 1 }
   0xe   : > { %p5531_p9 = por %p133_p6, %p101_p1  ;;  %p5238_p13 = scmp.lt.s32.totalorder %s5453_s17, 2 }
   0xf   : > { %s5536_s26 = scalar_select %p92_p7, %s5441_s14, %s94_s21  }
  0x10   : > { %p5538_p11 = por %p139_p10, %p107_p3  ;;  %s185_s28 = sand.u32 1, %s5441_s14  }
  0x11   : > { %s5222_s29 = smul.u32 288, %s185_s28  ;;  %p5548_p0 = pnand %p5238_p13, %p5521_p4 }
  0x12   : > { %s5223_s30 = smul.u32 4608, %s5449_s16  ;;  %p3915_p1 = scmp.ge.s32.totalorder %s5453_s17, 1 }
  0x13   : > { %s189_s8 = scalar_lea.vmem [#allocation2], %s5222_s29  ;;  %s186_s10 = scalar_lea.sflag [#allocation3], %s185_s28 }
  0x14   : > { %s195_s7 = scalar_lea.hbm %s7864_s2, %s5223_s30  ;;  %s196_s9 = sshll.u32 %s189_s8, 4  ;;  %s197_s9 = int_to_ptr.vmem [resolvable:$true] %s196_s9 }
  0x15   : > { %p5347_p2 = pneg %p5548_p0  ;;  %s5358_s11 = scalar_lea.vmem %s197_s9, 4608 }
  0x16   : > { %p5359_p3 = scmp.ne.s32.totalorder %s197_s9, %s5358_s11  ;;  %s5455_s18 = smov [#allocation2]  }
  0x17   : > { %s5363_s19 = sshll.u32 %s5455_s18, 4  ;;  %s5364_s19 = int_to_ptr.vmem [resolvable:$false] %s5363_s19 }
  0x18   : > { %p5361_p5 = pnand %p5359_p3, %p5347_p2  ;;  %s5365_s21 = scalar_lea.vmem %s5364_s19, 9216 }
  0x19   : > { %p5366_p4 = scmp.lt.s32.totalorder %s197_s9, %s5364_s19  ;;  %p5367_p7 = scmp.lt.s32.totalorder %s5365_s21, %s5358_s11 }
  0x1a   : > { %p5362_p6 = pneg %p5361_p5 }
  0x1b   : > { %p5368_p10 = por %p5367_p7, %p5366_p4 }
  0x1d   : > { %p5369_p13 = pnand %p5368_p10, %p5362_p6 }
  0x1f   : > { %5372 = shalt.err (!%p5369_p13)
}
  0x20   : > { %s5456_s22 = smov 128   ;;  %s5457_s23 = smov 8  }
  0x21   : > { %5233 = dma.hbm_to_vmem [thread:$0]  (!%p5548_p0), %s195_s7, 4608, %s197_s9, %s186_s10, %s5456_s22, %s5456_s22, %s5457_s23  }
  0x22   : > { %p204_p12 = scmp.lt.s32.totalorder %s5453_s17, 3 }
  0x24   : > { %p205_p2 = pnand %p3915_p1, %p204_p12 }
  0x26   : > { %208 = sbr.rel (%p205_p2) target bundleno = 602 (0x25a), region = 32 }
  0x2b   : > { %s5564_s28 = sand.u32 1, %s5437_s13  }
  0x2c   : > { %s5224_s29 = smul.u32 288, %s5564_s28  ;;  %s211_s30 = scalar_lea.sflag [#allocation3], %s5564_s28 }
  0x2e   : > { %s5568_s5 = scalar_lea.vmem [#allocation2], %s5224_s29 }
  0x2f   : > { %5424 = dma.done.wait (%p5527_p8), %s211_s30, 4608  }
  0x30   : > { %5426 = vsyncadd (%p5527_p8), %s211_s30, 4294962688  ;;  %p256_p0 = scmp.lt.s32.totalorder %s5445_s15, 1  ;;  %v276_v0 = vlaneseq  ;;  %v5293_v14 = vld [vmem:[%s5568_s5 + $0x4] ss:$8 sps:$4 sm:$0xff]   ;;  %v5458_v15 = vmov 1.0|1.0  }
  0x31   : > { %598 = vmatprep.mubr.bf16.mxu0 %v5293_v14  ;;  %v5296_v22 = vld [vmem:[%s5568_s5 + $0x24] ss:$8 sps:$4 sm:$0xff]   ;;  %v5291_v50 = vld [vmem:[%s5568_s5] ss:$8 sps:$4 sm:$0xff]   ;;  %v5297_v52 = vld [vmem:[%s5568_s5 + $0x14] ss:$8 sps:$4 sm:$0xff]  }
  0x32   : > { %s5576_s4 = scalar_select %p256_p0, %s5445_s15, 1  ;;  %v5578_v1 = vshrl.u32 %v276_v0, 7  ;;  %979 = vmatprep.mubr.bf16.mxu1 %v5296_v22  ;;  %v5294_v51 = vld [vmem:[%s5568_s5 + $0x20] ss:$8 sps:$4 sm:$0xff]   ;;  %v5299_v53 = vld [vmem:[%s5568_s5 + $0x34] ss:$8 sps:$4 sm:$0xff]  }
  0x33   : > { %v5301_v54 = vld [vmem:[%s5568_s5 + $0x10] ss:$8 sps:$4 sm:$0xff]   ;;  %v5305_v56 = vld [vmem:[%s5568_s5 + $0x44] ss:$8 sps:$4 sm:$0xff]   ;;  %v5303_v0 = vld [vmem:[%s5568_s5 + $0x40] ss:$8 sps:$4 sm:$0xff]  }
  0x34   : > { %s5188_s6 = sshll.u32 %s5576_s4, 5  ;;  %v5582_v2 = vsub.s32 1, %v5578_v1  ;;  %v5585_v3 = vsub.s32 0, %v5578_v1  ;;  %v5593_v4 = vadd.s32 112, %v5578_v1  ;;  %v5596_v5 = vadd.s32 120, %v5578_v1  ;;  %s5225_s9 = smul.u32 80, %s5576_s4 }
  0x35   : > { %s5590_s8 = scalar_lea.vmem %s7862_s0, %s5188_s6  ;;  %v5599_v6 = vadd.s32 96, %v5578_v1  ;;  %v5602_v7 = vadd.s32 104, %v5578_v1  ;;  %v5641_v16 = vadd.s32 80, %v5578_v1  ;;  %v5644_v17 = vadd.s32 88, %v5578_v1  ;;  %v5302_v55 = vld [vmem:[%s5568_s5 + $0x30] ss:$8 sps:$4 sm:$0xff]  }
  0x36   : > { %v309_v8 = vld [vmem:[%s5590_s8] ss:$8 sm:$0x3]  ;;  %v4055_v9 = vld [vmem:[%s5590_s8 + $0x1] ss:$8 sm:$0x3]  ;;  %s7362_s18 = scalar_lea.vmem %s7863_s1, %s5225_s9 }
  0x37   : > { %v5607_v10 = vrot.slane %v309_v8, %v5582_v2  ;;  %v5610_v11 = vrot.slane %v4055_v9, %v5582_v2  ;;  %v5613_v12 = vrot.slane %v309_v8, %v5585_v3  ;;  %v5616_v13 = vrot.slane %v4055_v9, %v5585_v3  ;;  %v4196_v44 = vld [vmem:[%s5590_s8 + $0x2] ss:$8 sm:$0x3]  ;;  %v4337_v45 = vld [vmem:[%s5590_s8 + $0x3] ss:$8 sm:$0x3] }
  0x38   : > { %v5670_v18 = vadd.s32 64, %v5578_v1  ;;  %v5673_v19 = vadd.s32 72, %v5578_v1  ;;  %v5696_v20 = vadd.s32 48, %v5578_v1  ;;  %v5699_v21 = vadd.s32 56, %v5578_v1  ;;  %v5308_v57 = vld [vmem:[%s5568_s5 + $0x64] ss:$8 sps:$4 sm:$0xff]  }
  0x39   : > { %vm347_vm0 = vcmp.eq.s32.totalorder %v5593_v4, %v5607_v10  ;;  %vm349_vm1 = vcmp.eq.s32.totalorder %v5596_v5, %v5607_v10  ;;  %vm727_vm2 = vcmp.eq.s32.totalorder %v5593_v4, %v5610_v11  ;;  %vm729_vm3 = vcmp.eq.s32.totalorder %v5596_v5, %v5610_v11  ;;  %v4478_v58 = vld [vmem:[%s5590_s8 + $0x4] ss:$8 sm:$0x3]  ;;  %v4619_v59 = vld [vmem:[%s5590_s8 + $0x5] ss:$8 sm:$0x3] }
  0x3a   : > { %vm3988_vm4 = vmpackc.low %vm349_vm1, %vm347_vm0  ;;  %vm346_vm5 = vcmp.eq.s32.totalorder %v5593_v4, %v5613_v12  ;;  %vm348_vm6 = vcmp.eq.s32.totalorder %v5596_v5, %v5613_v12  ;;  %vm726_vm7 = vcmp.eq.s32.totalorder %v5593_v4, %v5616_v13  ;;  %vm728_vm8 = vcmp.eq.s32.totalorder %v5596_v5, %v5616_v13  ;;  %v5306_v8 = vld [vmem:[%s5568_s5 + $0x60] ss:$8 sps:$4 sm:$0xff]   ;;  %v5309_v9 = vld [vmem:[%s5568_s5 + $0x54] ss:$8 sps:$4 sm:$0xff]   ;;  %s3916_s19 = sshll.u32 %s5564_s28, 4  ;;  %s5189_s21 = sshll.u32 %s5445_s15, 8 }
  0x3b   : > { %3989 = vmatprep.subr.msk.bf16.mxu0 %vm3988_vm4, %v5458_v15  ;;  %vm4128_vm9 = vmpackc.low %vm729_vm3, %vm727_vm2  ;;  %vm343_vm10 = vcmp.eq.s32.totalorder %v5599_v6, %v5607_v10  ;;  %vm345_vm11 = vcmp.eq.s32.totalorder %v5602_v7, %v5607_v10  ;;  %vm723_vm13 = vcmp.eq.s32.totalorder %v5599_v6, %v5610_v11  ;;  %vm725_vm14 = vcmp.eq.s32.totalorder %v5602_v7, %v5610_v11  ;;  %v5320_v14 = vld [vmem:[%s5568_s5 + $0xa4] ss:$8 sps:$4 sm:$0xff]   ;;  %s254_s22 = scalar_lea.vmem [#allocation5], %s3916_s19  ;;  %s3777_s4 = scalar_lea.sflag [#allocation4], %s5564_s28 }
  0x3c   : > { %4129 = vmatprep.subr.msk.bf16.mxu1 %vm4128_vm9, %v5458_v15  ;;  %vm3990_vm12 = vmpackc.low %vm348_vm6, %vm346_vm5  ;;  %vm342_vm0 = vcmp.eq.s32.totalorder %v5599_v6, %v5613_v12  ;;  %vm344_vm1 = vcmp.eq.s32.totalorder %v5602_v7, %v5613_v12  ;;  %vm722_vm3 = vcmp.eq.s32.totalorder %v5599_v6, %v5616_v13  ;;  %vm724_vm4 = vcmp.eq.s32.totalorder %v5602_v7, %v5616_v13  ;;  %v4760_v22 = vld [vmem:[%s5590_s8 + $0x6] ss:$8 sm:$0x3]  ;;  %s3793_s23 = sshll.u32 %s254_s22, 4  ;;  %s5459_s15 = smov [#allocation5]   ;;  %s3794_s23 = int_to_ptr.vmem [resolvable:$true] %s3793_s23 }
  0x3d   : > { %3991 = vmatpush1.bf16.msk.msra.mxu0 %vm3990_vm12, %v5458_v15  ;;  %vm4130_vm15 = vmpackc.low %vm728_vm8, %vm726_vm7  ;;  %vm339_vm6 = vcmp.eq.s32.totalorder %v5641_v16, %v5607_v10  ;;  %vm341_vm7 = vcmp.eq.s32.totalorder %v5644_v17, %v5607_v10  ;;  %vm719_vm9 = vcmp.eq.s32.totalorder %v5641_v16, %v5610_v11  ;;  %vm338_vm12 = vcmp.eq.s32.totalorder %v5641_v16, %v5613_v12  ;;  %s5373_s6 = scalar_lea.vmem %s3794_s23, 256  ;;  %s5377_s7 = sshll.u32 %s5459_s15, 4  ;;  %s5378_s7 = int_to_ptr.vmem [resolvable:$false] %s5377_s7 }
  0x3e   : > { %4131 = vmatpush1.bf16.msk.msra.mxu1 %vm4130_vm15, %v5458_v15  ;;  %vm3992_vm2 = vmpackc.low %vm345_vm11, %vm343_vm10  ;;  %vm721_vm10 = vcmp.eq.s32.totalorder %v5644_v17, %v5610_v11  ;;  %vm718_vm15 = vcmp.eq.s32.totalorder %v5641_v16, %v5616_v13  ;;  %v5723_v23 = vadd.s32 32, %v5578_v1  ;;  %v5726_v24 = vadd.s32 40, %v5578_v1  ;;  %p5374_p8 = scmp.ne.s32.totalorder %s3794_s23, %s5373_s6  ;;  %s5379_s24 = scalar_lea.vmem %s5378_s7, 512 }
  0x3f   : > { %3993 = vmatprep.subr.msk.bf16.mxu0 %vm3992_vm2, %v5458_v15  ;;  %vm4132_vm5 = vmpackc.low %vm725_vm14, %vm723_vm13  ;;  %vm340_vm13 = vcmp.eq.s32.totalorder %v5644_v17, %v5613_v12  ;;  %vm335_vm2 = vcmp.eq.s32.totalorder %v5670_v18, %v5607_v10  ;;  %v5749_v25 = vadd.s32 16, %v5578_v1  ;;  %v5752_v26 = vadd.s32 24, %v5578_v1  ;;  %p5380_p3 = scmp.lt.s32.totalorder %s3794_s23, %s5378_s7  ;;  %p5381_p5 = scmp.lt.s32.totalorder %s5379_s24, %s5373_s6 }
  0x40   : > { %4133 = vmatprep.subr.msk.bf16.mxu1 %vm4132_vm5, %v5458_v15  ;;  %vm3994_vm8 = vmpackc.low %vm344_vm1, %vm342_vm0  ;;  %vm720_vm0 = vcmp.eq.s32.totalorder %v5644_v17, %v5616_v13  ;;  %vm715_vm5 = vcmp.eq.s32.totalorder %v5670_v18, %v5610_v11  ;;  %v5775_v27 = vadd.s32 8, %v5578_v1  ;;  %v5798_v28 = vadd.s32 240, %v5578_v1  ;;  %p5375_p12 = pnand %p5374_p8, %p5531_p9 }
  0x41   : > { %3995 = vmatpush1.bf16.msk.msra.mxu0 %vm3994_vm8, %v5458_v15  ;;  %vm4134_vm11 = vmpackc.low %vm724_vm4, %vm722_vm3  ;;  %vm337_vm3 = vcmp.eq.s32.totalorder %v5673_v19, %v5607_v10  ;;  %vm334_vm8 = vcmp.eq.s32.totalorder %v5670_v18, %v5613_v12  ;;  %v5801_v29 = vadd.s32 248, %v5578_v1  ;;  %v5824_v30 = vadd.s32 224, %v5578_v1  ;;  %p5382_p6 = por %p5381_p5, %p5380_p3 }
  0x42   : > { %4135 = vmatpush1.bf16.msk.msra.mxu1 %vm4134_vm11, %v5458_v15  ;;  %vm3996_vm14 = vmpackc.low %vm341_vm7, %vm339_vm6  ;;  %vm717_vm6 = vcmp.eq.s32.totalorder %v5673_v19, %v5610_v11  ;;  %vm714_vm11 = vcmp.eq.s32.totalorder %v5670_v18, %v5616_v13  ;;  %v5827_v31 = vadd.s32 232, %v5578_v1  ;;  %v5850_v32 = vadd.s32 208, %v5578_v1  ;;  %p5376_p1 = pneg %p5375_p12 }
  0x43   : > { %3997 = vmatprep.subr.msk.bf16.mxu0 %vm3996_vm14, %v5458_v15  ;;  %vm4136_vm1 = vmpackc.low %vm721_vm10, %vm719_vm9  ;;  %vm336_vm9 = vcmp.eq.s32.totalorder %v5673_v19, %v5613_v12  ;;  %vm331_vm14 = vcmp.eq.s32.totalorder %v5696_v20, %v5607_v10  ;;  %v5853_v33 = vadd.s32 216, %v5578_v1  ;;  %v5876_v34 = vadd.s32 192, %v5578_v1 }
  0x44   : > { %4137 = vmatprep.subr.msk.bf16.mxu1 %vm4136_vm1, %v5458_v15  ;;  %vm3998_vm4 = vmpackc.low %vm340_vm13, %vm338_vm12  ;;  %vm716_vm12 = vcmp.eq.s32.totalorder %v5673_v19, %v5616_v13  ;;  %vm711_vm1 = vcmp.eq.s32.totalorder %v5696_v20, %v5610_v11  ;;  %v5879_v35 = vadd.s32 200, %v5578_v1  ;;  %v5902_v36 = vadd.s32 176, %v5578_v1  ;;  %p5383_p4 = pnand %p5382_p6, %p5376_p1 }
  0x45   : > { %3999 = vmatpush1.bf16.msk.msra.mxu0 %vm3998_vm4, %v5458_v15  ;;  %vm4138_vm7 = vmpackc.low %vm720_vm0, %vm718_vm15  ;;  %vm333_vm15 = vcmp.eq.s32.totalorder %v5699_v21, %v5607_v10  ;;  %vm330_vm4 = vcmp.eq.s32.totalorder %v5696_v20, %v5613_v12  ;;  %v5905_v37 = vadd.s32 184, %v5578_v1  ;;  %v5928_v38 = vadd.s32 160, %v5578_v1 }
  0x46   : > { %4139 = vmatpush1.bf16.msk.msra.mxu1 %vm4138_vm7, %v5458_v15  ;;  %vm4000_vm10 = vmpackc.low %vm337_vm3, %vm335_vm2  ;;  %vm713_vm2 = vcmp.eq.s32.totalorder %v5699_v21, %v5610_v11  ;;  %vm710_vm7 = vcmp.eq.s32.totalorder %v5696_v20, %v5616_v13  ;;  %v5931_v39 = vadd.s32 168, %v5578_v1  ;;  %v5954_v40 = vadd.s32 144, %v5578_v1 }
  0x47   : > { %4001 = vmatprep.subr.msk.bf16.mxu0 %vm4000_vm10, %v5458_v15  ;;  %vm4140_vm13 = vmpackc.low %vm717_vm6, %vm715_vm5  ;;  %vm332_vm5 = vcmp.eq.s32.totalorder %v5699_v21, %v5613_v12  ;;  %vm327_vm10 = vcmp.eq.s32.totalorder %v5723_v23, %v5607_v10  ;;  %v5957_v41 = vadd.s32 152, %v5578_v1  ;;  %v5980_v42 = vadd.s32 128, %v5578_v1 }
  0x48   : > { %4141 = vmatprep.subr.msk.bf16.mxu1 %vm4140_vm13, %v5458_v15  ;;  %vm4002_vm0 = vmpackc.low %vm336_vm9, %vm334_vm8  ;;  %vm712_vm8 = vcmp.eq.s32.totalorder %v5699_v21, %v5616_v13  ;;  %vm707_vm13 = vcmp.eq.s32.totalorder %v5723_v23, %v5610_v11  ;;  %v5983_v43 = vadd.s32 136, %v5578_v1  ;;  %v6011_v46 = vrot.slane %v4196_v44, %v5582_v2 }
  0x49   : > { %4003 = vmatpush1.bf16.msk.msra.mxu0 %vm4002_vm0, %v5458_v15  ;;  %vm4142_vm3 = vmpackc.low %vm716_vm12, %vm714_vm11  ;;  %vm329_vm11 = vcmp.eq.s32.totalorder %v5726_v24, %v5607_v10  ;;  %vm326_vm0 = vcmp.eq.s32.totalorder %v5723_v23, %v5613_v12  ;;  %v6019_v47 = vrot.slane %v4337_v45, %v5582_v2  ;;  %v6027_v48 = vrot.slane %v4196_v44, %v5585_v3  ;;  %v4901_v44 = vld [vmem:[%s5590_s8 + $0x7] ss:$8 sm:$0x3] }
  0x4a   : > { %4143 = vmatpush1.bf16.msk.msra.mxu1 %vm4142_vm3, %v5458_v15  ;;  %vm4004_vm6 = vmpackc.low %vm333_vm15, %vm331_vm14  ;;  %vm709_vm14 = vcmp.eq.s32.totalorder %v5726_v24, %v5610_v11  ;;  %vm706_vm3 = vcmp.eq.s32.totalorder %v5723_v23, %v5616_v13  ;;  %v6035_v49 = vrot.slane %v4337_v45, %v5585_v3  ;;  %v6359_v60 = vrot.slane %v4478_v58, %v5582_v2 }
  0x4b   : > { %4005 = vmatprep.subr.msk.bf16.mxu0 %vm4004_vm6, %v5458_v15  ;;  %vm4144_vm9 = vmpackc.low %vm713_vm2, %vm711_vm1  ;;  %vm328_vm1 = vcmp.eq.s32.totalorder %v5726_v24, %v5613_v12  ;;  %vm323_vm6 = vcmp.eq.s32.totalorder %v5749_v25, %v5607_v10  ;;  %v6367_v61 = vrot.slane %v4619_v59, %v5582_v2  ;;  %v6375_v62 = vrot.slane %v4478_v58, %v5585_v3 }
  0x4c   : > { %4145 = vmatprep.subr.msk.bf16.mxu1 %vm4144_vm9, %v5458_v15  ;;  %vm4006_vm12 = vmpackc.low %vm332_vm5, %vm330_vm4  ;;  %vm708_vm4 = vcmp.eq.s32.totalorder %v5726_v24, %v5616_v13  ;;  %vm703_vm9 = vcmp.eq.s32.totalorder %v5749_v25, %v5610_v11  ;;  %v6383_v63 = vrot.slane %v4619_v59, %v5585_v3  ;;  %v6707_v45 = vrot.slane %v4760_v22, %v5582_v2 }
  0x4d   : > { %4007 = vmatpush1.bf16.msk.msra.mxu0 %vm4006_vm12, %v5458_v15  ;;  %vm4146_vm15 = vmpackc.low %vm712_vm8, %vm710_vm7  ;;  %vm325_vm7 = vcmp.eq.s32.totalorder %v5752_v26, %v5607_v10  ;;  %vm322_vm12 = vcmp.eq.s32.totalorder %v5749_v25, %v5613_v12 }
  0x4e   : > { %4147 = vmatpush1.bf16.msk.msra.mxu1 %vm4146_vm15, %v5458_v15  ;;  %vm4008_vm2 = vmpackc.low %vm329_vm11, %vm327_vm10  ;;  %vm705_vm10 = vcmp.eq.s32.totalorder %v5752_v26, %v5610_v11  ;;  %vm702_vm15 = vcmp.eq.s32.totalorder %v5749_v25, %v5616_v13 }
  0x4f   : > { %4009 = vmatprep.subr.msk.bf16.mxu0 %vm4008_vm2, %v5458_v15  ;;  %vm4148_vm5 = vmpackc.low %vm709_vm14, %vm707_vm13  ;;  %vm324_vm13 = vcmp.eq.s32.totalorder %v5752_v26, %v5613_v12  ;;  %vm319_vm2 = vcmp.eq.s32.totalorder %v5578_v1, %v5607_v10 }
  0x50   : > { %4149 = vmatprep.subr.msk.bf16.mxu1 %vm4148_vm5, %v5458_v15  ;;  %vm4010_vm8 = vmpackc.low %vm328_vm1, %vm326_vm0  ;;  %vm704_vm0 = vcmp.eq.s32.totalorder %v5752_v26, %v5616_v13  ;;  %vm699_vm5 = vcmp.eq.s32.totalorder %v5578_v1, %v5610_v11 }
  0x51   : > { %4011 = vmatpush1.bf16.msk.msra.mxu0 %vm4010_vm8, %v5458_v15  ;;  %vm4150_vm11 = vmpackc.low %vm708_vm4, %vm706_vm3  ;;  %vm321_vm3 = vcmp.eq.s32.totalorder %v5775_v27, %v5607_v10  ;;  %vm318_vm8 = vcmp.eq.s32.totalorder %v5578_v1, %v5613_v12 }
  0x52   : > { %4151 = vmatpush1.bf16.msk.msra.mxu1 %vm4150_vm11, %v5458_v15  ;;  %vm4012_vm14 = vmpackc.low %vm325_vm7, %vm323_vm6  ;;  %vm701_vm6 = vcmp.eq.s32.totalorder %v5775_v27, %v5610_v11  ;;  %vm698_vm11 = vcmp.eq.s32.totalorder %v5578_v1, %v5616_v13 }
  0x53   : > { %4013 = vmatprep.subr.msk.bf16.mxu0 %vm4012_vm14, %v5458_v15  ;;  %vm4152_vm1 = vmpackc.low %vm705_vm10, %vm703_vm9  ;;  %vm320_vm9 = vcmp.eq.s32.totalorder %v5775_v27, %v5613_v12  ;;  %vm379_vm14 = vcmp.eq.s32.totalorder %v5798_v28, %v5607_v10 }
  0x54   : > { %4153 = vmatprep.subr.msk.bf16.mxu1 %vm4152_vm1, %v5458_v15  ;;  %vm4014_vm4 = vmpackc.low %vm324_vm13, %vm322_vm12  ;;  %vm700_vm12 = vcmp.eq.s32.totalorder %v5775_v27, %v5616_v13  ;;  %vm759_vm1 = vcmp.eq.s32.totalorder %v5798_v28, %v5610_v11 }
  0x55   : > { %4015 = vmatpush1.bf16.msk.msra.mxu0 %vm4014_vm4, %v5458_v15  ;;  %vm4154_vm7 = vmpackc.low %vm704_vm0, %vm702_vm15  ;;  %vm381_vm15 = vcmp.eq.s32.totalorder %v5801_v29, %v5607_v10  ;;  %vm378_vm4 = vcmp.eq.s32.totalorder %v5798_v28, %v5613_v12 }
  0x56   : > { %4155 = vmatpush1.bf16.msk.msra.mxu1 %vm4154_vm7, %v5458_v15  ;;  %vm4016_vm10 = vmpackc.low %vm321_vm3, %vm319_vm2  ;;  %vm761_vm2 = vcmp.eq.s32.totalorder %v5801_v29, %v5610_v11  ;;  %vm758_vm7 = vcmp.eq.s32.totalorder %v5798_v28, %v5616_v13 }
  0x57   : > { %4017 = vmatprep.subr.msk.bf16.mxu0 %vm4016_vm10, %v5458_v15  ;;  %vm4156_vm13 = vmpackc.low %vm701_vm6, %vm699_vm5  ;;  %vm380_vm5 = vcmp.eq.s32.totalorder %v5801_v29, %v5613_v12  ;;  %vm375_vm10 = vcmp.eq.s32.totalorder %v5824_v30, %v5607_v10 }
  0x58   : > { %4157 = vmatprep.subr.msk.bf16.mxu1 %vm4156_vm13, %v5458_v15  ;;  %vm4018_vm0 = vmpackc.low %vm320_vm9, %vm318_vm8  ;;  %vm760_vm8 = vcmp.eq.s32.totalorder %v5801_v29, %v5616_v13  ;;  %vm755_vm13 = vcmp.eq.s32.totalorder %v5824_v30, %v5610_v11 }
  0x59   : > { %4019 = vmatpush1.bf16.msk.msra.mxu0 %vm4018_vm0, %v5458_v15  ;;  %vm4158_vm3 = vmpackc.low %vm700_vm12, %vm698_vm11  ;;  %vm377_vm11 = vcmp.eq.s32.totalorder %v5827_v31, %v5607_v10  ;;  %vm374_vm0 = vcmp.eq.s32.totalorder %v5824_v30, %v5613_v12 }
  0x5a   : > { %4159 = vmatpush1.bf16.msk.msra.mxu1 %vm4158_vm3, %v5458_v15  ;;  %vm4020_vm6 = vmpackc.low %vm381_vm15, %vm379_vm14  ;;  %vm757_vm14 = vcmp.eq.s32.totalorder %v5827_v31, %v5610_v11  ;;  %vm754_vm3 = vcmp.eq.s32.totalorder %v5824_v30, %v5616_v13 }
  0x5b   : > { %4021 = vmatprep.subr.msk.bf16.mxu0 %vm4020_vm6, %v5458_v15  ;;  %vm4160_vm9 = vmpackc.low %vm761_vm2, %vm759_vm1  ;;  %vm376_vm1 = vcmp.eq.s32.totalorder %v5827_v31, %v5613_v12  ;;  %vm371_vm6 = vcmp.eq.s32.totalorder %v5850_v32, %v5607_v10 }
  0x5c   : > { %4161 = vmatprep.subr.msk.bf16.mxu1 %vm4160_vm9, %v5458_v15  ;;  %vm4022_vm12 = vmpackc.low %vm380_vm5, %vm378_vm4  ;;  %vm756_vm4 = vcmp.eq.s32.totalorder %v5827_v31, %v5616_v13  ;;  %vm751_vm9 = vcmp.eq.s32.totalorder %v5850_v32, %v5610_v11 }
  0x5d   : > { %4023 = vmatpush2.bf16.msk.msra.mxu0 %vm4022_vm12, %v5458_v15  ;;  %vm4162_vm15 = vmpackc.low %vm760_vm8, %vm758_vm7  ;;  %vm373_vm7 = vcmp.eq.s32.totalorder %v5853_v33, %v5607_v10  ;;  %vm370_vm12 = vcmp.eq.s32.totalorder %v5850_v32, %v5613_v12 }
  0x5e   : > { %4163 = vmatpush2.bf16.msk.msra.mxu1 %vm4162_vm15, %v5458_v15  ;;  %vm4024_vm2 = vmpackc.low %vm377_vm11, %vm375_vm10  ;;  %vm753_vm10 = vcmp.eq.s32.totalorder %v5853_v33, %v5610_v11  ;;  %vm750_vm15 = vcmp.eq.s32.totalorder %v5850_v32, %v5616_v13 }
  0x5f   : > { %4025 = vmatprep.subr.msk.bf16.mxu0 %vm4024_vm2, %v5458_v15  ;;  %vm4164_vm5 = vmpackc.low %vm757_vm14, %vm755_vm13  ;;  %vm372_vm13 = vcmp.eq.s32.totalorder %v5853_v33, %v5613_v12  ;;  %vm367_vm2 = vcmp.eq.s32.totalorder %v5876_v34, %v5607_v10 }
  0x60   : > { %4165 = vmatprep.subr.msk.bf16.mxu1 %vm4164_vm5, %v5458_v15  ;;  %vm4026_vm8 = vmpackc.low %vm376_vm1, %vm374_vm0  ;;  %vm752_vm0 = vcmp.eq.s32.totalorder %v5853_v33, %v5616_v13  ;;  %vm747_vm5 = vcmp.eq.s32.totalorder %v5876_v34, %v5610_v11 }
  0x61   : > { %4027 = vmatpush2.bf16.msk.msra.mxu0 %vm4026_vm8, %v5458_v15  ;;  %vm4166_vm11 = vmpackc.low %vm756_vm4, %vm754_vm3  ;;  %vm369_vm3 = vcmp.eq.s32.totalorder %v5879_v35, %v5607_v10  ;;  %vm366_vm8 = vcmp.eq.s32.totalorder %v5876_v34, %v5613_v12 }
  0x62   : > { %4167 = vmatpush2.bf16.msk.msra.mxu1 %vm4166_vm11, %v5458_v15  ;;  %vm4028_vm14 = vmpackc.low %vm373_vm7, %vm371_vm6  ;;  %vm749_vm6 = vcmp.eq.s32.totalorder %v5879_v35, %v5610_v11  ;;  %vm746_vm11 = vcmp.eq.s32.totalorder %v5876_v34, %v5616_v13 }
  0x63   : > { %4029 = vmatprep.subr.msk.bf16.mxu0 %vm4028_vm14, %v5458_v15  ;;  %vm4168_vm1 = vmpackc.low %vm753_vm10, %vm751_vm9  ;;  %vm368_vm9 = vcmp.eq.s32.totalorder %v5879_v35, %v5613_v12  ;;  %vm363_vm14 = vcmp.eq.s32.totalorder %v5902_v36, %v5607_v10 }
  0x64   : > { %4169 = vmatprep.subr.msk.bf16.mxu1 %vm4168_vm1, %v5458_v15  ;;  %vm4030_vm4 = vmpackc.low %vm372_vm13, %vm370_vm12  ;;  %vm748_vm12 = vcmp.eq.s32.totalorder %v5879_v35, %v5616_v13  ;;  %vm743_vm1 = vcmp.eq.s32.totalorder %v5902_v36, %v5610_v11 }
  0x65   : > { %4031 = vmatpush2.bf16.msk.msra.mxu0 %vm4030_vm4, %v5458_v15  ;;  %vm4170_vm7 = vmpackc.low %vm752_vm0, %vm750_vm15  ;;  %vm365_vm15 = vcmp.eq.s32.totalorder %v5905_v37, %v5607_v10  ;;  %vm362_vm4 = vcmp.eq.s32.totalorder %v5902_v36, %v5613_v12 }
  0x66   : > { %4171 = vmatpush2.bf16.msk.msra.mxu1 %vm4170_vm7, %v5458_v15  ;;  %vm4032_vm10 = vmpackc.low %vm369_vm3, %vm367_vm2  ;;  %vm745_vm2 = vcmp.eq.s32.totalorder %v5905_v37, %v5610_v11  ;;  %vm742_vm7 = vcmp.eq.s32.totalorder %v5902_v36, %v5616_v13 }
  0x67   : > { %4033 = vmatprep.subr.msk.bf16.mxu0 %vm4032_vm10, %v5458_v15  ;;  %vm4172_vm13 = vmpackc.low %vm749_vm6, %vm747_vm5  ;;  %vm364_vm5 = vcmp.eq.s32.totalorder %v5905_v37, %v5613_v12  ;;  %vm359_vm10 = vcmp.eq.s32.totalorder %v5928_v38, %v5607_v10 }
  0x68   : > { %4173 = vmatprep.subr.msk.bf16.mxu1 %vm4172_vm13, %v5458_v15  ;;  %vm4034_vm0 = vmpackc.low %vm368_vm9, %vm366_vm8  ;;  %vm744_vm8 = vcmp.eq.s32.totalorder %v5905_v37, %v5616_v13  ;;  %vm739_vm13 = vcmp.eq.s32.totalorder %v5928_v38, %v5610_v11 }
  0x69   : > { %4035 = vmatpush2.bf16.msk.msra.mxu0 %vm4034_vm0, %v5458_v15  ;;  %vm4174_vm3 = vmpackc.low %vm748_vm12, %vm746_vm11  ;;  %vm361_vm11 = vcmp.eq.s32.totalorder %v5931_v39, %v5607_v10  ;;  %vm358_vm0 = vcmp.eq.s32.totalorder %v5928_v38, %v5613_v12 }
  0x6a   : > { %4175 = vmatpush2.bf16.msk.msra.mxu1 %vm4174_vm3, %v5458_v15  ;;  %vm4036_vm6 = vmpackc.low %vm365_vm15, %vm363_vm14  ;;  %vm741_vm14 = vcmp.eq.s32.totalorder %v5931_v39, %v5610_v11  ;;  %vm738_vm3 = vcmp.eq.s32.totalorder %v5928_v38, %v5616_v13 }
  0x6b   : > { %4037 = vmatprep.subr.msk.bf16.mxu0 %vm4036_vm6, %v5458_v15  ;;  %vm4176_vm9 = vmpackc.low %vm745_vm2, %vm743_vm1  ;;  %vm360_vm1 = vcmp.eq.s32.totalorder %v5931_v39, %v5613_v12  ;;  %vm355_vm6 = vcmp.eq.s32.totalorder %v5954_v40, %v5607_v10 }
  0x6c   : > { %4177 = vmatprep.subr.msk.bf16.mxu1 %vm4176_vm9, %v5458_v15  ;;  %vm4038_vm12 = vmpackc.low %vm364_vm5, %vm362_vm4  ;;  %vm740_vm4 = vcmp.eq.s32.totalorder %v5931_v39, %v5616_v13  ;;  %vm735_vm9 = vcmp.eq.s32.totalorder %v5954_v40, %v5610_v11 }
  0x6d   : > { %4039 = vmatpush2.bf16.msk.msra.mxu0 %vm4038_vm12, %v5458_v15  ;;  %vm4178_vm15 = vmpackc.low %vm744_vm8, %vm742_vm7  ;;  %vm357_vm7 = vcmp.eq.s32.totalorder %v5957_v41, %v5607_v10  ;;  %vm354_vm12 = vcmp.eq.s32.totalorder %v5954_v40, %v5613_v12 }
  0x6e   : > { %4179 = vmatpush2.bf16.msk.msra.mxu1 %vm4178_vm15, %v5458_v15  ;;  %vm4040_vm2 = vmpackc.low %vm361_vm11, %vm359_vm10  ;;  %vm737_vm10 = vcmp.eq.s32.totalorder %v5957_v41, %v5610_v11  ;;  %vm734_vm15 = vcmp.eq.s32.totalorder %v5954_v40, %v5616_v13 }
  0x6f   : > { %4041 = vmatprep.subr.msk.bf16.mxu0 %vm4040_vm2, %v5458_v15  ;;  %vm4180_vm5 = vmpackc.low %vm741_vm14, %vm739_vm13  ;;  %vm356_vm13 = vcmp.eq.s32.totalorder %v5957_v41, %v5613_v12  ;;  %vm351_vm2 = vcmp.eq.s32.totalorder %v5980_v42, %v5607_v10 }
  0x70   : > { %4181 = vmatprep.subr.msk.bf16.mxu1 %vm4180_vm5, %v5458_v15  ;;  %vm4042_vm8 = vmpackc.low %vm360_vm1, %vm358_vm0  ;;  %vm736_vm0 = vcmp.eq.s32.totalorder %v5957_v41, %v5616_v13  ;;  %vm731_vm5 = vcmp.eq.s32.totalorder %v5980_v42, %v5610_v11 }
  0x71   : > { %4043 = vmatpush2.bf16.msk.msra.mxu0 %vm4042_vm8, %v5458_v15  ;;  %vm4182_vm11 = vmpackc.low %vm740_vm4, %vm738_vm3  ;;  %vm353_vm3 = vcmp.eq.s32.totalorder %v5983_v43, %v5607_v10  ;;  %vm350_vm8 = vcmp.eq.s32.totalorder %v5980_v42, %v5613_v12  ;;  %v5311_v10 = vld [vmem:[%s5568_s5 + $0x74] ss:$8 sps:$4 sm:$0xff]  }
  0x72   : > { %4183 = vmatpush2.bf16.msk.msra.mxu1 %vm4182_vm11, %v5458_v15  ;;  %vm4044_vm14 = vmpackc.low %vm357_vm7, %vm355_vm6  ;;  %vm733_vm6 = vcmp.eq.s32.totalorder %v5983_v43, %v5610_v11  ;;  %vm730_vm11 = vcmp.eq.s32.totalorder %v5980_v42, %v5616_v13  ;;  %v5313_v11 = vld [vmem:[%s5568_s5 + $0x50] ss:$8 sps:$4 sm:$0xff]  }
  0x73   : > { %4045 = vmatprep.subr.msk.bf16.mxu0 %vm4044_vm14, %v5458_v15  ;;  %vm4184_vm1 = vmpackc.low %vm737_vm10, %vm735_vm9  ;;  %vm352_vm9 = vcmp.eq.s32.totalorder %v5983_v43, %v5613_v12  ;;  %vm1113_vm14 = vcmp.eq.s32.totalorder %v5593_v4, %v6011_v46  ;;  %v5314_v12 = vld [vmem:[%s5568_s5 + $0x70] ss:$8 sps:$4 sm:$0xff]  }
  0x74   : > { %4185 = vmatprep.subr.msk.bf16.mxu1 %vm4184_vm1, %v5458_v15  ;;  %vm4046_vm4 = vmpackc.low %vm356_vm13, %vm354_vm12  ;;  %vm732_vm12 = vcmp.eq.s32.totalorder %v5983_v43, %v5616_v13  ;;  %vm1499_vm1 = vcmp.eq.s32.totalorder %v5593_v4, %v6019_v47  ;;  %v5317_v13 = vld [vmem:[%s5568_s5 + $0x84] ss:$8 sps:$4 sm:$0xff]  }
  0x75   : > { %4047 = vmatpush2.bf16.msk.msra.mxu0 %vm4046_vm4, %v5458_v15  ;;  %vm4186_vm7 = vmpackc.low %vm736_vm0, %vm734_vm15  ;;  %vm1115_vm15 = vcmp.eq.s32.totalorder %v5596_v5, %v6011_v46  ;;  %vm1112_vm4 = vcmp.eq.s32.totalorder %v5593_v4, %v6027_v48 }
  0x76   : > { %4187 = vmatpush2.bf16.msk.msra.mxu1 %vm4186_vm7, %v5458_v15  ;;  %vm4048_vm10 = vmpackc.low %vm353_vm3, %vm351_vm2  ;;  %vm1501_vm2 = vcmp.eq.s32.totalorder %v5596_v5, %v6019_v47  ;;  %vm1498_vm7 = vcmp.eq.s32.totalorder %v5593_v4, %v6035_v49 }
  0x77   : > { %4049 = vmatprep.subr.msk.bf16.mxu0 %vm4048_vm10, %v5458_v15  ;;  %vm4188_vm13 = vmpackc.low %vm733_vm6, %vm731_vm5  ;;  %vm1114_vm5 = vcmp.eq.s32.totalorder %v5596_v5, %v6027_v48  ;;  %vm1109_vm10 = vcmp.eq.s32.totalorder %v5599_v6, %v6011_v46 }
  0x78   : > { %4189 = vmatprep.subr.msk.bf16.mxu1 %vm4188_vm13, %v5458_v15  ;;  %vm4050_vm0 = vmpackc.low %vm352_vm9, %vm350_vm8  ;;  %vm1500_vm8 = vcmp.eq.s32.totalorder %v5596_v5, %v6035_v49  ;;  %vm1495_vm13 = vcmp.eq.s32.totalorder %v5599_v6, %v6019_v47 }
  0x79   : > { %4051 = vmatpush2.bf16.msk.msra.mxu0 %vm4050_vm0, %v5458_v15  ;;  %vm4190_vm3 = vmpackc.low %vm732_vm12, %vm730_vm11  ;;  %vm1111_vm11 = vcmp.eq.s32.totalorder %v5602_v7, %v6011_v46  ;;  %vm1108_vm0 = vcmp.eq.s32.totalorder %v5599_v6, %v6027_v48 }
  0x7a   : > { %4191 = vmatpush2.bf16.msk.msra.mxu1 %vm4190_vm3, %v5458_v15  ;;  %vm4269_vm6 = vmpackc.low %vm1115_vm15, %vm1113_vm14  ;;  %vm1497_vm14 = vcmp.eq.s32.totalorder %v5602_v7, %v6019_v47  ;;  %vm1494_vm3 = vcmp.eq.s32.totalorder %v5599_v6, %v6035_v49 }
  0x7b   : > { %4270 = vmatprep.subr.msk.bf16.mxu0 %vm4269_vm6, %v5458_v15  ;;  %vm4410_vm9 = vmpackc.low %vm1501_vm2, %vm1499_vm1  ;;  %vm1110_vm1 = vcmp.eq.s32.totalorder %v5602_v7, %v6027_v48  ;;  %vm1105_vm6 = vcmp.eq.s32.totalorder %v5641_v16, %v6011_v46 }
  0x7c   : > { %599 = vmatmul.mubr.bf16.vlgmr.msra.gmra.mxu0 %v5291_v50  ;;  %4411 = vmatprep.subr.msk.bf16.mxu1 %vm4410_vm9, %v5458_v15  ;;  %vm4271_vm12 = vmpackc.low %vm1114_vm5, %vm1112_vm4  ;;  %vm1496_vm4 = vcmp.eq.s32.totalorder %v5602_v7, %v6035_v49  ;;  %vm1491_vm9 = vcmp.eq.s32.totalorder %v5641_v16, %v6019_v47  ;;  %v5318_v50 = vld [vmem:[%s5568_s5 + $0xa0] ss:$8 sps:$4 sm:$0xff]  }
  0x7d   : > { %980 = vmatmul.mubr.bf16.vlgmr.msra.gmra.mxu1 %v5294_v51  ;;  %4272 = vmatpush1.bf16.msk.msra.mxu0 %vm4271_vm12, %v5458_v15  ;;  %vm4412_vm15 = vmpackc.low %vm1500_vm8, %vm1498_vm7  ;;  %vm1107_vm7 = vcmp.eq.s32.totalorder %v5644_v17, %v6011_v46  ;;  %vm1104_vm12 = vcmp.eq.s32.totalorder %v5641_v16, %v6027_v48  ;;  %v5321_v51 = vld [vmem:[%s5568_s5 + $0x94] ss:$8 sps:$4 sm:$0xff]  }
  0x7e   : > { %4413 = vmatpush1.bf16.msk.msra.mxu1 %vm4412_vm15, %v5458_v15  ;;  %vm4273_vm2 = vmpackc.low %vm1111_vm11, %vm1109_vm10  ;;  %608 = vmatprep.mubr.bf16.mxu0 %v5297_v52  ;;  %vm1493_vm10 = vcmp.eq.s32.totalorder %v5644_v17, %v6019_v47  ;;  %vm1490_vm15 = vcmp.eq.s32.totalorder %v5641_v16, %v6035_v49  ;;  %v5323_v52 = vld [vmem:[%s5568_s5 + $0xb4] ss:$8 sps:$4 sm:$0xff]  }
  0x7f   : > { %4274 = vmatprep.subr.msk.bf16.mxu0 %vm4273_vm2, %v5458_v15  ;;  %vm4414_vm5 = vmpackc.low %vm1497_vm14, %vm1495_vm13  ;;  %989 = vmatprep.mubr.bf16.mxu1 %v5299_v53  ;;  %vm1106_vm13 = vcmp.eq.s32.totalorder %v5644_v17, %v6027_v48  ;;  %vm1101_vm2 = vcmp.eq.s32.totalorder %v5670_v18, %v6011_v46  ;;  %v5325_v53 = vld [vmem:[%s5568_s5 + $0x90] ss:$8 sps:$4 sm:$0xff]  }
  0x80   : > { %4415 = vmatprep.subr.msk.bf16.mxu1 %vm4414_vm5, %v5458_v15  ;;  %vm4275_vm8 = vmpackc.low %vm1110_vm1, %vm1108_vm0  ;;  %vm1492_vm0 = vcmp.eq.s32.totalorder %v5644_v17, %v6035_v49  ;;  %vm1487_vm5 = vcmp.eq.s32.totalorder %v5670_v18, %v6019_v47 }
  0x81   : > { %4276 = vmatpush1.bf16.msk.msra.mxu0 %vm4275_vm8, %v5458_v15  ;;  %vm4416_vm11 = vmpackc.low %vm1496_vm4, %vm1494_vm3  ;;  %vm1103_vm3 = vcmp.eq.s32.totalorder %v5673_v19, %v6011_v46  ;;  %vm1100_vm8 = vcmp.eq.s32.totalorder %v5670_v18, %v6027_v48 }
  0x82   : > { %4417 = vmatpush1.bf16.msk.msra.mxu1 %vm4416_vm11, %v5458_v15  ;;  %vm4277_vm14 = vmpackc.low %vm1107_vm7, %vm1105_vm6  ;;  %vm1489_vm6 = vcmp.eq.s32.totalorder %v5673_v19, %v6019_v47  ;;  %vm1486_vm11 = vcmp.eq.s32.totalorder %v5670_v18, %v6035_v49 }
  0x83   : > { %4278 = vmatprep.subr.msk.bf16.mxu0 %vm4277_vm14, %v5458_v15  ;;  %vm4418_vm1 = vmpackc.low %vm1493_vm10, %vm1491_vm9  ;;  %vm1102_vm9 = vcmp.eq.s32.totalorder %v5673_v19, %v6027_v48  ;;  %vm1097_vm14 = vcmp.eq.s32.totalorder %v5696_v20, %v6011_v46 }
  0x84   : > { %609 = vmatmul.mubr.bf16.gmra.mxu0 %v5301_v54  ;;  %4419 = vmatprep.subr.msk.bf16.mxu1 %vm4418_vm1, %v5458_v15  ;;  %vm4279_vm4 = vmpackc.low %vm1106_vm13, %vm1104_vm12  ;;  %vm1488_vm12 = vcmp.eq.s32.totalorder %v5673_v19, %v6035_v49  ;;  %vm1483_vm1 = vcmp.eq.s32.totalorder %v5696_v20, %v6019_v47  ;;  %v5326_v54 = vld [vmem:[%s5568_s5 + $0xb0] ss:$8 sps:$4 sm:$0xff]  }
  0x85   : > { %990 = vmatmul.mubr.bf16.gmra.mxu1 %v5302_v55  ;;  %4280 = vmatpush1.bf16.msk.msra.mxu0 %vm4279_vm4, %v5458_v15  ;;  %vm4420_vm7 = vmpackc.low %vm1492_vm0, %vm1490_vm15  ;;  %vm1099_vm15 = vcmp.eq.s32.totalorder %v5699_v21, %v6011_v46  ;;  %vm1096_vm4 = vcmp.eq.s32.totalorder %v5696_v20, %v6027_v48  ;;  %v5329_v55 = vld [vmem:[%s5568_s5 + $0xc4] ss:$8 sps:$4 sm:$0xff]  }
  0x86   : > { %4421 = vmatpush1.bf16.msk.msra.mxu1 %vm4420_vm7, %v5458_v15  ;;  %vm4281_vm10 = vmpackc.low %vm1103_vm3, %vm1101_vm2  ;;  %1365 = vmatprep.mubr.bf16.mxu0 %v5305_v56  ;;  %vm1485_vm2 = vcmp.eq.s32.totalorder %v5699_v21, %v6019_v47  ;;  %vm1482_vm7 = vcmp.eq.s32.totalorder %v5696_v20, %v6035_v49  ;;  %v5332_v56 = vld [vmem:[%s5568_s5 + $0xe4] ss:$8 sps:$4 sm:$0xff]  }
  0x87   : > { %4282 = vmatprep.subr.msk.bf16.mxu0 %vm4281_vm10, %v5458_v15  ;;  %vm4422_vm13 = vmpackc.low %vm1489_vm6, %vm1487_vm5  ;;  %1751 = vmatprep.mubr.bf16.mxu1 %v5308_v57  ;;  %vm1098_vm5 = vcmp.eq.s32.totalorder %v5699_v21, %v6027_v48  ;;  %vm1093_vm10 = vcmp.eq.s32.totalorder %v5723_v23, %v6011_v46  ;;  %v5042_v57 = vld [vmem:[%s5590_s8 + $0x10] ss:$8 sm:$0x3] }
  0x88   : > { %4423 = vmatprep.subr.msk.bf16.mxu1 %vm4422_vm13, %v5458_v15  ;;  %vm4283_vm0 = vmpackc.low %vm1102_vm9, %vm1100_vm8  ;;  %vm1484_vm8 = vcmp.eq.s32.totalorder %v5699_v21, %v6035_v49  ;;  %vm1479_vm13 = vcmp.eq.s32.totalorder %v5723_v23, %v6019_v47  ;;  %v7054_v58 = vrot.slane %v5042_v57, %v5582_v2  ;;  %v7062_v59 = vrot.slane %v5042_v57, %v5585_v3 }
  0x89   : > { %4284 = vmatpush1.bf16.msk.msra.mxu0 %vm4283_vm0, %v5458_v15  ;;  %vm4424_vm3 = vmpackc.low %vm1488_vm12, %vm1486_vm11  ;;  %vm1095_vm11 = vcmp.eq.s32.totalorder %v5726_v24, %v6011_v46  ;;  %vm1092_vm0 = vcmp.eq.s32.totalorder %v5723_v23, %v6027_v48 }
  0x8a   : > { %4425 = vmatpush1.bf16.msk.msra.mxu1 %vm4424_vm3, %v5458_v15  ;;  %vm4285_vm6 = vmpackc.low %vm1099_vm15, %vm1097_vm14  ;;  %vm1481_vm14 = vcmp.eq.s32.totalorder %v5726_v24, %v6019_v47  ;;  %vm1478_vm3 = vcmp.eq.s32.totalorder %v5723_v23, %v6035_v49 }
  0x8b   : > { %4286 = vmatprep.subr.msk.bf16.mxu0 %vm4285_vm6, %v5458_v15  ;;  %vm4426_vm9 = vmpackc.low %vm1485_vm2, %vm1483_vm1  ;;  %vm1094_vm1 = vcmp.eq.s32.totalorder %v5726_v24, %v6027_v48  ;;  %vm1089_vm6 = vcmp.eq.s32.totalorder %v5749_v25, %v6011_v46 }
  0x8c   : > { %4427 = vmatprep.subr.msk.bf16.mxu1 %vm4426_vm9, %v5458_v15  ;;  %vm4287_vm12 = vmpackc.low %vm1098_vm5, %vm1096_vm4  ;;  %vm1480_vm4 = vcmp.eq.s32.totalorder %v5726_v24, %v6035_v49  ;;  %vm1475_vm9 = vcmp.eq.s32.totalorder %v5749_v25, %v6019_v47 }
  0x8d   : > { %4288 = vmatpush1.bf16.msk.msra.mxu0 %vm4287_vm12, %v5458_v15  ;;  %vm4428_vm15 = vmpackc.low %vm1484_vm8, %vm1482_vm7  ;;  %vm1091_vm7 = vcmp.eq.s32.totalorder %v5752_v26, %v6011_v46  ;;  %vm1088_vm12 = vcmp.eq.s32.totalorder %v5749_v25, %v6027_v48 }
  0x8e   : > { %4429 = vmatpush1.bf16.msk.msra.mxu1 %vm4428_vm15, %v5458_v15  ;;  %vm4289_vm2 = vmpackc.low %vm1095_vm11, %vm1093_vm10  ;;  %vm1477_vm10 = vcmp.eq.s32.totalorder %v5752_v26, %v6019_v47  ;;  %vm1474_vm15 = vcmp.eq.s32.totalorder %v5749_v25, %v6035_v49 }
  0x8f   : > { %4290 = vmatprep.subr.msk.bf16.mxu0 %vm4289_vm2, %v5458_v15  ;;  %vm4430_vm5 = vmpackc.low %vm1481_vm14, %vm1479_vm13  ;;  %vm1090_vm13 = vcmp.eq.s32.totalorder %v5752_v26, %v6027_v48  ;;  %vm1085_vm2 = vcmp.eq.s32.totalorder %v5578_v1, %v6011_v46 }
  0x90   : > { %4431 = vmatprep.subr.msk.bf16.mxu1 %vm4430_vm5, %v5458_v15  ;;  %vm4291_vm8 = vmpackc.low %vm1094_vm1, %vm1092_vm0  ;;  %vm1476_vm0 = vcmp.eq.s32.totalorder %v5752_v26, %v6035_v49  ;;  %vm1471_vm5 = vcmp.eq.s32.totalorder %v5578_v1, %v6019_v47 }
  0x91   : > { %4292 = vmatpush1.bf16.msk.msra.mxu0 %vm4291_vm8, %v5458_v15  ;;  %vm4432_vm11 = vmpackc.low %vm1480_vm4, %vm1478_vm3  ;;  %vm1087_vm3 = vcmp.eq.s32.totalorder %v5775_v27, %v6011_v46  ;;  %vm1084_vm8 = vcmp.eq.s32.totalorder %v5578_v1, %v6027_v48 }
  0x92   : > { %4433 = vmatpush1.bf16.msk.msra.mxu1 %vm4432_vm11, %v5458_v15  ;;  %vm4293_vm14 = vmpackc.low %vm1091_vm7, %vm1089_vm6  ;;  %vm1473_vm6 = vcmp.eq.s32.totalorder %v5775_v27, %v6019_v47  ;;  %vm1470_vm11 = vcmp.eq.s32.totalorder %v5578_v1, %v6035_v49 }
  0x93   : > { %4294 = vmatprep.subr.msk.bf16.mxu0 %vm4293_vm14, %v5458_v15  ;;  %vm4434_vm1 = vmpackc.low %vm1477_vm10, %vm1475_vm9  ;;  %vm1086_vm9 = vcmp.eq.s32.totalorder %v5775_v27, %v6027_v48  ;;  %vm1145_vm14 = vcmp.eq.s32.totalorder %v5798_v28, %v6011_v46 }
  0x94   : > { %4435 = vmatprep.subr.msk.bf16.mxu1 %vm4434_vm1, %v5458_v15  ;;  %vm4295_vm4 = vmpackc.low %vm1090_vm13, %vm1088_vm12  ;;  %vm1472_vm12 = vcmp.eq.s32.totalorder %v5775_v27, %v6035_v49  ;;  %vm1531_vm1 = vcmp.eq.s32.totalorder %v5798_v28, %v6019_v47 }
  0x95   : > { %4296 = vmatpush1.bf16.msk.msra.mxu0 %vm4295_vm4, %v5458_v15  ;;  %vm4436_vm7 = vmpackc.low %vm1476_vm0, %vm1474_vm15  ;;  %vm1147_vm15 = vcmp.eq.s32.totalorder %v5801_v29, %v6011_v46  ;;  %vm1144_vm4 = vcmp.eq.s32.totalorder %v5798_v28, %v6027_v48 }
  0x96   : > { %4437 = vmatpush1.bf16.msk.msra.mxu1 %vm4436_vm7, %v5458_v15  ;;  %vm4297_vm10 = vmpackc.low %vm1087_vm3, %vm1085_vm2  ;;  %vm1533_vm2 = vcmp.eq.s32.totalorder %v5801_v29, %v6019_v47  ;;  %vm1530_vm7 = vcmp.eq.s32.totalorder %v5798_v28, %v6035_v49 }
  0x97   : > { %4298 = vmatprep.subr.msk.bf16.mxu0 %vm4297_vm10, %v5458_v15  ;;  %vm4438_vm13 = vmpackc.low %vm1473_vm6, %vm1471_vm5  ;;  %vm1146_vm5 = vcmp.eq.s32.totalorder %v5801_v29, %v6027_v48  ;;  %vm1141_vm10 = vcmp.eq.s32.totalorder %v5824_v30, %v6011_v46 }
  0x98   : > { %4439 = vmatprep.subr.msk.bf16.mxu1 %vm4438_vm13, %v5458_v15  ;;  %vm4299_vm0 = vmpackc.low %vm1086_vm9, %vm1084_vm8  ;;  %vm1532_vm8 = vcmp.eq.s32.totalorder %v5801_v29, %v6035_v49  ;;  %vm1527_vm13 = vcmp.eq.s32.totalorder %v5824_v30, %v6019_v47 }
  0x99   : > { %4300 = vmatpush1.bf16.msk.msra.mxu0 %vm4299_vm0, %v5458_v15  ;;  %vm4440_vm3 = vmpackc.low %vm1472_vm12, %vm1470_vm11  ;;  %vm1143_vm11 = vcmp.eq.s32.totalorder %v5827_v31, %v6011_v46  ;;  %vm1140_vm0 = vcmp.eq.s32.totalorder %v5824_v30, %v6027_v48 }
  0x9a   : > { %4441 = vmatpush1.bf16.msk.msra.mxu1 %vm4440_vm3, %v5458_v15  ;;  %vm4301_vm6 = vmpackc.low %vm1147_vm15, %vm1145_vm14  ;;  %vm1529_vm14 = vcmp.eq.s32.totalorder %v5827_v31, %v6019_v47  ;;  %vm1526_vm3 = vcmp.eq.s32.totalorder %v5824_v30, %v6035_v49 }
  0x9b   : > { %4302 = vmatprep.subr.msk.bf16.mxu0 %vm4301_vm6, %v5458_v15  ;;  %vm4442_vm9 = vmpackc.low %vm1533_vm2, %vm1531_vm1  ;;  %vm1142_vm1 = vcmp.eq.s32.totalorder %v5827_v31, %v6027_v48  ;;  %vm1137_vm6 = vcmp.eq.s32.totalorder %v5850_v32, %v6011_v46 }
  0x9c   : > { %4443 = vmatprep.subr.msk.bf16.mxu1 %vm4442_vm9, %v5458_v15  ;;  %vm4303_vm12 = vmpackc.low %vm1146_vm5, %vm1144_vm4  ;;  %vm1528_vm4 = vcmp.eq.s32.totalorder %v5827_v31, %v6035_v49  ;;  %vm1523_vm9 = vcmp.eq.s32.totalorder %v5850_v32, %v6019_v47 }
  0x9d   : > { %4304 = vmatpush2.bf16.msk.msra.mxu0 %vm4303_vm12, %v5458_v15  ;;  %vm4444_vm15 = vmpackc.low %vm1532_vm8, %vm1530_vm7  ;;  %vm1139_vm7 = vcmp.eq.s32.totalorder %v5853_v33, %v6011_v46  ;;  %vm1136_vm12 = vcmp.eq.s32.totalorder %v5850_v32, %v6027_v48 }
  0x9e   : > { %4445 = vmatpush2.bf16.msk.msra.mxu1 %vm4444_vm15, %v5458_v15  ;;  %vm4305_vm2 = vmpackc.low %vm1143_vm11, %vm1141_vm10  ;;  %vm1525_vm10 = vcmp.eq.s32.totalorder %v5853_v33, %v6019_v47  ;;  %vm1522_vm15 = vcmp.eq.s32.totalorder %v5850_v32, %v6035_v49 }
  0x9f   : > { %4306 = vmatprep.subr.msk.bf16.mxu0 %vm4305_vm2, %v5458_v15  ;;  %vm4446_vm5 = vmpackc.low %vm1529_vm14, %vm1527_vm13  ;;  %vm1138_vm13 = vcmp.eq.s32.totalorder %v5853_v33, %v6027_v48  ;;  %vm1133_vm2 = vcmp.eq.s32.totalorder %v5876_v34, %v6011_v46 }
  0xa0   : > { %4447 = vmatprep.subr.msk.bf16.mxu1 %vm4446_vm5, %v5458_v15  ;;  %vm4307_vm8 = vmpackc.low %vm1142_vm1, %vm1140_vm0  ;;  %vm1524_vm0 = vcmp.eq.s32.totalorder %v5853_v33, %v6035_v49  ;;  %vm1519_vm5 = vcmp.eq.s32.totalorder %v5876_v34, %v6019_v47 }
  0xa1   : > { %4308 = vmatpush2.bf16.msk.msra.mxu0 %vm4307_vm8, %v5458_v15  ;;  %vm4448_vm11 = vmpackc.low %vm1528_vm4, %vm1526_vm3  ;;  %vm1135_vm3 = vcmp.eq.s32.totalorder %v5879_v35, %v6011_v46  ;;  %vm1132_vm8 = vcmp.eq.s32.totalorder %v5876_v34, %v6027_v48 }
  0xa2   : > { %4449 = vmatpush2.bf16.msk.msra.mxu1 %vm4448_vm11, %v5458_v15  ;;  %vm4309_vm14 = vmpackc.low %vm1139_vm7, %vm1137_vm6  ;;  %vm1521_vm6 = vcmp.eq.s32.totalorder %v5879_v35, %v6019_v47  ;;  %vm1518_vm11 = vcmp.eq.s32.totalorder %v5876_v34, %v6035_v49 }
  0xa3   : > { %4310 = vmatprep.subr.msk.bf16.mxu0 %vm4309_vm14, %v5458_v15  ;;  %vm4450_vm1 = vmpackc.low %vm1525_vm10, %vm1523_vm9  ;;  %vm1134_vm9 = vcmp.eq.s32.totalorder %v5879_v35, %v6027_v48  ;;  %vm1129_vm14 = vcmp.eq.s32.totalorder %v5902_v36, %v6011_v46 }
  0xa4   : > { %4451 = vmatprep.subr.msk.bf16.mxu1 %vm4450_vm1, %v5458_v15  ;;  %vm4311_vm4 = vmpackc.low %vm1138_vm13, %vm1136_vm12  ;;  %vm1520_vm12 = vcmp.eq.s32.totalorder %v5879_v35, %v6035_v49  ;;  %vm1515_vm1 = vcmp.eq.s32.totalorder %v5902_v36, %v6019_v47 }
  0xa5   : > { %4312 = vmatpush2.bf16.msk.msra.mxu0 %vm4311_vm4, %v5458_v15  ;;  %vm4452_vm7 = vmpackc.low %vm1524_vm0, %vm1522_vm15  ;;  %vm1131_vm15 = vcmp.eq.s32.totalorder %v5905_v37, %v6011_v46  ;;  %vm1128_vm4 = vcmp.eq.s32.totalorder %v5902_v36, %v6027_v48 }
  0xa6   : > { %4453 = vmatpush2.bf16.msk.msra.mxu1 %vm4452_vm7, %v5458_v15  ;;  %vm4313_vm10 = vmpackc.low %vm1135_vm3, %vm1133_vm2  ;;  %vm1517_vm2 = vcmp.eq.s32.totalorder %v5905_v37, %v6019_v47  ;;  %vm1514_vm7 = vcmp.eq.s32.totalorder %v5902_v36, %v6035_v49 }
  0xa7   : > { %4314 = vmatprep.subr.msk.bf16.mxu0 %vm4313_vm10, %v5458_v15  ;;  %vm4454_vm13 = vmpackc.low %vm1521_vm6, %vm1519_vm5  ;;  %vm1130_vm5 = vcmp.eq.s32.totalorder %v5905_v37, %v6027_v48  ;;  %vm1125_vm10 = vcmp.eq.s32.totalorder %v5928_v38, %v6011_v46 }
  0xa8   : > { %4455 = vmatprep.subr.msk.bf16.mxu1 %vm4454_vm13, %v5458_v15  ;;  %vm4315_vm0 = vmpackc.low %vm1134_vm9, %vm1132_vm8  ;;  %vm1516_vm8 = vcmp.eq.s32.totalorder %v5905_v37, %v6035_v49  ;;  %vm1511_vm13 = vcmp.eq.s32.totalorder %v5928_v38, %v6019_v47 }
  0xa9   : > { %4316 = vmatpush2.bf16.msk.msra.mxu0 %vm4315_vm0, %v5458_v15  ;;  %vm4456_vm3 = vmpackc.low %vm1520_vm12, %vm1518_vm11  ;;  %vm1127_vm11 = vcmp.eq.s32.totalorder %v5931_v39, %v6011_v46  ;;  %vm1124_vm0 = vcmp.eq.s32.totalorder %v5928_v38, %v6027_v48 }
  0xaa   : > { %4457 = vmatpush2.bf16.msk.msra.mxu1 %vm4456_vm3, %v5458_v15  ;;  %vm4317_vm6 = vmpackc.low %vm1131_vm15, %vm1129_vm14  ;;  %vm1513_vm14 = vcmp.eq.s32.totalorder %v5931_v39, %v6019_v47  ;;  %vm1510_vm3 = vcmp.eq.s32.totalorder %v5928_v38, %v6035_v49 }
  0xab   : > { %4318 = vmatprep.subr.msk.bf16.mxu0 %vm4317_vm6, %v5458_v15  ;;  %vm4458_vm9 = vmpackc.low %vm1517_vm2, %vm1515_vm1  ;;  %vm1126_vm1 = vcmp.eq.s32.totalorder %v5931_v39, %v6027_v48  ;;  %vm1121_vm6 = vcmp.eq.s32.totalorder %v5954_v40, %v6011_v46 }
  0xac   : > { %4459 = vmatprep.subr.msk.bf16.mxu1 %vm4458_vm9, %v5458_v15  ;;  %vm4319_vm12 = vmpackc.low %vm1130_vm5, %vm1128_vm4  ;;  %vm1512_vm4 = vcmp.eq.s32.totalorder %v5931_v39, %v6035_v49  ;;  %vm1507_vm9 = vcmp.eq.s32.totalorder %v5954_v40, %v6019_v47 }
  0xad   : > { %4320 = vmatpush2.bf16.msk.msra.mxu0 %vm4319_vm12, %v5458_v15  ;;  %vm4460_vm15 = vmpackc.low %vm1516_vm8, %vm1514_vm7  ;;  %vm1123_vm7 = vcmp.eq.s32.totalorder %v5957_v41, %v6011_v46  ;;  %vm1120_vm12 = vcmp.eq.s32.totalorder %v5954_v40, %v6027_v48 }
  0xae   : > { %4461 = vmatpush2.bf16.msk.msra.mxu1 %vm4460_vm15, %v5458_v15  ;;  %vm4321_vm2 = vmpackc.low %vm1127_vm11, %vm1125_vm10  ;;  %vm1509_vm10 = vcmp.eq.s32.totalorder %v5957_v41, %v6019_v47  ;;  %vm1506_vm15 = vcmp.eq.s32.totalorder %v5954_v40, %v6035_v49 }
  0xaf   : > { %4322 = vmatprep.subr.msk.bf16.mxu0 %vm4321_vm2, %v5458_v15  ;;  %vm4462_vm5 = vmpackc.low %vm1513_vm14, %vm1511_vm13  ;;  %vm1122_vm13 = vcmp.eq.s32.totalorder %v5957_v41, %v6027_v48  ;;  %vm1117_vm2 = vcmp.eq.s32.totalorder %v5980_v42, %v6011_v46 }
  0xb0   : > { %4463 = vmatprep.subr.msk.bf16.mxu1 %vm4462_vm5, %v5458_v15  ;;  %vm4323_vm8 = vmpackc.low %vm1126_vm1, %vm1124_vm0  ;;  %vm1508_vm0 = vcmp.eq.s32.totalorder %v5957_v41, %v6035_v49  ;;  %vm1503_vm5 = vcmp.eq.s32.totalorder %v5980_v42, %v6019_v47 }
  0xb1   : > { %4324 = vmatpush2.bf16.msk.msra.mxu0 %vm4323_vm8, %v5458_v15  ;;  %vm4464_vm11 = vmpackc.low %vm1512_vm4, %vm1510_vm3  ;;  %vm1119_vm3 = vcmp.eq.s32.totalorder %v5983_v43, %v6011_v46  ;;  %vm1116_vm8 = vcmp.eq.s32.totalorder %v5980_v42, %v6027_v48  ;;  %v6715_v46 = vrot.slane %v4901_v44, %v5582_v2 }
  0xb2   : > { %4465 = vmatpush2.bf16.msk.msra.mxu1 %vm4464_vm11, %v5458_v15  ;;  %vm4325_vm14 = vmpackc.low %vm1123_vm7, %vm1121_vm6  ;;  %vm1505_vm6 = vcmp.eq.s32.totalorder %v5983_v43, %v6019_v47  ;;  %vm1502_vm11 = vcmp.eq.s32.totalorder %v5980_v42, %v6035_v49  ;;  %v6723_v47 = vrot.slane %v4760_v22, %v5585_v3 }
  0xb3   : > { %4326 = vmatprep.subr.msk.bf16.mxu0 %vm4325_vm14, %v5458_v15  ;;  %vm4466_vm1 = vmpackc.low %vm1509_vm10, %vm1507_vm9  ;;  %vm1118_vm9 = vcmp.eq.s32.totalorder %v5983_v43, %v6027_v48  ;;  %vm1885_vm14 = vcmp.eq.s32.totalorder %v5593_v4, %v6359_v60  ;;  %v6731_v48 = vrot.slane %v4901_v44, %v5585_v3 }
  0xb4   : > { %4467 = vmatprep.subr.msk.bf16.mxu1 %vm4466_vm1, %v5458_v15  ;;  %vm4327_vm4 = vmpackc.low %vm1122_vm13, %vm1120_vm12  ;;  %vm1504_vm12 = vcmp.eq.s32.totalorder %v5983_v43, %v6035_v49  ;;  %vm2271_vm1 = vcmp.eq.s32.totalorder %v5593_v4, %v6367_v61  ;;  %v5315_v49 = vld [vmem:[%s5568_s5 + $0x80] ss:$8 sps:$4 sm:$0xff]  }
  0xb5   : > { %4328 = vmatpush2.bf16.msk.msra.mxu0 %vm4327_vm4, %v5458_v15  ;;  %vm4468_vm7 = vmpackc.low %vm1508_vm0, %vm1506_vm15  ;;  %vm1887_vm15 = vcmp.eq.s32.totalorder %v5596_v5, %v6359_v60  ;;  %vm1884_vm4 = vcmp.eq.s32.totalorder %v5593_v4, %v6375_v62 }
  0xb6   : > { %4469 = vmatpush2.bf16.msk.msra.mxu1 %vm4468_vm7, %v5458_v15  ;;  %vm4329_vm10 = vmpackc.low %vm1119_vm3, %vm1117_vm2  ;;  %vm2273_vm2 = vcmp.eq.s32.totalorder %v5596_v5, %v6367_v61  ;;  %vm2270_vm7 = vcmp.eq.s32.totalorder %v5593_v4, %v6383_v63 }
  0xb7   : > { %4330 = vmatprep.subr.msk.bf16.mxu0 %vm4329_vm10, %v5458_v15  ;;  %vm4470_vm13 = vmpackc.low %vm1505_vm6, %vm1503_vm5  ;;  %vm1886_vm5 = vcmp.eq.s32.totalorder %v5596_v5, %v6375_v62  ;;  %vm1881_vm10 = vcmp.eq.s32.totalorder %v5599_v6, %v6359_v60 }
  0xb8   : > { %4471 = vmatprep.subr.msk.bf16.mxu1 %vm4470_vm13, %v5458_v15  ;;  %vm4331_vm0 = vmpackc.low %vm1118_vm9, %vm1116_vm8  ;;  %vm2272_vm8 = vcmp.eq.s32.totalorder %v5596_v5, %v6383_v63  ;;  %vm2267_vm13 = vcmp.eq.s32.totalorder %v5599_v6, %v6367_v61 }
  0xb9   : > { %4332 = vmatpush2.bf16.msk.msra.mxu0 %vm4331_vm0, %v5458_v15  ;;  %vm4472_vm3 = vmpackc.low %vm1504_vm12, %vm1502_vm11  ;;  %vm1883_vm11 = vcmp.eq.s32.totalorder %v5602_v7, %v6359_v60  ;;  %vm1880_vm0 = vcmp.eq.s32.totalorder %v5599_v6, %v6375_v62 }
  0xba   : > { %4473 = vmatpush2.bf16.msk.msra.mxu1 %vm4472_vm3, %v5458_v15  ;;  %vm4551_vm6 = vmpackc.low %vm1887_vm15, %vm1885_vm14  ;;  %vm2269_vm14 = vcmp.eq.s32.totalorder %v5602_v7, %v6367_v61  ;;  %vm2266_vm3 = vcmp.eq.s32.totalorder %v5599_v6, %v6383_v63 }
  0xbb   : > { %4552 = vmatprep.subr.msk.bf16.mxu0 %vm4551_vm6, %v5458_v15  ;;  %vm4692_vm9 = vmpackc.low %vm2273_vm2, %vm2271_vm1  ;;  %vm1882_vm1 = vcmp.eq.s32.totalorder %v5602_v7, %v6375_v62  ;;  %vm1877_vm6 = vcmp.eq.s32.totalorder %v5641_v16, %v6359_v60 }
  0xbc   : > { %1366 = vmatmul.mubr.bf16.vlgmr.msra.gmra.mxu0 %v5303_v0  ;;  %4693 = vmatprep.subr.msk.bf16.mxu1 %vm4692_vm9, %v5458_v15  ;;  %vm4553_vm12 = vmpackc.low %vm1886_vm5, %vm1884_vm4  ;;  %vm2268_vm4 = vcmp.eq.s32.totalorder %v5602_v7, %v6383_v63  ;;  %vm2263_vm9 = vcmp.eq.s32.totalorder %v5641_v16, %v6367_v61 }
  0xbd   : > { %1752 = vmatmul.mubr.bf16.vlgmr.msra.gmra.mxu1 %v5306_v8  ;;  %4554 = vmatpush1.bf16.msk.msra.mxu0 %vm4553_vm12, %v5458_v15  ;;  %vm4694_vm15 = vmpackc.low %vm2272_vm8, %vm2270_vm7  ;;  %vm1879_vm7 = vcmp.eq.s32.totalorder %v5644_v17, %v6359_v60  ;;  %vm1876_vm12 = vcmp.eq.s32.totalorder %v5641_v16, %v6375_v62 }
  0xbe   : > { %4695 = vmatpush1.bf16.msk.msra.mxu1 %vm4694_vm15, %v5458_v15  ;;  %vm4555_vm2 = vmpackc.low %vm1883_vm11, %vm1881_vm10  ;;  %1375 = vmatprep.mubr.bf16.mxu0 %v5309_v9  ;;  %vm2265_vm10 = vcmp.eq.s32.totalorder %v5644_v17, %v6367_v61  ;;  %vm2262_vm15 = vcmp.eq.s32.totalorder %v5641_v16, %v6383_v63 }
  0xbf   : > { %4556 = vmatprep.subr.msk.bf16.mxu0 %vm4555_vm2, %v5458_v15  ;;  %vm4696_vm5 = vmpackc.low %vm2269_vm14, %vm2267_vm13  ;;  %1761 = vmatprep.mubr.bf16.mxu1 %v5311_v10  ;;  %vm1878_vm13 = vcmp.eq.s32.totalorder %v5644_v17, %v6375_v62  ;;  %vm1873_vm2 = vcmp.eq.s32.totalorder %v5670_v18, %v6359_v60 }
  0xc0   : > { %4697 = vmatprep.subr.msk.bf16.mxu1 %vm4696_vm5, %v5458_v15  ;;  %vm4557_vm8 = vmpackc.low %vm1882_vm1, %vm1880_vm0  ;;  %vm2264_vm0 = vcmp.eq.s32.totalorder %v5644_v17, %v6383_v63  ;;  %vm2259_vm5 = vcmp.eq.s32.totalorder %v5670_v18, %v6367_v61 }
  0xc1   : > { %4558 = vmatpush1.bf16.msk.msra.mxu0 %vm4557_vm8, %v5458_v15  ;;  %vm4698_vm11 = vmpackc.low %vm2268_vm4, %vm2266_vm3  ;;  %vm1875_vm3 = vcmp.eq.s32.totalorder %v5673_v19, %v6359_v60  ;;  %vm1872_vm8 = vcmp.eq.s32.totalorder %v5670_v18, %v6375_v62 }
  0xc2   : > { %4699 = vmatpush1.bf16.msk.msra.mxu1 %vm4698_vm11, %v5458_v15  ;;  %vm4559_vm14 = vmpackc.low %vm1879_vm7, %vm1877_vm6  ;;  %vm2261_vm6 = vcmp.eq.s32.totalorder %v5673_v19, %v6367_v61  ;;  %vm2258_vm11 = vcmp.eq.s32.totalorder %v5670_v18, %v6383_v63 }
  0xc3   : > { %4560 = vmatprep.subr.msk.bf16.mxu0 %vm4559_vm14, %v5458_v15  ;;  %vm4700_vm1 = vmpackc.low %vm2265_vm10, %vm2263_vm9  ;;  %vm1874_vm9 = vcmp.eq.s32.totalorder %v5673_v19, %v6375_v62  ;;  %vm1869_vm14 = vcmp.eq.s32.totalorder %v5696_v20, %v6359_v60 }
  0xc4   : > { %1376 = vmatmul.mubr.bf16.gmra.mxu0 %v5313_v11  ;;  %4701 = vmatprep.subr.msk.bf16.mxu1 %vm4700_vm1, %v5458_v15  ;;  %vm4561_vm4 = vmpackc.low %vm1878_vm13, %vm1876_vm12  ;;  %vm2260_vm12 = vcmp.eq.s32.totalorder %v5673_v19, %v6383_v63  ;;  %vm2255_vm1 = vcmp.eq.s32.totalorder %v5696_v20, %v6367_v61 }
  0xc5   : > { %1762 = vmatmul.mubr.bf16.gmra.mxu1 %v5314_v12  ;;  %4562 = vmatpush1.bf16.msk.msra.mxu0 %vm4561_vm4, %v5458_v15  ;;  %vm4702_vm7 = vmpackc.low %vm2264_vm0, %vm2262_vm15  ;;  %vm1871_vm15 = vcmp.eq.s32.totalorder %v5699_v21, %v6359_v60  ;;  %vm1868_vm4 = vcmp.eq.s32.totalorder %v5696_v20, %v6375_v62 }
  0xc6   : > { %4703 = vmatpush1.bf16.msk.msra.mxu1 %vm4702_vm7, %v5458_v15  ;;  %vm4563_vm10 = vmpackc.low %vm1875_vm3, %vm1873_vm2  ;;  %2137 = vmatprep.mubr.bf16.mxu0 %v5317_v13  ;;  %vm2257_vm2 = vcmp.eq.s32.totalorder %v5699_v21, %v6367_v61  ;;  %vm2254_vm7 = vcmp.eq.s32.totalorder %v5696_v20, %v6383_v63 }
  0xc7   : > { %4564 = vmatprep.subr.msk.bf16.mxu0 %vm4563_vm10, %v5458_v15  ;;  %vm4704_vm13 = vmpackc.low %vm2261_vm6, %vm2259_vm5  ;;  %2523 = vmatprep.mubr.bf16.mxu1 %v5320_v14  ;;  %vm1870_vm5 = vcmp.eq.s32.totalorder %v5699_v21, %v6375_v62  ;;  %vm1865_vm10 = vcmp.eq.s32.totalorder %v5723_v23, %v6359_v60 }
  0xc8   : > { %4705 = vmatprep.subr.msk.bf16.mxu1 %vm4704_vm13, %v5458_v15  ;;  %vm4565_vm0 = vmpackc.low %vm1874_vm9, %vm1872_vm8  ;;  %vm2256_vm8 = vcmp.eq.s32.totalorder %v5699_v21, %v6383_v63  ;;  %vm2251_vm13 = vcmp.eq.s32.totalorder %v5723_v23, %v6367_v61 }
  0xc9   : > { %4566 = vmatpush1.bf16.msk.msra.mxu0 %vm4565_vm0, %v5458_v15  ;;  %vm4706_vm3 = vmpackc.low %vm2260_vm12, %vm2258_vm11  ;;  %vm1867_vm11 = vcmp.eq.s32.totalorder %v5726_v24, %v6359_v60  ;;  %vm1864_vm0 = vcmp.eq.s32.totalorder %v5723_v23, %v6375_v62 }
  0xca   : > { %4707 = vmatpush1.bf16.msk.msra.mxu1 %vm4706_vm3, %v5458_v15  ;;  %vm4567_vm6 = vmpackc.low %vm1871_vm15, %vm1869_vm14  ;;  %vm2253_vm14 = vcmp.eq.s32.totalorder %v5726_v24, %v6367_v61  ;;  %vm2250_vm3 = vcmp.eq.s32.totalorder %v5723_v23, %v6383_v63 }
  0xcb   : > { %4568 = vmatprep.subr.msk.bf16.mxu0 %vm4567_vm6, %v5458_v15  ;;  %vm4708_vm9 = vmpackc.low %vm2257_vm2, %vm2255_vm1  ;;  %vm1866_vm1 = vcmp.eq.s32.totalorder %v5726_v24, %v6375_v62  ;;  %vm1861_vm6 = vcmp.eq.s32.totalorder %v5749_v25, %v6359_v60 }
  0xcc   : > { %4709 = vmatprep.subr.msk.bf16.mxu1 %vm4708_vm9, %v5458_v15  ;;  %vm4569_vm12 = vmpackc.low %vm1870_vm5, %vm1868_vm4  ;;  %vm2252_vm4 = vcmp.eq.s32.totalorder %v5726_v24, %v6383_v63  ;;  %vm2247_vm9 = vcmp.eq.s32.totalorder %v5749_v25, %v6367_v61 }
  0xcd   : > { %4570 = vmatpush1.bf16.msk.msra.mxu0 %vm4569_vm12, %v5458_v15  ;;  %vm4710_vm15 = vmpackc.low %vm2256_vm8, %vm2254_vm7  ;;  %vm1863_vm7 = vcmp.eq.s32.totalorder %v5752_v26, %v6359_v60  ;;  %vm1860_vm12 = vcmp.eq.s32.totalorder %v5749_v25, %v6375_v62 }
  0xce   : > { %4711 = vmatpush1.bf16.msk.msra.mxu1 %vm4710_vm15, %v5458_v15  ;;  %vm4571_vm2 = vmpackc.low %vm1867_vm11, %vm1865_vm10  ;;  %vm2249_vm10 = vcmp.eq.s32.totalorder %v5752_v26, %v6367_v61  ;;  %vm2246_vm15 = vcmp.eq.s32.totalorder %v5749_v25, %v6383_v63 }
  0xcf   : > { %4572 = vmatprep.subr.msk.bf16.mxu0 %vm4571_vm2, %v5458_v15  ;;  %vm4712_vm5 = vmpackc.low %vm2253_vm14, %vm2251_vm13  ;;  %vm1862_vm13 = vcmp.eq.s32.totalorder %v5752_v26, %v6375_v62  ;;  %vm1857_vm2 = vcmp.eq.s32.totalorder %v5578_v1, %v6359_v60 }
  0xd0   : > { %4713 = vmatprep.subr.msk.bf16.mxu1 %vm4712_vm5, %v5458_v15  ;;  %vm4573_vm8 = vmpackc.low %vm1866_vm1, %vm1864_vm0  ;;  %vm2248_vm0 = vcmp.eq.s32.totalorder %v5752_v26, %v6383_v63  ;;  %vm2243_vm5 = vcmp.eq.s32.totalorder %v5578_v1, %v6367_v61 }
  0xd1   : > { %4574 = vmatpush1.bf16.msk.msra.mxu0 %vm4573_vm8, %v5458_v15  ;;  %vm4714_vm11 = vmpackc.low %vm2252_vm4, %vm2250_vm3  ;;  %vm1859_vm3 = vcmp.eq.s32.totalorder %v5775_v27, %v6359_v60  ;;  %vm1856_vm8 = vcmp.eq.s32.totalorder %v5578_v1, %v6375_v62 }
  0xd2   : > { %4715 = vmatpush1.bf16.msk.msra.mxu1 %vm4714_vm11, %v5458_v15  ;;  %vm4575_vm14 = vmpackc.low %vm1863_vm7, %vm1861_vm6  ;;  %vm2245_vm6 = vcmp.eq.s32.totalorder %v5775_v27, %v6367_v61  ;;  %vm2242_vm11 = vcmp.eq.s32.totalorder %v5578_v1, %v6383_v63 }
  0xd3   : > { %4576 = vmatprep.subr.msk.bf16.mxu0 %vm4575_vm14, %v5458_v15  ;;  %vm4716_vm1 = vmpackc.low %vm2249_vm10, %vm2247_vm9  ;;  %vm1858_vm9 = vcmp.eq.s32.totalorder %v5775_v27, %v6375_v62  ;;  %vm1917_vm14 = vcmp.eq.s32.totalorder %v5798_v28, %v6359_v60 }
  0xd4   : > { %4717 = vmatprep.subr.msk.bf16.mxu1 %vm4716_vm1, %v5458_v15  ;;  %vm4577_vm4 = vmpackc.low %vm1862_vm13, %vm1860_vm12  ;;  %vm2244_vm12 = vcmp.eq.s32.totalorder %v5775_v27, %v6383_v63  ;;  %vm2303_vm1 = vcmp.eq.s32.totalorder %v5798_v28, %v6367_v61 }
  0xd5   : > { %4578 = vmatpush1.bf16.msk.msra.mxu0 %vm4577_vm4, %v5458_v15  ;;  %vm4718_vm7 = vmpackc.low %vm2248_vm0, %vm2246_vm15  ;;  %vm1919_vm15 = vcmp.eq.s32.totalorder %v5801_v29, %v6359_v60  ;;  %vm1916_vm4 = vcmp.eq.s32.totalorder %v5798_v28, %v6375_v62 }
  0xd6   : > { %4719 = vmatpush1.bf16.msk.msra.mxu1 %vm4718_vm7, %v5458_v15  ;;  %vm4579_vm10 = vmpackc.low %vm1859_vm3, %vm1857_vm2  ;;  %vm2305_vm2 = vcmp.eq.s32.totalorder %v5801_v29, %v6367_v61  ;;  %vm2302_vm7 = vcmp.eq.s32.totalorder %v5798_v28, %v6383_v63 }
  0xd7   : > { %4580 = vmatprep.subr.msk.bf16.mxu0 %vm4579_vm10, %v5458_v15  ;;  %vm4720_vm13 = vmpackc.low %vm2245_vm6, %vm2243_vm5  ;;  %vm1918_vm5 = vcmp.eq.s32.totalorder %v5801_v29, %v6375_v62  ;;  %vm1913_vm10 = vcmp.eq.s32.totalorder %v5824_v30, %v6359_v60 }
  0xd8   : > { %4721 = vmatprep.subr.msk.bf16.mxu1 %vm4720_vm13, %v5458_v15  ;;  %vm4581_vm0 = vmpackc.low %vm1858_vm9, %vm1856_vm8  ;;  %vm2304_vm8 = vcmp.eq.s32.totalorder %v5801_v29, %v6383_v63  ;;  %vm2299_vm13 = vcmp.eq.s32.totalorder %v5824_v30, %v6367_v61 }
  0xd9   : > { %4582 = vmatpush1.bf16.msk.msra.mxu0 %vm4581_vm0, %v5458_v15  ;;  %vm4722_vm3 = vmpackc.low %vm2244_vm12, %vm2242_vm11  ;;  %vm1915_vm11 = vcmp.eq.s32.totalorder %v5827_v31, %v6359_v60  ;;  %vm1912_vm0 = vcmp.eq.s32.totalorder %v5824_v30, %v6375_v62 }
  0xda   : > { %4723 = vmatpush1.bf16.msk.msra.mxu1 %vm4722_vm3, %v5458_v15  ;;  %vm4583_vm6 = vmpackc.low %vm1919_vm15, %vm1917_vm14  ;;  %vm2301_vm14 = vcmp.eq.s32.totalorder %v5827_v31, %v6367_v61  ;;  %vm2298_vm3 = vcmp.eq.s32.totalorder %v5824_v30, %v6383_v63 }
  0xdb   : > { %4584 = vmatprep.subr.msk.bf16.mxu0 %vm4583_vm6, %v5458_v15  ;;  %vm4724_vm9 = vmpackc.low %vm2305_vm2, %vm2303_vm1  ;;  %vm1914_vm1 = vcmp.eq.s32.totalorder %v5827_v31, %v6375_v62  ;;  %vm1909_vm6 = vcmp.eq.s32.totalorder %v5850_v32, %v6359_v60 }
  0xdc   : > { %4725 = vmatprep.subr.msk.bf16.mxu1 %vm4724_vm9, %v5458_v15  ;;  %vm4585_vm12 = vmpackc.low %vm1918_vm5, %vm1916_vm4  ;;  %vm2300_vm4 = vcmp.eq.s32.totalorder %v5827_v31, %v6383_v63  ;;  %vm2295_vm9 = vcmp.eq.s32.totalorder %v5850_v32, %v6367_v61 }
  0xdd   : > { %4586 = vmatpush2.bf16.msk.msra.mxu0 %vm4585_vm12, %v5458_v15  ;;  %vm4726_vm15 = vmpackc.low %vm2304_vm8, %vm2302_vm7  ;;  %vm1911_vm7 = vcmp.eq.s32.totalorder %v5853_v33, %v6359_v60  ;;  %vm1908_vm12 = vcmp.eq.s32.totalorder %v5850_v32, %v6375_v62 }
  0xde   : > { %4727 = vmatpush2.bf16.msk.msra.mxu1 %vm4726_vm15, %v5458_v15  ;;  %vm4587_vm2 = vmpackc.low %vm1915_vm11, %vm1913_vm10  ;;  %vm2297_vm10 = vcmp.eq.s32.totalorder %v5853_v33, %v6367_v61  ;;  %vm2294_vm15 = vcmp.eq.s32.totalorder %v5850_v32, %v6383_v63 }
  0xdf   : > { %4588 = vmatprep.subr.msk.bf16.mxu0 %vm4587_vm2, %v5458_v15  ;;  %vm4728_vm5 = vmpackc.low %vm2301_vm14, %vm2299_vm13  ;;  %vm1910_vm13 = vcmp.eq.s32.totalorder %v5853_v33, %v6375_v62  ;;  %vm1905_vm2 = vcmp.eq.s32.totalorder %v5876_v34, %v6359_v60 }
  0xe0   : > { %4729 = vmatprep.subr.msk.bf16.mxu1 %vm4728_vm5, %v5458_v15  ;;  %vm4589_vm8 = vmpackc.low %vm1914_vm1, %vm1912_vm0  ;;  %vm2296_vm0 = vcmp.eq.s32.totalorder %v5853_v33, %v6383_v63  ;;  %vm2291_vm5 = vcmp.eq.s32.totalorder %v5876_v34, %v6367_v61 }
  0xe1   : > { %4590 = vmatpush2.bf16.msk.msra.mxu0 %vm4589_vm8, %v5458_v15  ;;  %vm4730_vm11 = vmpackc.low %vm2300_vm4, %vm2298_vm3  ;;  %vm1907_vm3 = vcmp.eq.s32.totalorder %v5879_v35, %v6359_v60  ;;  %vm1904_vm8 = vcmp.eq.s32.totalorder %v5876_v34, %v6375_v62 }
  0xe2   : > { %4731 = vmatpush2.bf16.msk.msra.mxu1 %vm4730_vm11, %v5458_v15  ;;  %vm4591_vm14 = vmpackc.low %vm1911_vm7, %vm1909_vm6  ;;  %vm2293_vm6 = vcmp.eq.s32.totalorder %v5879_v35, %v6367_v61  ;;  %vm2290_vm11 = vcmp.eq.s32.totalorder %v5876_v34, %v6383_v63 }
  0xe3   : > { %4592 = vmatprep.subr.msk.bf16.mxu0 %vm4591_vm14, %v5458_v15  ;;  %vm4732_vm1 = vmpackc.low %vm2297_vm10, %vm2295_vm9  ;;  %vm1906_vm9 = vcmp.eq.s32.totalorder %v5879_v35, %v6375_v62  ;;  %vm1901_vm14 = vcmp.eq.s32.totalorder %v5902_v36, %v6359_v60 }
  0xe4   : > { %4733 = vmatprep.subr.msk.bf16.mxu1 %vm4732_vm1, %v5458_v15  ;;  %vm4593_vm4 = vmpackc.low %vm1910_vm13, %vm1908_vm12  ;;  %vm2292_vm12 = vcmp.eq.s32.totalorder %v5879_v35, %v6383_v63  ;;  %vm2287_vm1 = vcmp.eq.s32.totalorder %v5902_v36, %v6367_v61 }
  0xe5   : > { %4594 = vmatpush2.bf16.msk.msra.mxu0 %vm4593_vm4, %v5458_v15  ;;  %vm4734_vm7 = vmpackc.low %vm2296_vm0, %vm2294_vm15  ;;  %vm1903_vm15 = vcmp.eq.s32.totalorder %v5905_v37, %v6359_v60  ;;  %vm1900_vm4 = vcmp.eq.s32.totalorder %v5902_v36, %v6375_v62 }
  0xe6   : > { %4735 = vmatpush2.bf16.msk.msra.mxu1 %vm4734_vm7, %v5458_v15  ;;  %vm4595_vm10 = vmpackc.low %vm1907_vm3, %vm1905_vm2  ;;  %vm2289_vm2 = vcmp.eq.s32.totalorder %v5905_v37, %v6367_v61  ;;  %vm2286_vm7 = vcmp.eq.s32.totalorder %v5902_v36, %v6383_v63 }
  0xe7   : > { %4596 = vmatprep.subr.msk.bf16.mxu0 %vm4595_vm10, %v5458_v15  ;;  %vm4736_vm13 = vmpackc.low %vm2293_vm6, %vm2291_vm5  ;;  %vm1902_vm5 = vcmp.eq.s32.totalorder %v5905_v37, %v6375_v62  ;;  %vm1897_vm10 = vcmp.eq.s32.totalorder %v5928_v38, %v6359_v60 }
  0xe8   : > { %4737 = vmatprep.subr.msk.bf16.mxu1 %vm4736_vm13, %v5458_v15  ;;  %vm4597_vm0 = vmpackc.low %vm1906_vm9, %vm1904_vm8  ;;  %vm2288_vm8 = vcmp.eq.s32.totalorder %v5905_v37, %v6383_v63  ;;  %vm2283_vm13 = vcmp.eq.s32.totalorder %v5928_v38, %v6367_v61 }
  0xe9   : > { %4598 = vmatpush2.bf16.msk.msra.mxu0 %vm4597_vm0, %v5458_v15  ;;  %vm4738_vm3 = vmpackc.low %vm2292_vm12, %vm2290_vm11  ;;  %vm1899_vm11 = vcmp.eq.s32.totalorder %v5931_v39, %v6359_v60  ;;  %vm1896_vm0 = vcmp.eq.s32.totalorder %v5928_v38, %v6375_v62 }
  0xea   : > { %4739 = vmatpush2.bf16.msk.msra.mxu1 %vm4738_vm3, %v5458_v15  ;;  %vm4599_vm6 = vmpackc.low %vm1903_vm15, %vm1901_vm14  ;;  %vm2285_vm14 = vcmp.eq.s32.totalorder %v5931_v39, %v6367_v61  ;;  %vm2282_vm3 = vcmp.eq.s32.totalorder %v5928_v38, %v6383_v63 }
  0xeb   : > { %4600 = vmatprep.subr.msk.bf16.mxu0 %vm4599_vm6, %v5458_v15  ;;  %vm4740_vm9 = vmpackc.low %vm2289_vm2, %vm2287_vm1  ;;  %vm1898_vm1 = vcmp.eq.s32.totalorder %v5931_v39, %v6375_v62  ;;  %vm1893_vm6 = vcmp.eq.s32.totalorder %v5954_v40, %v6359_v60 }
  0xec   : > { %4741 = vmatprep.subr.msk.bf16.mxu1 %vm4740_vm9, %v5458_v15  ;;  %vm4601_vm12 = vmpackc.low %vm1902_vm5, %vm1900_vm4  ;;  %vm2284_vm4 = vcmp.eq.s32.totalorder %v5931_v39, %v6383_v63  ;;  %vm2279_vm9 = vcmp.eq.s32.totalorder %v5954_v40, %v6367_v61 }
  0xed   : > { %4602 = vmatpush2.bf16.msk.msra.mxu0 %vm4601_vm12, %v5458_v15  ;;  %vm4742_vm15 = vmpackc.low %vm2288_vm8, %vm2286_vm7  ;;  %vm1895_vm7 = vcmp.eq.s32.totalorder %v5957_v41, %v6359_v60  ;;  %vm1892_vm12 = vcmp.eq.s32.totalorder %v5954_v40, %v6375_v62 }
  0xee   : > { %4743 = vmatpush2.bf16.msk.msra.mxu1 %vm4742_vm15, %v5458_v15  ;;  %vm4603_vm2 = vmpackc.low %vm1899_vm11, %vm1897_vm10  ;;  %vm2281_vm10 = vcmp.eq.s32.totalorder %v5957_v41, %v6367_v61  ;;  %vm2278_vm15 = vcmp.eq.s32.totalorder %v5954_v40, %v6383_v63 }
  0xef   : > { %4604 = vmatprep.subr.msk.bf16.mxu0 %vm4603_vm2, %v5458_v15  ;;  %vm4744_vm5 = vmpackc.low %vm2285_vm14, %vm2283_vm13  ;;  %vm1894_vm13 = vcmp.eq.s32.totalorder %v5957_v41, %v6375_v62  ;;  %vm1889_vm2 = vcmp.eq.s32.totalorder %v5980_v42, %v6359_v60 }
  0xf0   : > { %4745 = vmatprep.subr.msk.bf16.mxu1 %vm4744_vm5, %v5458_v15  ;;  %vm4605_vm8 = vmpackc.low %vm1898_vm1, %vm1896_vm0  ;;  %vm2280_vm0 = vcmp.eq.s32.totalorder %v5957_v41, %v6383_v63  ;;  %vm2275_vm5 = vcmp.eq.s32.totalorder %v5980_v42, %v6367_v61 }
  0xf1   : > { %4606 = vmatpush2.bf16.msk.msra.mxu0 %vm4605_vm8, %v5458_v15  ;;  %vm4746_vm11 = vmpackc.low %vm2284_vm4, %vm2282_vm3  ;;  %vm1891_vm3 = vcmp.eq.s32.totalorder %v5983_v43, %v6359_v60  ;;  %vm1888_vm8 = vcmp.eq.s32.totalorder %v5980_v42, %v6375_v62  ;;  %v5327_v60 = vld [vmem:[%s5568_s5 + $0xc0] ss:$8 sps:$4 sm:$0xff]  }
  0xf2   : > { %4747 = vmatpush2.bf16.msk.msra.mxu1 %vm4746_vm11, %v5458_v15  ;;  %vm4607_vm14 = vmpackc.low %vm1895_vm7, %vm1893_vm6  ;;  %vm2277_vm6 = vcmp.eq.s32.totalorder %v5983_v43, %v6367_v61  ;;  %vm2274_vm11 = vcmp.eq.s32.totalorder %v5980_v42, %v6383_v63  ;;  %v5330_v61 = vld [vmem:[%s5568_s5 + $0xe0] ss:$8 sps:$4 sm:$0xff]  }
  0xf3   : > { %4608 = vmatprep.subr.msk.bf16.mxu0 %vm4607_vm14, %v5458_v15  ;;  %vm4748_vm1 = vmpackc.low %vm2281_vm10, %vm2279_vm9  ;;  %vm1890_vm9 = vcmp.eq.s32.totalorder %v5983_v43, %v6375_v62  ;;  %vm2657_vm14 = vcmp.eq.s32.totalorder %v5593_v4, %v6707_v45 }
  0xf4   : > { %4749 = vmatprep.subr.msk.bf16.mxu1 %vm4748_vm1, %v5458_v15  ;;  %vm4609_vm4 = vmpackc.low %vm1894_vm13, %vm1892_vm12  ;;  %vm2276_vm12 = vcmp.eq.s32.totalorder %v5983_v43, %v6383_v63  ;;  %vm3043_vm1 = vcmp.eq.s32.totalorder %v5593_v4, %v6715_v46 }
  0xf5   : > { %4610 = vmatpush2.bf16.msk.msra.mxu0 %vm4609_vm4, %v5458_v15  ;;  %vm4750_vm7 = vmpackc.low %vm2280_vm0, %vm2278_vm15  ;;  %vm2659_vm15 = vcmp.eq.s32.totalorder %v5596_v5, %v6707_v45  ;;  %vm2656_vm4 = vcmp.eq.s32.totalorder %v5593_v4, %v6723_v47 }
  0xf6   : > { %4751 = vmatpush2.bf16.msk.msra.mxu1 %vm4750_vm7, %v5458_v15  ;;  %vm4611_vm10 = vmpackc.low %vm1891_vm3, %vm1889_vm2  ;;  %vm3045_vm2 = vcmp.eq.s32.totalorder %v5596_v5, %v6715_v46  ;;  %vm3042_vm7 = vcmp.eq.s32.totalorder %v5593_v4, %v6731_v48 }
  0xf7   : > { %4612 = vmatprep.subr.msk.bf16.mxu0 %vm4611_vm10, %v5458_v15  ;;  %vm4752_vm13 = vmpackc.low %vm2277_vm6, %vm2275_vm5  ;;  %vm2658_vm5 = vcmp.eq.s32.totalorder %v5596_v5, %v6723_v47  ;;  %vm2653_vm10 = vcmp.eq.s32.totalorder %v5599_v6, %v6707_v45 }
  0xf8   : > { %4753 = vmatprep.subr.msk.bf16.mxu1 %vm4752_vm13, %v5458_v15  ;;  %vm4613_vm0 = vmpackc.low %vm1890_vm9, %vm1888_vm8  ;;  %vm3044_vm8 = vcmp.eq.s32.totalorder %v5596_v5, %v6731_v48  ;;  %vm3039_vm13 = vcmp.eq.s32.totalorder %v5599_v6, %v6715_v46 }
  0xf9   : > { %4614 = vmatpush2.bf16.msk.msra.mxu0 %vm4613_vm0, %v5458_v15  ;;  %vm4754_vm3 = vmpackc.low %vm2276_vm12, %vm2274_vm11  ;;  %vm2655_vm11 = vcmp.eq.s32.totalorder %v5602_v7, %v6707_v45  ;;  %vm2652_vm0 = vcmp.eq.s32.totalorder %v5599_v6, %v6723_v47 }
  0xfa   : > { %4755 = vmatpush2.bf16.msk.msra.mxu1 %vm4754_vm3, %v5458_v15  ;;  %vm4833_vm6 = vmpackc.low %vm2659_vm15, %vm2657_vm14  ;;  %vm3041_vm14 = vcmp.eq.s32.totalorder %v5602_v7, %v6715_v46  ;;  %vm3038_vm3 = vcmp.eq.s32.totalorder %v5599_v6, %v6731_v48 }
  0xfb   : > { %4834 = vmatprep.subr.msk.bf16.mxu0 %vm4833_vm6, %v5458_v15  ;;  %vm4974_vm9 = vmpackc.low %vm3045_vm2, %vm3043_vm1  ;;  %vm2654_vm1 = vcmp.eq.s32.totalorder %v5602_v7, %v6723_v47  ;;  %vm2649_vm6 = vcmp.eq.s32.totalorder %v5641_v16, %v6707_v45 }
  0xfc   : > { %2138 = vmatmul.mubr.bf16.vlgmr.msra.gmra.mxu0 %v5315_v49  ;;  %4975 = vmatprep.subr.msk.bf16.mxu1 %vm4974_vm9, %v5458_v15  ;;  %vm4835_vm12 = vmpackc.low %vm2658_vm5, %vm2656_vm4  ;;  %vm3040_vm4 = vcmp.eq.s32.totalorder %v5602_v7, %v6731_v48  ;;  %vm3035_vm9 = vcmp.eq.s32.totalorder %v5641_v16, %v6715_v46  ;;  %v4192_v49 = vld [vmem:[%s7362_s18 + $0x4] ss:$8 sm:$0x3] }
  0xfd   : > { %2524 = vmatmul.mubr.bf16.vlgmr.msra.gmra.mxu1 %v5318_v50  ;;  %4836 = vmatpush1.bf16.msk.msra.mxu0 %vm4835_vm12, %v5458_v15  ;;  %vm4976_vm15 = vmpackc.low %vm3044_vm8, %vm3042_vm7  ;;  %vm2651_vm7 = vcmp.eq.s32.totalorder %v5644_v17, %v6707_v45  ;;  %vm2648_vm12 = vcmp.eq.s32.totalorder %v5641_v16, %v6723_v47  ;;  %v1006_v57 = vrot.slane %v4192_v49, %v5585_v3 }
  0xfe   : > { %4977 = vmatpush1.bf16.msk.msra.mxu1 %vm4976_vm15, %v5458_v15  ;;  %vm4837_vm2 = vmpackc.low %vm2655_vm11, %vm2653_vm10  ;;  %2147 = vmatprep.mubr.bf16.mxu0 %v5321_v51  ;;  %vm3037_vm10 = vcmp.eq.s32.totalorder %v5644_v17, %v6715_v46  ;;  %vm3034_vm15 = vcmp.eq.s32.totalorder %v5641_v16, %v6731_v48  ;;  %v4052_v51 = vld [vmem:[%s7362_s18 + $0x1] ss:$8 sm:$0x3] }
  0xff   : > { %4838 = vmatprep.subr.msk.bf16.mxu0 %vm4837_vm2, %v5458_v15  ;;  %vm4978_vm5 = vmpackc.low %vm3041_vm14, %vm3039_vm13  ;;  %2533 = vmatprep.mubr.bf16.mxu1 %v5323_v52  ;;  %vm2650_vm13 = vcmp.eq.s32.totalorder %v5644_v17, %v6723_v47  ;;  %vm2645_vm2 = vcmp.eq.s32.totalorder %v5670_v18, %v6707_v45  ;;  %v4193_v52 = vld [vmem:[%s7362_s18 + $0x5] ss:$8 sm:$0x3] }
 0x100   : > { %4979 = vmatprep.subr.msk.bf16.mxu1 %vm4978_vm5, %v5458_v15  ;;  %vm4839_vm8 = vmpackc.low %vm2654_vm1, %vm2652_vm0  ;;  %vm3036_vm0 = vcmp.eq.s32.totalorder %v5644_v17, %v6731_v48  ;;  %vm3031_vm5 = vcmp.eq.s32.totalorder %v5670_v18, %v6715_v46 }
 0x101   : > { %4840 = vmatpush1.bf16.msk.msra.mxu0 %vm4839_vm8, %v5458_v15  ;;  %vm4980_vm11 = vmpackc.low %vm3040_vm4, %vm3038_vm3  ;;  %vm2647_vm3 = vcmp.eq.s32.totalorder %v5673_v19, %v6707_v45  ;;  %vm2644_vm8 = vcmp.eq.s32.totalorder %v5670_v18, %v6723_v47 }
 0x102   : > { %4981 = vmatpush1.bf16.msk.msra.mxu1 %vm4980_vm11, %v5458_v15  ;;  %vm4841_vm14 = vmpackc.low %vm2651_vm7, %vm2649_vm6  ;;  %vm3033_vm6 = vcmp.eq.s32.totalorder %v5673_v19, %v6715_v46  ;;  %vm3030_vm11 = vcmp.eq.s32.totalorder %v5670_v18, %v6731_v48 }
 0x103   : > { %4842 = vmatprep.subr.msk.bf16.mxu0 %vm4841_vm14, %v5458_v15  ;;  %vm4982_vm1 = vmpackc.low %vm3037_vm10, %vm3035_vm9  ;;  %vm2646_vm9 = vcmp.eq.s32.totalorder %v5673_v19, %v6723_v47  ;;  %vm2641_vm14 = vcmp.eq.s32.totalorder %v5696_v20, %v6707_v45 }
 0x104   : > { %2148 = vmatmul.mubr.bf16.gmra.mxu0 %v5325_v53  ;;  %4983 = vmatprep.subr.msk.bf16.mxu1 %vm4982_vm1, %v5458_v15  ;;  %vm4843_vm4 = vmpackc.low %vm2650_vm13, %vm2648_vm12  ;;  %vm3032_vm12 = vcmp.eq.s32.totalorder %v5673_v19, %v6731_v48  ;;  %vm3027_vm1 = vcmp.eq.s32.totalorder %v5696_v20, %v6715_v46  ;;  %v7375_v53 = vld [vmem:[%s7362_s18 + $0x2] ss:$8 sm:$0x3] }
 0x105   : > { %2534 = vmatmul.mubr.bf16.gmra.mxu1 %v5326_v54  ;;  %4844 = vmatpush1.bf16.msk.msra.mxu0 %vm4843_vm4, %v5458_v15  ;;  %vm4984_vm7 = vmpackc.low %vm3036_vm0, %vm3034_vm15  ;;  %vm2643_vm15 = vcmp.eq.s32.totalorder %v5699_v21, %v6707_v45  ;;  %vm2640_vm4 = vcmp.eq.s32.totalorder %v5696_v20, %v6723_v47  ;;  %v7378_v54 = vld [vmem:[%s7362_s18 + $0x6] ss:$8 sm:$0x3] }
 0x106   : > { %4985 = vmatpush1.bf16.msk.msra.mxu1 %vm4984_vm7, %v5458_v15  ;;  %vm4845_vm10 = vmpackc.low %vm2647_vm3, %vm2645_vm2  ;;  %2909 = vmatprep.mubr.bf16.mxu0 %v5329_v55  ;;  %vm3029_vm2 = vcmp.eq.s32.totalorder %v5699_v21, %v6715_v46  ;;  %vm3026_vm7 = vcmp.eq.s32.totalorder %v5696_v20, %v6731_v48 }
 0x107   : > { %4846 = vmatprep.subr.msk.bf16.mxu0 %vm4845_vm10, %v5458_v15  ;;  %vm4986_vm13 = vmpackc.low %vm3033_vm6, %vm3031_vm5  ;;  %3295 = vmatprep.mubr.bf16.mxu1 %v5332_v56  ;;  %vm2642_vm5 = vcmp.eq.s32.totalorder %v5699_v21, %v6723_v47  ;;  %vm2637_vm10 = vcmp.eq.s32.totalorder %v5723_v23, %v6707_v45 }
 0x108   : > { %4987 = vmatprep.subr.msk.bf16.mxu1 %vm4986_vm13, %v5458_v15  ;;  %vm4847_vm0 = vmpackc.low %vm2646_vm9, %vm2644_vm8  ;;  %vm3028_vm8 = vcmp.eq.s32.totalorder %v5699_v21, %v6731_v48  ;;  %vm3023_vm13 = vcmp.eq.s32.totalorder %v5723_v23, %v6715_v46 }
 0x109   : > { %4848 = vmatpush1.bf16.msk.msra.mxu0 %vm4847_vm0, %v5458_v15  ;;  %vm4988_vm3 = vmpackc.low %vm3032_vm12, %vm3030_vm11  ;;  %vm2639_vm11 = vcmp.eq.s32.totalorder %v5726_v24, %v6707_v45  ;;  %vm2636_vm0 = vcmp.eq.s32.totalorder %v5723_v23, %v6723_v47 }
 0x10a   : > { %4989 = vmatpush1.bf16.msk.msra.mxu1 %vm4988_vm3, %v5458_v15  ;;  %vm4849_vm6 = vmpackc.low %vm2643_vm15, %vm2641_vm14  ;;  %vm3025_vm14 = vcmp.eq.s32.totalorder %v5726_v24, %v6715_v46  ;;  %vm3022_vm3 = vcmp.eq.s32.totalorder %v5723_v23, %v6731_v48 }
 0x10b   : > { %4850 = vmatprep.subr.msk.bf16.mxu0 %vm4849_vm6, %v5458_v15  ;;  %vm4990_vm9 = vmpackc.low %vm3029_vm2, %vm3027_vm1  ;;  %vm2638_vm1 = vcmp.eq.s32.totalorder %v5726_v24, %v6723_v47  ;;  %vm2633_vm6 = vcmp.eq.s32.totalorder %v5749_v25, %v6707_v45 }
 0x10c   : > { %4991 = vmatprep.subr.msk.bf16.mxu1 %vm4990_vm9, %v5458_v15  ;;  %vm4851_vm12 = vmpackc.low %vm2642_vm5, %vm2640_vm4  ;;  %vm3024_vm4 = vcmp.eq.s32.totalorder %v5726_v24, %v6731_v48  ;;  %vm3019_vm9 = vcmp.eq.s32.totalorder %v5749_v25, %v6715_v46 }
 0x10d   : > { %4852 = vmatpush1.bf16.msk.msra.mxu0 %vm4851_vm12, %v5458_v15  ;;  %vm4992_vm15 = vmpackc.low %vm3028_vm8, %vm3026_vm7  ;;  %vm2635_vm7 = vcmp.eq.s32.totalorder %v5752_v26, %v6707_v45  ;;  %vm2632_vm12 = vcmp.eq.s32.totalorder %v5749_v25, %v6723_v47 }
 0x10e   : > { %4993 = vmatpush1.bf16.msk.msra.mxu1 %vm4992_vm15, %v5458_v15  ;;  %vm4853_vm2 = vmpackc.low %vm2639_vm11, %vm2637_vm10  ;;  %vm3021_vm10 = vcmp.eq.s32.totalorder %v5752_v26, %v6715_v46  ;;  %vm3018_vm15 = vcmp.eq.s32.totalorder %v5749_v25, %v6731_v48 }
 0x10f   : > { %4854 = vmatprep.subr.msk.bf16.mxu0 %vm4853_vm2, %v5458_v15  ;;  %vm4994_vm5 = vmpackc.low %vm3025_vm14, %vm3023_vm13  ;;  %vm2634_vm13 = vcmp.eq.s32.totalorder %v5752_v26, %v6723_v47  ;;  %vm2629_vm2 = vcmp.eq.s32.totalorder %v5578_v1, %v6707_v45 }
 0x110   : > { %4995 = vmatprep.subr.msk.bf16.mxu1 %vm4994_vm5, %v5458_v15  ;;  %vm4855_vm8 = vmpackc.low %vm2638_vm1, %vm2636_vm0  ;;  %vm3020_vm0 = vcmp.eq.s32.totalorder %v5752_v26, %v6731_v48  ;;  %vm3015_vm5 = vcmp.eq.s32.totalorder %v5578_v1, %v6715_v46 }
 0x111   : > { %4856 = vmatpush1.bf16.msk.msra.mxu0 %vm4855_vm8, %v5458_v15  ;;  %vm4996_vm11 = vmpackc.low %vm3024_vm4, %vm3022_vm3  ;;  %vm2631_vm3 = vcmp.eq.s32.totalorder %v5775_v27, %v6707_v45  ;;  %vm2628_vm8 = vcmp.eq.s32.totalorder %v5578_v1, %v6723_v47 }
 0x112   : > { %4997 = vmatpush1.bf16.msk.msra.mxu1 %vm4996_vm11, %v5458_v15  ;;  %vm4857_vm14 = vmpackc.low %vm2635_vm7, %vm2633_vm6  ;;  %vm3017_vm6 = vcmp.eq.s32.totalorder %v5775_v27, %v6715_v46  ;;  %vm3014_vm11 = vcmp.eq.s32.totalorder %v5578_v1, %v6731_v48 }
 0x113   : > { %4858 = vmatprep.subr.msk.bf16.mxu0 %vm4857_vm14, %v5458_v15  ;;  %vm4998_vm1 = vmpackc.low %vm3021_vm10, %vm3019_vm9  ;;  %vm2630_vm9 = vcmp.eq.s32.totalorder %v5775_v27, %v6723_v47  ;;  %vm2689_vm14 = vcmp.eq.s32.totalorder %v5798_v28, %v6707_v45 }
 0x114   : > { %4999 = vmatprep.subr.msk.bf16.mxu1 %vm4998_vm1, %v5458_v15  ;;  %vm4859_vm4 = vmpackc.low %vm2634_vm13, %vm2632_vm12  ;;  %vm3016_vm12 = vcmp.eq.s32.totalorder %v5775_v27, %v6731_v48  ;;  %vm3075_vm1 = vcmp.eq.s32.totalorder %v5798_v28, %v6715_v46 }
 0x115   : > { %4860 = vmatpush1.bf16.msk.msra.mxu0 %vm4859_vm4, %v5458_v15  ;;  %vm5000_vm7 = vmpackc.low %vm3020_vm0, %vm3018_vm15  ;;  %vm2691_vm15 = vcmp.eq.s32.totalorder %v5801_v29, %v6707_v45  ;;  %vm2688_vm4 = vcmp.eq.s32.totalorder %v5798_v28, %v6723_v47 }
 0x116   : > { %5001 = vmatpush1.bf16.msk.msra.mxu1 %vm5000_vm7, %v5458_v15  ;;  %vm4861_vm10 = vmpackc.low %vm2631_vm3, %vm2629_vm2  ;;  %vm3077_vm2 = vcmp.eq.s32.totalorder %v5801_v29, %v6715_v46  ;;  %vm3074_vm7 = vcmp.eq.s32.totalorder %v5798_v28, %v6731_v48 }
 0x117   : > { %4862 = vmatprep.subr.msk.bf16.mxu0 %vm4861_vm10, %v5458_v15  ;;  %vm5002_vm13 = vmpackc.low %vm3017_vm6, %vm3015_vm5  ;;  %vm2690_vm5 = vcmp.eq.s32.totalorder %v5801_v29, %v6723_v47  ;;  %vm2685_vm10 = vcmp.eq.s32.totalorder %v5824_v30, %v6707_v45 }
 0x118   : > { %5003 = vmatprep.subr.msk.bf16.mxu1 %vm5002_vm13, %v5458_v15  ;;  %vm4863_vm0 = vmpackc.low %vm2630_vm9, %vm2628_vm8  ;;  %vm3076_vm8 = vcmp.eq.s32.totalorder %v5801_v29, %v6731_v48  ;;  %vm3071_vm13 = vcmp.eq.s32.totalorder %v5824_v30, %v6715_v46 }
 0x119   : > { %4864 = vmatpush1.bf16.msk.msra.mxu0 %vm4863_vm0, %v5458_v15  ;;  %vm5004_vm3 = vmpackc.low %vm3016_vm12, %vm3014_vm11  ;;  %vm2687_vm11 = vcmp.eq.s32.totalorder %v5827_v31, %v6707_v45  ;;  %vm2684_vm0 = vcmp.eq.s32.totalorder %v5824_v30, %v6723_v47 }
 0x11a   : > { %5005 = vmatpush1.bf16.msk.msra.mxu1 %vm5004_vm3, %v5458_v15  ;;  %vm4865_vm6 = vmpackc.low %vm2691_vm15, %vm2689_vm14  ;;  %vm3073_vm14 = vcmp.eq.s32.totalorder %v5827_v31, %v6715_v46  ;;  %vm3070_vm3 = vcmp.eq.s32.totalorder %v5824_v30, %v6731_v48 }
 0x11b   : > { %4866 = vmatprep.subr.msk.bf16.mxu0 %vm4865_vm6, %v5458_v15  ;;  %vm5006_vm9 = vmpackc.low %vm3077_vm2, %vm3075_vm1  ;;  %vm2686_vm1 = vcmp.eq.s32.totalorder %v5827_v31, %v6723_v47  ;;  %vm2681_vm6 = vcmp.eq.s32.totalorder %v5850_v32, %v6707_v45 }
 0x11c   : > { %5007 = vmatprep.subr.msk.bf16.mxu1 %vm5006_vm9, %v5458_v15  ;;  %vm4867_vm12 = vmpackc.low %vm2690_vm5, %vm2688_vm4  ;;  %vm3072_vm4 = vcmp.eq.s32.totalorder %v5827_v31, %v6731_v48  ;;  %vm3067_vm9 = vcmp.eq.s32.totalorder %v5850_v32, %v6715_v46 }
 0x11d   : > { %4868 = vmatpush2.bf16.msk.msra.mxu0 %vm4867_vm12, %v5458_v15  ;;  %vm5008_vm15 = vmpackc.low %vm3076_vm8, %vm3074_vm7  ;;  %vm2683_vm7 = vcmp.eq.s32.totalorder %v5853_v33, %v6707_v45  ;;  %vm2680_vm12 = vcmp.eq.s32.totalorder %v5850_v32, %v6723_v47 }
 0x11e   : > { %5009 = vmatpush2.bf16.msk.msra.mxu1 %vm5008_vm15, %v5458_v15  ;;  %vm4869_vm2 = vmpackc.low %vm2687_vm11, %vm2685_vm10  ;;  %vm3069_vm10 = vcmp.eq.s32.totalorder %v5853_v33, %v6715_v46  ;;  %vm3066_vm15 = vcmp.eq.s32.totalorder %v5850_v32, %v6731_v48 }
 0x11f   : > { %4870 = vmatprep.subr.msk.bf16.mxu0 %vm4869_vm2, %v5458_v15  ;;  %vm5010_vm5 = vmpackc.low %vm3073_vm14, %vm3071_vm13  ;;  %vm2682_vm13 = vcmp.eq.s32.totalorder %v5853_v33, %v6723_v47  ;;  %vm2677_vm2 = vcmp.eq.s32.totalorder %v5876_v34, %v6707_v45 }
 0x120   : > { %5011 = vmatprep.subr.msk.bf16.mxu1 %vm5010_vm5, %v5458_v15  ;;  %vm4871_vm8 = vmpackc.low %vm2686_vm1, %vm2684_vm0  ;;  %vm3068_vm0 = vcmp.eq.s32.totalorder %v5853_v33, %v6731_v48  ;;  %vm3063_vm5 = vcmp.eq.s32.totalorder %v5876_v34, %v6715_v46 }
 0x121   : > { %4872 = vmatpush2.bf16.msk.msra.mxu0 %vm4871_vm8, %v5458_v15  ;;  %vm5012_vm11 = vmpackc.low %vm3072_vm4, %vm3070_vm3  ;;  %vm2679_vm3 = vcmp.eq.s32.totalorder %v5879_v35, %v6707_v45  ;;  %vm2676_vm8 = vcmp.eq.s32.totalorder %v5876_v34, %v6723_v47 }
 0x122   : > { %5013 = vmatpush2.bf16.msk.msra.mxu1 %vm5012_vm11, %v5458_v15  ;;  %vm4873_vm14 = vmpackc.low %vm2683_vm7, %vm2681_vm6  ;;  %vm3065_vm6 = vcmp.eq.s32.totalorder %v5879_v35, %v6715_v46  ;;  %vm3062_vm11 = vcmp.eq.s32.totalorder %v5876_v34, %v6731_v48 }
 0x123   : > { %4874 = vmatprep.subr.msk.bf16.mxu0 %vm4873_vm14, %v5458_v15  ;;  %vm5014_vm1 = vmpackc.low %vm3069_vm10, %vm3067_vm9  ;;  %vm2678_vm9 = vcmp.eq.s32.totalorder %v5879_v35, %v6723_v47  ;;  %vm2673_vm14 = vcmp.eq.s32.totalorder %v5902_v36, %v6707_v45 }
 0x124   : > { %5015 = vmatprep.subr.msk.bf16.mxu1 %vm5014_vm1, %v5458_v15  ;;  %vm4875_vm4 = vmpackc.low %vm2682_vm13, %vm2680_vm12  ;;  %vm3064_vm12 = vcmp.eq.s32.totalorder %v5879_v35, %v6731_v48  ;;  %vm3059_vm1 = vcmp.eq.s32.totalorder %v5902_v36, %v6715_v46 }
 0x125   : > { %4876 = vmatpush2.bf16.msk.msra.mxu0 %vm4875_vm4, %v5458_v15  ;;  %vm5016_vm7 = vmpackc.low %vm3068_vm0, %vm3066_vm15  ;;  %vm2675_vm15 = vcmp.eq.s32.totalorder %v5905_v37, %v6707_v45  ;;  %vm2672_vm4 = vcmp.eq.s32.totalorder %v5902_v36, %v6723_v47 }
 0x126   : > { %5017 = vmatpush2.bf16.msk.msra.mxu1 %vm5016_vm7, %v5458_v15  ;;  %vm4877_vm10 = vmpackc.low %vm2679_vm3, %vm2677_vm2  ;;  %vm3061_vm2 = vcmp.eq.s32.totalorder %v5905_v37, %v6715_v46  ;;  %vm3058_vm7 = vcmp.eq.s32.totalorder %v5902_v36, %v6731_v48 }
 0x127   : > { %4878 = vmatprep.subr.msk.bf16.mxu0 %vm4877_vm10, %v5458_v15  ;;  %vm5018_vm13 = vmpackc.low %vm3065_vm6, %vm3063_vm5  ;;  %vm2674_vm5 = vcmp.eq.s32.totalorder %v5905_v37, %v6723_v47  ;;  %vm2669_vm10 = vcmp.eq.s32.totalorder %v5928_v38, %v6707_v45 }
 0x128   : > { %5019 = vmatprep.subr.msk.bf16.mxu1 %vm5018_vm13, %v5458_v15  ;;  %vm4879_vm0 = vmpackc.low %vm2678_vm9, %vm2676_vm8  ;;  %vm3060_vm8 = vcmp.eq.s32.totalorder %v5905_v37, %v6731_v48  ;;  %vm3055_vm13 = vcmp.eq.s32.totalorder %v5928_v38, %v6715_v46 }
 0x129   : > { %4880 = vmatpush2.bf16.msk.msra.mxu0 %vm4879_vm0, %v5458_v15  ;;  %vm5020_vm3 = vmpackc.low %vm3064_vm12, %vm3062_vm11  ;;  %vm2671_vm11 = vcmp.eq.s32.totalorder %v5931_v39, %v6707_v45  ;;  %vm2668_vm0 = vcmp.eq.s32.totalorder %v5928_v38, %v6723_v47 }
 0x12a   : > { %5021 = vmatpush2.bf16.msk.msra.mxu1 %vm5020_vm3, %v5458_v15  ;;  %vm4881_vm6 = vmpackc.low %vm2675_vm15, %vm2673_vm14  ;;  %vm3057_vm14 = vcmp.eq.s32.totalorder %v5931_v39, %v6715_v46  ;;  %vm3054_vm3 = vcmp.eq.s32.totalorder %v5928_v38, %v6731_v48 }
 0x12b   : > { %4882 = vmatprep.subr.msk.bf16.mxu0 %vm4881_vm6, %v5458_v15  ;;  %vm5022_vm9 = vmpackc.low %vm3061_vm2, %vm3059_vm1  ;;  %vm2670_vm1 = vcmp.eq.s32.totalorder %v5931_v39, %v6723_v47  ;;  %vm2665_vm6 = vcmp.eq.s32.totalorder %v5954_v40, %v6707_v45 }
 0x12c   : > { %5023 = vmatprep.subr.msk.bf16.mxu1 %vm5022_vm9, %v5458_v15  ;;  %vm4883_vm12 = vmpackc.low %vm2674_vm5, %vm2672_vm4  ;;  %vm3056_vm4 = vcmp.eq.s32.totalorder %v5931_v39, %v6731_v48  ;;  %vm3051_vm9 = vcmp.eq.s32.totalorder %v5954_v40, %v6715_v46 }
 0x12d   : > { %4884 = vmatpush2.bf16.msk.msra.mxu0 %vm4883_vm12, %v5458_v15  ;;  %vm5024_vm15 = vmpackc.low %vm3060_vm8, %vm3058_vm7  ;;  %vm2667_vm7 = vcmp.eq.s32.totalorder %v5957_v41, %v6707_v45  ;;  %vm2664_vm12 = vcmp.eq.s32.totalorder %v5954_v40, %v6723_v47 }
 0x12e   : > { %5025 = vmatpush2.bf16.msk.msra.mxu1 %vm5024_vm15, %v5458_v15  ;;  %vm4885_vm2 = vmpackc.low %vm2671_vm11, %vm2669_vm10  ;;  %vm3053_vm10 = vcmp.eq.s32.totalorder %v5957_v41, %v6715_v46  ;;  %vm3050_vm15 = vcmp.eq.s32.totalorder %v5954_v40, %v6731_v48 }
 0x12f   : > { %4886 = vmatprep.subr.msk.bf16.mxu0 %vm4885_vm2, %v5458_v15  ;;  %vm5026_vm5 = vmpackc.low %vm3057_vm14, %vm3055_vm13  ;;  %vm2666_vm13 = vcmp.eq.s32.totalorder %v5957_v41, %v6723_v47  ;;  %vm2661_vm2 = vcmp.eq.s32.totalorder %v5980_v42, %v6707_v45 }
 0x130   : > { %5027 = vmatprep.subr.msk.bf16.mxu1 %vm5026_vm5, %v5458_v15  ;;  %vm4887_vm8 = vmpackc.low %vm2670_vm1, %vm2668_vm0  ;;  %vm3052_vm0 = vcmp.eq.s32.totalorder %v5957_v41, %v6731_v48  ;;  %vm3047_vm5 = vcmp.eq.s32.totalorder %v5980_v42, %v6715_v46 }
 0x131   : > { %4888 = vmatpush2.bf16.msk.msra.mxu0 %vm4887_vm8, %v5458_v15  ;;  %vm5028_vm11 = vmpackc.low %vm3056_vm4, %vm3054_vm3  ;;  %vm2663_vm3 = vcmp.eq.s32.totalorder %v5983_v43, %v6707_v45  ;;  %vm2660_vm8 = vcmp.eq.s32.totalorder %v5980_v42, %v6723_v47 }
 0x132   : > { %5029 = vmatpush2.bf16.msk.msra.mxu1 %vm5028_vm11, %v5458_v15  ;;  %vm4889_vm14 = vmpackc.low %vm2667_vm7, %vm2665_vm6  ;;  %vm3049_vm6 = vcmp.eq.s32.totalorder %v5983_v43, %v6715_v46  ;;  %vm3046_vm11 = vcmp.eq.s32.totalorder %v5980_v42, %v6731_v48 }
 0x133   : > { %4890 = vmatprep.subr.msk.bf16.mxu0 %vm4889_vm14, %v5458_v15  ;;  %vm5030_vm1 = vmpackc.low %vm3053_vm10, %vm3051_vm9  ;;  %vm2662_vm9 = vcmp.eq.s32.totalorder %v5983_v43, %v6723_v47  ;;  %vm3429_vm14 = vcmp.eq.s32.totalorder %v5593_v4, %v7054_v58 }
 0x134   : > { %5031 = vmatprep.subr.msk.bf16.mxu1 %vm5030_vm1, %v5458_v15  ;;  %vm4891_vm4 = vmpackc.low %vm2666_vm13, %vm2664_vm12  ;;  %vm3048_vm12 = vcmp.eq.s32.totalorder %v5983_v43, %v6731_v48  ;;  %vm3428_vm1 = vcmp.eq.s32.totalorder %v5593_v4, %v7062_v59  ;;  %v5333_v4 = vld [vmem:[%s5568_s5 + $0xd4] ss:$8 sps:$4 sm:$0xff]   ;;  %v7367_v48 = vld [vmem:[%s7362_s18] ss:$8 sm:$0x3] }
 0x135   : > { %4892 = vmatpush2.bf16.msk.msra.mxu0 %vm4891_vm4, %v5458_v15  ;;  %vm5032_vm7 = vmpackc.low %vm3052_vm0, %vm3050_vm15  ;;  %vm3431_vm15 = vcmp.eq.s32.totalorder %v5596_v5, %v7054_v58  ;;  %vm3425_vm4 = vcmp.eq.s32.totalorder %v5599_v6, %v7054_v58  ;;  %v624_v56 = vrot.slane %v7367_v48, %v5585_v3 }
 0x136   : > { %5033 = vmatpush2.bf16.msk.msra.mxu1 %vm5032_vm7, %v5458_v15  ;;  %vm4893_vm10 = vmpackc.low %vm2663_vm3, %vm2661_vm2  ;;  %vm3430_vm2 = vcmp.eq.s32.totalorder %v5596_v5, %v7062_v59  ;;  %v5335_v5 = vld [vmem:[%s5568_s5 + $0xf4] ss:$8 sps:$4 sm:$0xff]  }
 0x137   : > { %4894 = vmatprep.subr.msk.bf16.mxu0 %vm4893_vm10, %v5458_v15  ;;  %vm5034_vm13 = vmpackc.low %vm3049_vm6, %vm3047_vm5  ;;  %vm3427_vm5 = vcmp.eq.s32.totalorder %v5602_v7, %v7054_v58 }
 0x138   : > { %5035 = vmatprep.subr.msk.bf16.mxu1 %vm5034_vm13, %v5458_v15  ;;  %vm4895_vm0 = vmpackc.low %vm2662_vm9, %vm2660_vm8  ;;  %vm3424_vm8 = vcmp.eq.s32.totalorder %v5599_v6, %v7062_v59  ;;  %vm3426_vm9 = vcmp.eq.s32.totalorder %v5602_v7, %v7062_v59  ;;  %v5337_v6 = vld [vmem:[%s5568_s5 + $0xd0] ss:$8 sps:$4 sm:$0xff]  }
 0x139   : > { %4896 = vmatpush2.bf16.msk.msra.mxu0 %vm4895_vm0, %v5458_v15  ;;  %vm5036_vm3 = vmpackc.low %vm3048_vm12, %vm3046_vm11  ;;  %vm3421_vm11 = vcmp.eq.s32.totalorder %v5641_v16, %v7054_v58  ;;  %vm3423_vm12 = vcmp.eq.s32.totalorder %v5644_v17, %v7054_v58  ;;  %vm3422_vm0 = vcmp.eq.s32.totalorder %v5644_v17, %v7062_v59  ;;  %v5338_v7 = vld [vmem:[%s5568_s5 + $0xf0] ss:$8 sps:$4 sm:$0xff]   ;;  %v5344_v17 = vld [vmem:[%s5568_s5 + $0x114] ss:$8 sps:$4 sm:$0xff]  }
 0x13a   : > { %5037 = vmatpush2.bf16.msk.msra.mxu1 %vm5036_vm3, %v5458_v15  ;;  %vm5115_vm6 = vmpackc.low %vm3431_vm15, %vm3429_vm14  ;;  %vm3420_vm15 = vcmp.eq.s32.totalorder %v5641_v16, %v7062_v59  ;;  %v5341_v16 = vld [vmem:[%s5568_s5 + $0x104] ss:$8 sps:$4 sm:$0xff]  }
 0x13b   : > { %5116 = vmatprep.subr.msk.bf16.mxu0 %vm5115_vm6, %v5458_v15  ;;  %5190 = vmatprep.subr.msk.bf16.mxu1 %vm5115_vm6, %v5458_v15  ;;  %vm5117_vm7 = vmpackc.low %vm3430_vm2, %vm3428_vm1  ;;  %vm3417_vm1 = vcmp.eq.s32.totalorder %v5670_v18, %v7054_v58  ;;  %vm3419_vm2 = vcmp.eq.s32.totalorder %v5673_v19, %v7054_v58  ;;  %vm3418_vm6 = vcmp.eq.s32.totalorder %v5673_v19, %v7062_v59 }
 0x13c   : > { %2910 = vmatmul.mubr.bf16.vlgmr.msra.gmra.mxu0 %v5327_v60  ;;  %vm5119_vm10 = vmpackc.low %vm3427_vm5, %vm3425_vm4  ;;  %vm3416_vm5 = vcmp.eq.s32.totalorder %v5670_v18, %v7062_v59  ;;  %v5342_v18 = vld [vmem:[%s5568_s5 + $0x110] ss:$8 sps:$4 sm:$0xff]   ;;  %v7280_v19 = vpop.f32.mrf.mxu0  ;;  %v628_v60 = vrot.slane %v7367_v48, %v5582_v2  ;;  %v1040_v48 = vrot.slane %v7378_v54, %v5585_v3 }
 0x13d   : > { %3296 = vmatmul.mubr.bf16.vlgmr.msra.gmra.mxu1 %v5330_v61  ;;  %5118 = vmatpush1.bf16.msk.msra.mxu0 %vm5117_vm7, %v5458_v15  ;;  %vm5121_vm13 = vmpackc.low %vm3426_vm9, %vm3424_vm8  ;;  %vm3415_vm8 = vcmp.eq.s32.totalorder %v5699_v21, %v7054_v58  ;;  %v1010_v61 = vrot.slane %v4192_v49, %v5582_v2  ;;  %v7411_v49 = vld [vmem:[%s7362_s18 + $0x11] ss:$8 sm:$0x3] }
 0x13e   : > { %5206 = vmatpush1.bf16.msk.msra.mxu1 %vm5117_vm7, %v5458_v15  ;;  %5120 = vmatprep.subr.msk.bf16.mxu0 %vm5119_vm10, %v5458_v15  ;;  %vm5123_vm14 = vmpackc.low %vm3423_vm12, %vm3421_vm11  ;;  %vm3413_vm7 = vcmp.eq.s32.totalorder %v5696_v20, %v7054_v58  ;;  %vm3412_vm11 = vcmp.eq.s32.totalorder %v5696_v20, %v7062_v59  ;;  %vm3414_vm12 = vcmp.eq.s32.totalorder %v5699_v21, %v7062_v59  ;;  %v7282_v20 = vpop.f32.mrf.mxu1  ;;  %v7284_v21 = vpop.f32.mrf.mxu0 }
 0x13f   : > { %5191 = vmatprep.subr.msk.bf16.mxu1 %vm5119_vm10, %v5458_v15  ;;  %2919 = vmatprep.mubr.bf16.mxu0 %v5333_v4  ;;  %vm5125_vm3 = vmpackc.low %vm3422_vm0, %vm3420_vm15  ;;  %v641_v4 = vrot.slane %v4052_v51, %v5585_v3 }
 0x140   : > { %3305 = vmatprep.mubr.bf16.mxu1 %v5335_v5  ;;  %vm5127_vm4 = vmpackc.low %vm3419_vm2, %vm3417_vm1  ;;  %vm3408_vm1 = vcmp.eq.s32.totalorder %v5723_v23, %v7062_v59  ;;  %vm3410_vm2 = vcmp.eq.s32.totalorder %v5726_v24, %v7062_v59  ;;  %v1023_v5 = vrot.slane %v4193_v52, %v5585_v3 }
 0x141   : > { %5122 = vmatpush1.bf16.msk.msra.mxu0 %vm5121_vm13, %v5458_v15  ;;  %vm5129_vm9 = vmpackc.low %vm3418_vm6, %vm3416_vm5 }
 0x142   : > { %5207 = vmatpush1.bf16.msk.msra.mxu1 %vm5121_vm13, %v5458_v15  ;;  %5124 = vmatprep.subr.msk.bf16.mxu0 %vm5123_vm14, %v5458_v15  ;;  %vm5131_vm10 = vmpackc.low %vm3415_vm8, %vm3413_vm7  ;;  %vm3409_vm13 = vcmp.eq.s32.totalorder %v5723_v23, %v7054_v58  ;;  %vm3404_vm7 = vcmp.eq.s32.totalorder %v5749_v25, %v7062_v59  ;;  %vm3406_vm8 = vcmp.eq.s32.totalorder %v5752_v26, %v7062_v59  ;;  %v7286_v23 = vpop.f32.mrf.mxu1 }
 0x143   : > { %5192 = vmatprep.subr.msk.bf16.mxu1 %vm5123_vm14, %v5458_v15  ;;  %vm3411_vm14 = vcmp.eq.s32.totalorder %v5726_v24, %v7054_v58  ;;  %vm5133_vm15 = vmpackc.low %vm3414_vm12, %vm3412_vm11  ;;  %v7288_v24 = vpop.f32.mrf.mxu0 }
 0x144   : > { %2920 = vmatmul.mubr.bf16.gmra.mxu0 %v5337_v6  ;;  %vm5135_vm0 = vmpackc.low %vm3411_vm14, %vm3409_vm13  ;;  %vm3400_vm13 = vcmp.eq.s32.totalorder %v5578_v1, %v7062_v59  ;;  %vm3402_vm14 = vcmp.eq.s32.totalorder %v5775_v27, %v7062_v59  ;;  %v7397_v6 = vld [vmem:[%s7362_s18 + $0x10] ss:$8 sm:$0x3] }
 0x145   : > { %3306 = vmatmul.mubr.bf16.gmra.mxu1 %v5338_v7  ;;  %5126 = vmatpush1.bf16.msk.msra.mxu0 %vm5125_vm3, %v5458_v15  ;;  %vm5137_vm5 = vmpackc.low %vm3410_vm2, %vm3408_vm1  ;;  %v7400_v7 = vld [vmem:[%s7362_s18 + $0x14] ss:$8 sm:$0x3] }
 0x146   : > { %5208 = vmatpush1.bf16.msk.msra.mxu1 %vm5125_vm3, %v5458_v15  ;;  %5128 = vmatprep.subr.msk.bf16.mxu0 %vm5127_vm4, %v5458_v15  ;;  %vm3405_vm3 = vcmp.eq.s32.totalorder %v5749_v25, %v7054_v58  ;;  %vm5141_vm11 = vmpackc.low %vm3406_vm8, %vm3404_vm7  ;;  %v7290_v25 = vpop.f32.mrf.mxu1 }
 0x147   : > { %5193 = vmatprep.subr.msk.bf16.mxu1 %vm5127_vm4, %v5458_v15  ;;  %3681 = vmatprep.mubr.bf16.mxu0 %v5341_v16  ;;  %vm3407_vm4 = vcmp.eq.s32.totalorder %v5752_v26, %v7054_v58  ;;  %vm5145_vm1 = vmpackc.low %vm3402_vm14, %vm3400_vm13  ;;  %v7292_v26 = vpop.f32.mrf.mxu0 }
 0x148   : > { %3691 = vmatprep.mubr.bf16.mxu1 %v5344_v17  ;;  %vm5139_vm6 = vmpackc.low %vm3407_vm4, %vm3405_vm3  ;;  %vm3460_vm3 = vcmp.eq.s32.totalorder %v5798_v28, %v7062_v59  ;;  %vm3462_vm4 = vcmp.eq.s32.totalorder %v5801_v29, %v7062_v59  ;;  %v645_v17 = vrot.slane %v4052_v51, %v5582_v2 }
 0x149   : > { %5130 = vmatpush1.bf16.msk.msra.mxu0 %vm5129_vm9, %v5458_v15  ;;  %vm5149_vm7 = vmpackc.low %vm3462_vm4, %vm3460_vm3 }
 0x14a   : > { %5209 = vmatpush1.bf16.msk.msra.mxu1 %vm5129_vm9, %v5458_v15  ;;  %5132 = vmatprep.subr.msk.bf16.mxu0 %vm5131_vm10, %v5458_v15  ;;  %vm3401_vm9 = vcmp.eq.s32.totalorder %v5578_v1, %v7054_v58  ;;  %v5339_v1 = vld [vmem:[%s5568_s5 + $0x100] ss:$8 sps:$4 sm:$0xff]   ;;  %s3791_s5 = scalar_lea.hbm %s7865_s3, %s5189_s21 }
 0x14b   : > { %5194 = vmatprep.subr.msk.bf16.mxu1 %vm5131_vm10, %v5458_v15  ;;  %vm3403_vm10 = vcmp.eq.s32.totalorder %v5775_v27, %v7054_v58  ;;  %v7294_v27 = vpop.f32.mrf.mxu1 }
 0x14c   : > { %vm5143_vm12 = vmpackc.low %vm3403_vm10, %vm3401_vm9  ;;  %vm3456_vm9 = vcmp.eq.s32.totalorder %v5824_v30, %v7062_v59  ;;  %vm3458_vm10 = vcmp.eq.s32.totalorder %v5827_v31, %v7062_v59 }
 0x14d   : > { %5134 = vmatpush1.bf16.msk.msra.mxu0 %vm5133_vm15, %v5458_v15  ;;  %vm5153_vm13 = vmpackc.low %vm3458_vm10, %vm3456_vm9 }
 0x14e   : > { %5210 = vmatpush1.bf16.msk.msra.mxu1 %vm5133_vm15, %v5458_v15  ;;  %5136 = vmatprep.subr.msk.bf16.mxu0 %vm5135_vm0, %v5458_v15  ;;  %vm3461_vm15 = vcmp.eq.s32.totalorder %v5798_v28, %v7054_v58  ;;  %v7296_v28 = vpop.f32.mrf.mxu0 }
 0x14f   : > { %5195 = vmatprep.subr.msk.bf16.mxu1 %vm5135_vm0, %v5458_v15  ;;  %vm3463_vm0 = vcmp.eq.s32.totalorder %v5801_v29, %v7054_v58 }
 0x150   : > { %vm5147_vm2 = vmpackc.low %vm3463_vm0, %vm3461_vm15  ;;  %vm3452_vm15 = vcmp.eq.s32.totalorder %v5850_v32, %v7062_v59  ;;  %vm3454_vm0 = vcmp.eq.s32.totalorder %v5853_v33, %v7062_v59  ;;  %v7300_v29 = vpop.f32.mrf.mxu0 }
 0x151   : > { %5138 = vmatpush1.bf16.msk.msra.mxu0 %vm5137_vm5, %v5458_v15  ;;  %vm5157_vm3 = vmpackc.low %vm3454_vm0, %vm3452_vm15 }
 0x152   : > { %5211 = vmatpush1.bf16.msk.msra.mxu1 %vm5137_vm5, %v5458_v15  ;;  %5140 = vmatprep.subr.msk.bf16.mxu0 %vm5139_vm6, %v5458_v15  ;;  %vm3457_vm5 = vcmp.eq.s32.totalorder %v5824_v30, %v7054_v58 }
 0x153   : > { %5196 = vmatprep.subr.msk.bf16.mxu1 %vm5139_vm6, %v5458_v15  ;;  %vm3459_vm6 = vcmp.eq.s32.totalorder %v5827_v31, %v7054_v58  ;;  %v7304_v31 = vpop.f32.mrf.mxu0 }
 0x154   : > { %vm5151_vm8 = vmpackc.low %vm3459_vm6, %vm3457_vm5  ;;  %vm3448_vm5 = vcmp.eq.s32.totalorder %v5876_v34, %v7062_v59  ;;  %vm3450_vm6 = vcmp.eq.s32.totalorder %v5879_v35, %v7062_v59 }
 0x155   : > { %5142 = vmatpush1.bf16.msk.msra.mxu0 %vm5141_vm11, %v5458_v15  ;;  %vm5161_vm9 = vmpackc.low %vm3450_vm6, %vm3448_vm5 }
 0x156   : > { %5212 = vmatpush1.bf16.msk.msra.mxu1 %vm5141_vm11, %v5458_v15  ;;  %5144 = vmatprep.subr.msk.bf16.mxu0 %vm5143_vm12, %v5458_v15  ;;  %vm3453_vm11 = vcmp.eq.s32.totalorder %v5850_v32, %v7054_v58 }
 0x157   : > { %5197 = vmatprep.subr.msk.bf16.mxu1 %vm5143_vm12, %v5458_v15  ;;  %vm3455_vm12 = vcmp.eq.s32.totalorder %v5853_v33, %v7054_v58  ;;  %v7308_v33 = vpop.f32.mrf.mxu0 }
 0x158   : > { %vm5155_vm14 = vmpackc.low %vm3455_vm12, %vm3453_vm11  ;;  %vm3444_vm11 = vcmp.eq.s32.totalorder %v5902_v36, %v7062_v59  ;;  %vm3446_vm12 = vcmp.eq.s32.totalorder %v5905_v37, %v7062_v59 }
 0x159   : > { %5146 = vmatpush1.bf16.msk.msra.mxu0 %vm5145_vm1, %v5458_v15  ;;  %vm5165_vm15 = vmpackc.low %vm3446_vm12, %vm3444_vm11 }
 0x15a   : > { %5213 = vmatpush1.bf16.msk.msra.mxu1 %vm5145_vm1, %v5458_v15  ;;  %5148 = vmatprep.subr.msk.bf16.mxu0 %vm5147_vm2, %v5458_v15  ;;  %vm3449_vm1 = vcmp.eq.s32.totalorder %v5876_v34, %v7054_v58 }
 0x15b   : > { %5198 = vmatprep.subr.msk.bf16.mxu1 %vm5147_vm2, %v5458_v15  ;;  %vm3451_vm2 = vcmp.eq.s32.totalorder %v5879_v35, %v7054_v58 }
 0x15c   : > { %vm5159_vm4 = vmpackc.low %vm3451_vm2, %vm3449_vm1  ;;  %vm3440_vm1 = vcmp.eq.s32.totalorder %v5928_v38, %v7062_v59  ;;  %vm3442_vm2 = vcmp.eq.s32.totalorder %v5931_v39, %v7062_v59 }
 0x15d   : > { %5150 = vmatpush2.bf16.msk.msra.mxu0 %vm5149_vm7, %v5458_v15  ;;  %vm5169_vm5 = vmpackc.low %vm3442_vm2, %vm3440_vm1 }
 0x15e   : > { %5214 = vmatpush2.bf16.msk.msra.mxu1 %vm5149_vm7, %v5458_v15  ;;  %5152 = vmatprep.subr.msk.bf16.mxu0 %vm5151_vm8, %v5458_v15  ;;  %vm3445_vm7 = vcmp.eq.s32.totalorder %v5902_v36, %v7054_v58 }
 0x15f   : > { %5199 = vmatprep.subr.msk.bf16.mxu1 %vm5151_vm8, %v5458_v15  ;;  %vm3447_vm8 = vcmp.eq.s32.totalorder %v5905_v37, %v7054_v58 }
 0x160   : > { %vm5163_vm10 = vmpackc.low %vm3447_vm8, %vm3445_vm7  ;;  %vm3436_vm7 = vcmp.eq.s32.totalorder %v5954_v40, %v7062_v59  ;;  %vm3438_vm8 = vcmp.eq.s32.totalorder %v5957_v41, %v7062_v59 }
 0x161   : > { %5154 = vmatpush2.bf16.msk.msra.mxu0 %vm5153_vm13, %v5458_v15  ;;  %vm5173_vm11 = vmpackc.low %vm3438_vm8, %vm3436_vm7 }
 0x162   : > { %5215 = vmatpush2.bf16.msk.msra.mxu1 %vm5153_vm13, %v5458_v15  ;;  %5156 = vmatprep.subr.msk.bf16.mxu0 %vm5155_vm14, %v5458_v15  ;;  %vm3441_vm13 = vcmp.eq.s32.totalorder %v5928_v38, %v7054_v58 }
 0x163   : > { %5200 = vmatprep.subr.msk.bf16.mxu1 %vm5155_vm14, %v5458_v15  ;;  %vm3443_vm14 = vcmp.eq.s32.totalorder %v5931_v39, %v7054_v58 }
 0x164   : > { %vm5167_vm0 = vmpackc.low %vm3443_vm14, %vm3441_vm13  ;;  %vm3432_vm13 = vcmp.eq.s32.totalorder %v5980_v42, %v7062_v59  ;;  %vm3434_vm14 = vcmp.eq.s32.totalorder %v5983_v43, %v7062_v59  ;;  %v7389_v59 = vld [vmem:[%s7362_s18 + $0x7] ss:$8 sm:$0x3] }
 0x165   : > { %5158 = vmatpush2.bf16.msk.msra.mxu0 %vm5157_vm3, %v5458_v15 }
 0x166   : > { %5216 = vmatpush2.bf16.msk.msra.mxu1 %vm5157_vm3, %v5458_v15  ;;  %5160 = vmatprep.subr.msk.bf16.mxu0 %vm5159_vm4, %v5458_v15  ;;  %vm3437_vm3 = vcmp.eq.s32.totalorder %v5954_v40, %v7054_v58 }
 0x167   : > { %5201 = vmatprep.subr.msk.bf16.mxu1 %vm5159_vm4, %v5458_v15  ;;  %vm3439_vm4 = vcmp.eq.s32.totalorder %v5957_v41, %v7054_v58 }
 0x168   : > { %vm5171_vm6 = vmpackc.low %vm3439_vm4, %vm3437_vm3 }
 0x169   : > { %5162 = vmatpush2.bf16.msk.msra.mxu0 %vm5161_vm9, %v5458_v15 }
 0x16a   : > { %5217 = vmatpush2.bf16.msk.msra.mxu1 %vm5161_vm9, %v5458_v15  ;;  %5164 = vmatprep.subr.msk.bf16.mxu0 %vm5163_vm10, %v5458_v15  ;;  %vm3433_vm9 = vcmp.eq.s32.totalorder %v5980_v42, %v7054_v58 }
 0x16b   : > { %5202 = vmatprep.subr.msk.bf16.mxu1 %vm5163_vm10, %v5458_v15  ;;  %vm3435_vm10 = vcmp.eq.s32.totalorder %v5983_v43, %v7054_v58  ;;  %v7386_v58 = vld [vmem:[%s7362_s18 + $0x3] ss:$8 sm:$0x3] }
 0x16c   : > { %vm5175_vm12 = vmpackc.low %vm3435_vm10, %vm3433_vm9  ;;  %v675_v51 = vrot.slane %v7386_v58, %v5585_v3 }
 0x16d   : > { %5166 = vmatpush2.bf16.msk.msra.mxu0 %vm5165_vm15, %v5458_v15 }
 0x16e   : > { %5218 = vmatpush2.bf16.msk.msra.mxu1 %vm5165_vm15, %v5458_v15  ;;  %5168 = vmatprep.subr.msk.bf16.mxu0 %vm5167_vm0, %v5458_v15  ;;  %vm5177_vm15 = vmpackc.low %vm3434_vm14, %vm3432_vm13 }
 0x16f   : > { %5203 = vmatprep.subr.msk.bf16.mxu1 %vm5167_vm0, %v5458_v15 }
 0x171   : > { %5170 = vmatpush2.bf16.msk.msra.mxu0 %vm5169_vm5, %v5458_v15 }
 0x172   : > { %5219 = vmatpush2.bf16.msk.msra.mxu1 %vm5169_vm5, %v5458_v15  ;;  %5172 = vmatprep.subr.msk.bf16.mxu0 %vm5171_vm6, %v5458_v15 }
 0x173   : > { %5204 = vmatprep.subr.msk.bf16.mxu1 %vm5171_vm6, %v5458_v15 }
 0x175   : > { %5174 = vmatpush2.bf16.msk.msra.mxu0 %vm5173_vm11, %v5458_v15 }
 0x176   : > { %5220 = vmatpush2.bf16.msk.msra.mxu1 %vm5173_vm11, %v5458_v15  ;;  %5176 = vmatprep.subr.msk.bf16.mxu0 %vm5175_vm12, %v5458_v15 }
 0x177   : > { %5205 = vmatprep.subr.msk.bf16.mxu1 %vm5175_vm12, %v5458_v15 }
 0x179   : > { %5178 = vmatpush2.bf16.msk.msra.mxu0 %vm5177_vm15, %v5458_v15 }
 0x17a   : > { %5221 = vmatpush2.bf16.msk.msra.mxu1 %vm5177_vm15, %v5458_v15  ;;  %v7298_v15 = vpop.f32.mrf.mxu1 }
 0x17c   : > { %3682 = vmatmul.mubr.bf16.vlgmr.msra.gmra.mxu0 %v5339_v1  ;;  %v7302_v30 = vpop.f32.mrf.mxu1  ;;  %v7312_v35 = vpop.f32.mrf.mxu0  ;;  %v1027_v1 = vrot.slane %v4193_v52, %v5582_v2  ;;  %v1057_v52 = vrot.slane %v7389_v59, %v5585_v3 }
 0x17d   : > { %3692 = vmatmul.mubr.bf16.vlgmr.msra.gmra.mxu1 %v5342_v18  ;;  %v658_v18 = vrot.slane %v7375_v53, %v5585_v3 }
 0x17e   : > { %v7306_v32 = vpop.f32.mrf.mxu1  ;;  %v7316_v37 = vpop.f32.mrf.mxu0 }
 0x180   : > { %v7310_v34 = vpop.f32.mrf.mxu1  ;;  %v7320_v39 = vpop.f32.mrf.mxu0 }
 0x182   : > { %v7314_v36 = vpop.f32.mrf.mxu1  ;;  %v7324_v41 = vpop.f32.mrf.mxu0 }
 0x184   : > { %v7318_v38 = vpop.f32.mrf.mxu1  ;;  %v7328_v43 = vpop.f32.mrf.mxu0 }
 0x186   : > { %v7322_v40 = vpop.f32.mrf.mxu1  ;;  %v7332_v63 = vpop.f32.mrf.mxu0 }
 0x188   : > { %v7326_v42 = vpop.f32.mrf.mxu1  ;;  %v7336_v8 = vpop.f32.mrf.mxu0 }
 0x18a   : > { %v7330_v62 = vpop.f32.mrf.mxu1  ;;  %v7340_v10 = vpop.f32.mrf.mxu0 }
 0x18c   : > { %v7334_v0 = vpop.f32.mrf.mxu1 }
 0x18e   : > { %v7338_v9 = vpop.f32.mrf.mxu1 }
 0x190   : > { %v7342_v11 = vpop.f32.mrf.mxu1 }
 0x191   : > { %7871 = vst [vmem:[#allocation8_spill] sm:$0xff] %v7342_v11  ;;  %v7457_v11 = vld [vmem:[%s7362_s18 + $0x13] ss:$8 sm:$0x3] }
 0x1bc   : > { %v7344_v12 = vpop.f32.mrf.mxu0 }
 0x1bd   : > { %7872 = vst [vmem:[#allocation9_spill] sm:$0xff] %v7344_v12  ;;  %v7346_v13 = vpop.f32.mrf.mxu1 }
 0x1be   : > { %7873 = vst [vmem:[#allocation10_spill] sm:$0xff] %v7346_v13  ;;  %v7348_v14 = vpop.f32.mrf.mxu0  ;;  %v7438_v13 = vld [vmem:[%s7362_s18 + $0x16] ss:$8 sm:$0x3] }
 0x1bf   : > { %7874 = vst [vmem:[#allocation11_spill] sm:$0xff] %v7348_v14  ;;  %v7350_v22 = vpop.f32.mrf.mxu1  ;;  %v679_v14 = vrot.slane %v7386_v58, %v5582_v2  ;;  %v7460_v58 = vld [vmem:[%s7362_s18 + $0x17] ss:$8 sm:$0x3] }
 0x1c0   : > { %7875 = vst [vmem:[#allocation12_spill] sm:$0xff] %v7350_v22  ;;  %v7352_v44 = vpop.f32.mrf.mxu0 }
 0x1c1   : > { %7876 = vst [vmem:[#allocation13_spill] sm:$0xff] %v7352_v44  ;;  %v7355_v45 = vpop.f32.mrf.mxu1  ;;  %v648_v44 = vmul.f32 %v641_v4, %v7288_v24 }
 0x1c2   : > { %7877 = vst [vmem:[#allocation14_spill] sm:$0xff] %v7355_v45  ;;  %v7357_v46 = vpop.f32.mrf.mxu0  ;;  %v7435_v45 = vld [vmem:[%s7362_s18 + $0x12] ss:$8 sm:$0x3] }
 0x1c3   : > { %7878 = vst [vmem:[#allocation15_spill] sm:$0xff] %v7357_v46  ;;  %v7364_v47 = vpop.f32.mrf.mxu1  ;;  %v1030_v46 = vmul.f32 %v1023_v5, %v7290_v25  ;;  %v1047_v25 = vmul.f32 %v1040_v48, %v7298_v15  ;;  %v682_v15 = vmul.f32 %v675_v51, %v7304_v31 }
 0x1c4   : > { %7879 = vst [vmem:[#allocation16_spill] sm:$0xff] %v7364_v47  ;;  %v7370_v50 = vpop.f32.mrf.mxu0  ;;  %v662_v47 = vrot.slane %v7375_v53, %v5582_v2  ;;  %v1031_v53 = vmul.f32 %v1027_v1, %v7294_v27  ;;  %v632_v27 = vmul.f32 %v628_v60, %v7284_v21  ;;  %v665_v1 = vmul.f32 %v658_v18, %v7296_v28  ;;  %v7520_v18 = vld [vmem:[%s7362_s18 + $0x26] ss:$8 sm:$0x3] }
 0x1c5   : > { %7880 = vst [vmem:[#allocation17_spill] sm:$0xff] %v7370_v50  ;;  %v7380_v55 = vpop.f32.mrf.mxu1  ;;  %v1061_v50 = vrot.slane %v7389_v59, %v5582_v2  ;;  %v7501_v59 = vld [vmem:[%s7362_s18 + $0x21] ss:$8 sm:$0x3] }
 0x1c6   : > { %7881 = vst [vmem:[#allocation18_spill] sm:$0xff] %v7380_v55  ;;  %v7402_v16 = vpop.f32.mrf.mxu0  ;;  %v7414_v55 = vld [vmem:[%s7362_s18 + $0x15] ss:$8 sm:$0x3]  ;;  %v2185_v51 = vrot.slane %v7501_v59, %v5582_v2 }
 0x1c7   : > { %7882 = vst [vmem:[#allocation19_spill] sm:$0xff] %v7402_v16  ;;  %v1044_v16 = vrot.slane %v7378_v54, %v5582_v2  ;;  %v7424_v22 = vpop.f32.mrf.mxu1  ;;  %v1013_v54 = vmul.f32 %v1006_v57, %v7282_v20  ;;  %v7471_v57 = vld [vmem:[%s7362_s18 + $0x20] ss:$8 sm:$0x3] }
 0x1c8   : > { %7883 = vst [vmem:[#allocation20_spill] sm:$0xff] %v7424_v22  ;;  %v7448_v12 = vpop.f32.mrf.mxu0  ;;  %v1014_v22 = vmul.f32 %v1010_v61, %v7286_v23  ;;  %v7488_v61 = vld [vmem:[%s7362_s18 + $0x24] ss:$8 sm:$0x3]  ;;  %v666_v23 = vmul.f32 %v662_v47, %v7300_v29  ;;  %v1064_v29 = vmul.f32 %v1057_v52, %v7306_v32  ;;  %v1065_v47 = vmul.f32 %v1061_v50, %v7310_v34 }
 0x1c9   : > { %7884 = vst [vmem:[#allocation21_spill] sm:$0xff] %v7448_v12  ;;  %v7473_v5 = vpop.f32.mrf.mxu1  ;;  %v649_v12 = vmul.f32 %v645_v17, %v7292_v26  ;;  %v631_v26 = vmul.f32 %v624_v56, %v7280_v19  ;;  %v1032_v4 = vadd.f32 %v1030_v46, %v1013_v54  ;;  %v2164_v17 = vrot.slane %v7471_v57, %v5585_v3 }
 0x1ca   : > { %7885 = vst [vmem:[#allocation22_spill] sm:$0xff] %v7473_v5  ;;  %v7490_v24 = vpop.f32.mrf.mxu0  ;;  %v1048_v20 = vmul.f32 %v1044_v16, %v7302_v30  ;;  %v7504_v5 = vld [vmem:[%s7362_s18 + $0x25] ss:$8 sm:$0x3]  ;;  %v1033_v60 = vadd.f32 %v1031_v53, %v1014_v22  ;;  %v2550_v28 = vrot.slane %v7488_v61, %v5585_v3  ;;  %v683_v30 = vmul.f32 %v679_v14, %v7308_v33 }
 0x1cb   : > { %v7506_v19 = vpop.f32.mrf.mxu1  ;;  %v650_v46 = vadd.f32 %v648_v44, %v631_v26  ;;  %v651_v56 = vadd.f32 %v649_v12, %v632_v27  ;;  %v7517_v16 = vld [vmem:[%s7362_s18 + $0x22] ss:$8 sm:$0x3]  ;;  %v2168_v12 = vrot.slane %v7471_v57, %v5582_v2  ;;  %v2554_v31 = vrot.slane %v7488_v61, %v5582_v2  ;;  %v7543_v26 = vld [vmem:[%s7362_s18 + $0x23] ss:$8 sm:$0x3] }
 0x1cc   : > { %v2181_v32 = vrot.slane %v7501_v59, %v5585_v3  ;;  %v2567_v33 = vrot.slane %v7504_v5, %v5585_v3  ;;  %v1049_v14 = vadd.f32 %v1047_v25, %v1032_v4  ;;  %v1050_v50 = vadd.f32 %v1048_v20, %v1033_v60  ;;  %v7546_v27 = vld [vmem:[%s7362_s18 + $0x27] ss:$8 sm:$0x3] }
 0x1cd   : > { %v667_v34 = vadd.f32 %v665_v1, %v650_v46  ;;  %v668_v22 = vadd.f32 %v666_v23, %v651_v56  ;;  %v2571_v52 = vrot.slane %v7504_v5, %v5582_v2  ;;  %v2198_v53 = vrot.slane %v7517_v16, %v5585_v3 }
 0x1ce   : > { %v1066_v20 = vadd.f32 %v1064_v29, %v1049_v14  ;;  %v1067_v4 = vadd.f32 %v1065_v47, %v1050_v50  ;;  %v7886_v46 = vrot.slane %v7411_v49, %v5585_v3  ;;  %v7887_v60 = vrot.slane %v7411_v49, %v5582_v2  ;;  %v7589_v29 = vld [vmem:[%s7362_s18 + $0x30] ss:$8 sm:$0x3] }
 0x1cf   : > { %v684_v25 = vadd.f32 %v682_v15, %v667_v34  ;;  %v685_v23 = vadd.f32 %v683_v30, %v668_v22  ;;  %v2202_v15 = vrot.slane %v7517_v16, %v5582_v2  ;;  %v2215_v30 = vrot.slane %v7543_v26, %v5585_v3 }
 0x1d0   : > { %v1416_v56 = vmul.f32 %v7886_v46, %v7320_v39  ;;  %v1417_v54 = vmul.f32 %v7887_v60, %v7324_v41  ;;  %v7888_v41 = vrot.slane %v7397_v6, %v5585_v3  ;;  %v7889_v22 = vrot.slane %v7397_v6, %v5582_v2  ;;  %v7592_v39 = vld [vmem:[%s7362_s18 + $0x34] ss:$8 sm:$0x3] }
 0x1d1   : > { %v7890_v46 = vrot.slane %v7435_v45, %v5585_v3  ;;  %v7891_v34 = vrot.slane %v7435_v45, %v5582_v2  ;;  %v7914_v5 = vrot.slane %v7543_v26, %v5582_v2 }
 0x1d2   : > { %v1399_v14 = vmul.f32 %v7888_v41, %v7312_v35  ;;  %v1400_v50 = vmul.f32 %v7889_v22, %v7316_v37  ;;  %v1070_v35 = vadd.f32 %v1066_v20, %v684_v25  ;;  %v1071_v41 = vadd.f32 %v1067_v4, %v685_v23 }
 0x1d3   : > { %v1433_v60 = vmul.f32 %v7890_v46, %v7328_v43  ;;  %v1434_v47 = vmul.f32 %v7891_v34, %v7332_v63  ;;  %v7892_v37 = vrot.slane %v7400_v7, %v5585_v3  ;;  %v7893_v43 = vrot.slane %v7414_v55, %v5585_v3 }
 0x1d4   : > { %v1418_v63 = vadd.f32 %v1416_v56, %v1399_v14  ;;  %v1419_v45 = vadd.f32 %v1417_v54, %v1400_v50  ;;  %v7894_v34 = vrot.slane %v7457_v11, %v5585_v3  ;;  %v7895_v20 = vrot.slane %v7457_v11, %v5582_v2  ;;  %v7628_v11 = vld [vmem:[%s7362_s18 + $0x35] ss:$8 sm:$0x3] }
 0x1d5   : > { %v1785_v6 = vmul.f32 %v7892_v37, %v7314_v36  ;;  %v1802_v22 = vmul.f32 %v7893_v43, %v7322_v40  ;;  %v7613_v36 = vld [vmem:[%s7362_s18 + $0x31] ss:$8 sm:$0x3]  ;;  %v7896_v40 = vrot.slane %v7400_v7, %v5582_v2  ;;  %v7897_v54 = vrot.slane %v7414_v55, %v5582_v2 }
 0x1d6   : > { %v1450_v25 = vmul.f32 %v7894_v34, %v7336_v8  ;;  %v1451_v23 = vmul.f32 %v7895_v20, %v7340_v10  ;;  %v2936_v8 = vrot.slane %v7589_v29, %v5585_v3  ;;  %v1435_v7 = vadd.f32 %v1433_v60, %v1418_v63  ;;  %v7649_v63 = vld [vmem:[%s7362_s18 + $0x32] ss:$8 sm:$0x3] }
 0x1d7   : > { %v1786_v4 = vmul.f32 %v7896_v40, %v7318_v38  ;;  %v1803_v56 = vmul.f32 %v7897_v54, %v7326_v42  ;;  %v1436_v38 = vadd.f32 %v1434_v47, %v1419_v45  ;;  %v1804_v55 = vadd.f32 %v1802_v22, %v1785_v6  ;;  %v7652_v45 = vld [vmem:[%s7362_s18 + $0x36] ss:$8 sm:$0x3]  ;;  %v7659_v54 = vld [vmem:[%s7362_s18 + $0x33] ss:$8 sm:$0x3] }
 0x1d8   : > { %v7898_v37 = vrot.slane %v7438_v13, %v5585_v3  ;;  %v7899_v34 = vrot.slane %v7438_v13, %v5582_v2  ;;  %v2953_v47 = vrot.slane %v7613_v36, %v5585_v3  ;;  %v1452_v6 = vadd.f32 %v1450_v25, %v1435_v7  ;;  %v7901_v42 = vld [vmem:[#allocation8_spill] sm:$0xff]  ;;  %v7903_v40 = vld [vmem:[#allocation13_spill] sm:$0xff] }
 0x1d9   : > { %v1453_v22 = vadd.f32 %v1451_v23, %v1436_v38  ;;  %v1805_v13 = vadd.f32 %v1803_v56, %v1786_v4  ;;  %v7902_v25 = vrot.slane %v7460_v58, %v5582_v2  ;;  %v2974_v56 = vrot.slane %v7649_v63, %v5582_v2 }
 0x1da   : > { %v1819_v43 = vmul.f32 %v7898_v37, %v7330_v62  ;;  %v1820_v20 = vmul.f32 %v7899_v34, %v7334_v0  ;;  %v2957_v62 = vrot.slane %v7613_v36, %v5582_v2  ;;  %v7662_v0 = vld [vmem:[%s7362_s18 + $0x37] ss:$8 sm:$0x3]  ;;  %v7900_v37 = vrot.slane %v7460_v58, %v5585_v3 }
 0x1db   : > { %v1837_v23 = vmul.f32 %v7902_v25, %v7901_v42  ;;  %v2970_v36 = vrot.slane %v7649_v63, %v5585_v3  ;;  %v2987_v42 = vrot.slane %v7659_v54, %v5585_v3  ;;  %v3373_v25 = vrot.slane %v7662_v0, %v5585_v3 }
 0x1dc   : > { %v1836_v34 = vmul.f32 %v7900_v37, %v7338_v9  ;;  %v1821_v37 = vadd.f32 %v1819_v43, %v1804_v55  ;;  %v1822_v50 = vadd.f32 %v1820_v20, %v1805_v13  ;;  %v1456_v7 = vadd.f32 %v1452_v6, %v1070_v35  ;;  %v7904_v13 = vld [vmem:[#allocation15_spill] sm:$0xff] }
 0x1dd   : > { %v1457_v4 = vadd.f32 %v1453_v22, %v1071_v41  ;;  %v2188_v63 = vmul.f32 %v2181_v32, %v7903_v40  ;;  %v2991_v55 = vrot.slane %v7659_v54, %v5582_v2  ;;  %v2189_v9 = vmul.f32 %v2185_v51, %v7904_v13  ;;  %v7905_v41 = vld [vmem:[#allocation9_spill] sm:$0xff]  ;;  %v7906_v32 = vld [vmem:[#allocation10_spill] sm:$0xff] }
 0x1de   : > { %v1838_v43 = vadd.f32 %v1836_v34, %v1821_v37  ;;  %v1839_v20 = vadd.f32 %v1837_v23, %v1822_v50  ;;  %v3377_v35 = vrot.slane %v7662_v0, %v5582_v2  ;;  %v2171_v6 = vmul.f32 %v2164_v17, %v7905_v41  ;;  %v7907_v50 = vld [vmem:[#allocation14_spill] sm:$0xff]  ;;  %v7908_v51 = vld [vmem:[#allocation17_spill] sm:$0xff]  ;;  %v7909_v17 = vld [vmem:[#allocation11_spill] sm:$0xff] }
 0x1df   : > { %v2557_v22 = vmul.f32 %v2550_v28, %v7906_v32  ;;  %v2574_v59 = vmul.f32 %v2567_v33, %v7907_v50  ;;  %v2205_v40 = vmul.f32 %v2198_v53, %v7908_v51  ;;  %v7717_v54 = vld [vmem:[%s7362_s18 + $0x40] ss:$8 sm:$0x3]  ;;  %v7720_v34 = vld [vmem:[%s7362_s18 + $0x42] ss:$8 sm:$0x3]  ;;  %v2172_v23 = vmul.f32 %v2168_v12, %v7909_v17 }
 0x1e0   : > { %v7910_v28 = vld [vmem:[#allocation12_spill] sm:$0xff]  ;;  %v7912_v53 = vld [vmem:[#allocation19_spill] sm:$0xff]  ;;  %v1842_v50 = vadd.f32 %v1838_v43, %v1456_v7  ;;  %v1843_v51 = vadd.f32 %v1839_v20, %v1457_v4  ;;  %v2190_v57 = vadd.f32 %v2188_v63, %v2171_v6  ;;  %v7913_v12 = vld [vmem:[#allocation21_spill] sm:$0xff]  ;;  %v3708_v16 = vrot.slane %v7717_v54, %v5585_v3 }
 0x1e1   : > { %v2558_v37 = vmul.f32 %v2554_v31, %v7910_v28  ;;  %v7911_v33 = vld [vmem:[#allocation16_spill] sm:$0xff]  ;;  %v2206_v41 = vmul.f32 %v2202_v15, %v7912_v53  ;;  %v2222_v61 = vmul.f32 %v2215_v30, %v7913_v12  ;;  %v2191_v31 = vadd.f32 %v2189_v9, %v2172_v23  ;;  %v7915_v43 = vld [vmem:[#allocation18_spill] sm:$0xff] }
 0x1e2   : > { %v2575_v13 = vmul.f32 %v2571_v52, %v7911_v33  ;;  %v2223_v52 = vmul.f32 %v7914_v5, %v7490_v24  ;;  %v3742_v15 = vrot.slane %v7720_v34, %v5585_v3  ;;  %v2576_v7 = vadd.f32 %v2574_v59, %v2557_v22  ;;  %v7917_v6 = vld [vmem:[#allocation20_spill] sm:$0xff] }
 0x1e3   : > { %v2207_v4 = vadd.f32 %v2205_v40, %v2190_v57  ;;  %v3712_v30 = vrot.slane %v7717_v54, %v5582_v2  ;;  %v7916_v24 = vrot.slane %v7520_v18, %v5585_v3  ;;  %v2208_v20 = vadd.f32 %v2206_v41, %v2191_v31  ;;  %v5180_v40 = vld [vmem:[%s7362_s18 + $0x41] ss:$8 sm:$0x3] }
 0x1e4   : > { %v2577_v9 = vadd.f32 %v2575_v13, %v2558_v37  ;;  %v7918_v23 = vrot.slane %v7520_v18, %v5582_v2  ;;  %v7919_v37 = vld [vmem:[#allocation22_spill] sm:$0xff]  ;;  %v7920_v13 = vrot.slane %v7546_v27, %v5585_v3  ;;  %v7921_v18 = vrot.slane %v7592_v39, %v5585_v3 }
 0x1e5   : > { %v2591_v26 = vmul.f32 %v7916_v24, %v7915_v43  ;;  %v2224_v22 = vadd.f32 %v2222_v61, %v2207_v4  ;;  %v2225_v41 = vadd.f32 %v2223_v52, %v2208_v20  ;;  %v7922_v12 = vrot.slane %v7628_v11, %v5585_v3 }
 0x1e6   : > { %v2592_v28 = vmul.f32 %v7918_v23, %v7917_v6  ;;  %v2608_v53 = vmul.f32 %v7920_v13, %v7919_v37 }
 0x1e7   : > { %v2593_v31 = vadd.f32 %v2591_v26, %v2576_v7  ;;  %v2228_v43 = vadd.f32 %v2224_v22, %v1842_v50  ;;  %v3729_v22 = vrot.slane %v5180_v40, %v5582_v2 }
 0x1e8   : > { %v2594_v5 = vadd.f32 %v2592_v28, %v2577_v9 }
 0x1fc   : > { %v7508_v21 = vpop.f32.mrf.mxu0 }
 0x1fd   : > { %v7522_v44 = vpop.f32.mrf.mxu1 }
 0x1fe   : > { %v7532_v48 = vpop.f32.mrf.mxu0  ;;  %v3329_v57 = vmul.f32 %v7921_v18, %v7522_v44  ;;  %v7924_v44 = vrot.slane %v7546_v27, %v5582_v2 }
 0x1ff   : > { %v7548_v1 = vpop.f32.mrf.mxu1 }
 0x200   : > { %v7570_v49 = vpop.f32.mrf.mxu0  ;;  %v2609_v52 = vmul.f32 %v7924_v44, %v7506_v19  ;;  %v7926_v19 = vrot.slane %v7628_v11, %v5582_v2 }
 0x201   : > { %v7602_v46 = vpop.f32.mrf.mxu1  ;;  %v2960_v63 = vmul.f32 %v2953_v47, %v7570_v49  ;;  %v2943_v49 = vmul.f32 %v2936_v8, %v7508_v21 }
 0x202   : > { %v7630_v14 = vpop.f32.mrf.mxu0  ;;  %v3346_v21 = vmul.f32 %v7922_v12, %v7602_v46  ;;  %v3725_v46 = vrot.slane %v5180_v40, %v5585_v3  ;;  %v2611_v26 = vadd.f32 %v2609_v52, %v2594_v5 }
 0x203   : > { %v7646_v60 = vpop.f32.mrf.mxu1  ;;  %v2961_v47 = vmul.f32 %v2957_v62, %v7630_v14  ;;  %v7923_v14 = vrot.slane %v7589_v29, %v5582_v2  ;;  %v5182_v29 = vld [vmem:[%s7362_s18 + $0x43] ss:$8 sm:$0x3] }
 0x204   : > { %v2921_v38 = vpop.f32.mrf.mxu0  ;;  %v3347_v27 = vmul.f32 %v7926_v19, %v7646_v60  ;;  %v7928_v60 = vrot.slane %v7652_v45, %v5582_v2  ;;  %v3763_v18 = vrot.slane %v5182_v29, %v5582_v2 }
 0x205   : > { %v7682_v58 = vpop.f32.mrf.mxu1  ;;  %v2977_v59 = vmul.f32 %v2970_v36, %v2921_v38  ;;  %v2944_v62 = vmul.f32 %v7923_v14, %v7532_v48  ;;  %v2962_v38 = vadd.f32 %v2960_v63, %v2943_v49  ;;  %v2610_v48 = vadd.f32 %v2608_v53, %v2593_v31 }
 0x206   : > { %v2923_v10 = vpop.f32.mrf.mxu0  ;;  %v2229_v63 = vadd.f32 %v2225_v41, %v1843_v51 }
 0x207   : > { %v3309_v32 = vpop.f32.mrf.mxu1  ;;  %v2978_v36 = vmul.f32 %v2974_v56, %v2923_v10  ;;  %v2963_v24 = vadd.f32 %v2961_v47, %v2944_v62  ;;  %v2979_v20 = vadd.f32 %v2977_v59, %v2962_v38  ;;  %v7925_v10 = vrot.slane %v7592_v39, %v5582_v2 }
 0x208   : > { %v2925_v17 = vpop.f32.mrf.mxu0  ;;  %v3759_v39 = vrot.slane %v5182_v29, %v5585_v3  ;;  %v2614_v11 = vadd.f32 %v2610_v48, %v2228_v43  ;;  %v3364_v49 = vmul.f32 %v7928_v60, %v3309_v32  ;;  %v2615_v37 = vadd.f32 %v2611_v26, %v2229_v63 }
 0x209   : > { %v3311_v33 = vpop.f32.mrf.mxu1  ;;  %v2994_v61 = vmul.f32 %v2987_v42, %v2925_v17  ;;  %v3330_v56 = vmul.f32 %v7925_v10, %v7548_v1  ;;  %v3348_v42 = vadd.f32 %v3346_v21, %v3329_v57  ;;  %v2980_v7 = vadd.f32 %v2978_v36, %v2963_v24 }
 0x20a   : > { %v2927_v8 = vpop.f32.mrf.mxu0  ;;  %v3746_v1 = vrot.slane %v7720_v34, %v5582_v2 }
 0x20b   : > { %v3313_v4 = vpop.f32.mrf.mxu1  ;;  %v2995_v6 = vmul.f32 %v2991_v55, %v2927_v8  ;;  %v7927_v55 = vrot.slane %v7652_v45, %v5585_v3  ;;  %v2996_v9 = vadd.f32 %v2994_v61, %v2979_v20  ;;  %v3349_v57 = vadd.f32 %v3347_v27, %v3330_v56 }
 0x20c   : > { %v3381_v45 = vmul.f32 %v3377_v35, %v3313_v4 }
 0x20d   : > { %v3363_v50 = vmul.f32 %v7927_v55, %v7682_v58  ;;  %v3380_v58 = vmul.f32 %v3373_v25, %v3311_v33  ;;  %v2997_v47 = vadd.f32 %v2995_v6, %v2980_v7  ;;  %v3000_v12 = vadd.f32 %v2996_v9, %v2614_v11 }
 0x20e   : > { %v3366_v8 = vadd.f32 %v3364_v49, %v3349_v57 }
 0x20f   : > { %v3365_v40 = vadd.f32 %v3363_v50, %v3348_v42  ;;  %v3001_v62 = vadd.f32 %v2997_v47, %v2615_v37 }
 0x210   : > { %v3383_v31 = vadd.f32 %v3381_v45, %v3366_v8 }
 0x211   : > { %v3382_v14 = vadd.f32 %v3380_v58, %v3365_v40 }
 0x212   : > { %v3387_v2 = vadd.f32 %v3383_v31, %v3001_v62 }
 0x213   : > { %v3386_v5 = vadd.f32 %v3382_v14, %v3000_v12 }
 0x23c   : > { %v3683_v23 = vpop.f32.mrf.mxu0 }
 0x23d   : > { %v3693_v17 = vpop.f32.mrf.mxu1  ;;  %v3715_v13 = vmul.f32 %v3708_v16, %v3683_v23 }
 0x23e   : > { %v3685_v51 = vpop.f32.mrf.mxu0  ;;  %v3749_v25 = vmul.f32 %v3742_v15, %v3693_v17 }
 0x23f   : > { %v3695_v28 = vpop.f32.mrf.mxu1  ;;  %v3716_v16 = vmul.f32 %v3712_v30, %v3685_v51 }
 0x240   : > { %v3687_v59 = vpop.f32.mrf.mxu0  ;;  %v3750_v36 = vmul.f32 %v3746_v1, %v3695_v28 }
 0x241   : > { %v3732_v53 = vmul.f32 %v3725_v46, %v3687_v59  ;;  %v3697_v41 = vpop.f32.mrf.mxu1 }
 0x242   : > { %v3689_v32 = vpop.f32.mrf.mxu0  ;;  %v3766_v0 = vmul.f32 %v3759_v39, %v3697_v41 }
 0x243   : > { %v3734_v33 = vadd.f32 %v3732_v53, %v3715_v13  ;;  %v3733_v21 = vmul.f32 %v3729_v22, %v3689_v32  ;;  %v3699_v38 = vpop.f32.mrf.mxu1 }
 0x244   : > { %v3767_v15 = vmul.f32 %v3763_v18, %v3699_v38 }
 0x245   : > { %v3751_v61 = vadd.f32 %v3749_v25, %v3734_v33  ;;  %v3735_v35 = vadd.f32 %v3733_v21, %v3716_v16 }
 0x247   : > { %v3768_v3 = vadd.f32 %v3766_v0, %v3751_v61  ;;  %v3752_v34 = vadd.f32 %v3750_v36, %v3735_v35 }
 0x249   : > { %v3772_v54 = vadd.f32 %v3768_v3, %v3386_v5  ;;  %v3769_v30 = vadd.f32 %v3767_v15, %v3752_v34 }
 0x24b   : > { %3774 = vst [vmem:[%s254_s22] sm:$0xff] %v3772_v54  ;;  %v3773_v44 = vadd.f32 %v3769_v30, %v3387_v2 }
 0x24d   : > { %3775 = vst [vmem:[%s254_s22 + $0x8] sm:$0xff] %v3773_v44 }
 0x24e   : > { %5386 = shalt.err (!%p5383_p4)
}
 0x24f   : > { %s5387_s8 = scalar_lea.hbm %s3791_s5, 256  ;;  %s5391_s10 = scalar_lea.hbm %s7865_s3, 512 }
 0x250   : > { %p5388_p7 = scmp.ne.s32.totalorder %s3791_s5, %s5387_s8  ;;  %p5392_p2 = scmp.lt.s32.totalorder %s3791_s5, %s7865_s3 }
 0x251   : > { %p5393_p0 = scmp.lt.s32.totalorder %s5391_s10, %s5387_s8 }
 0x252   : > { %p5389_p10 = pnand %p5388_p7, %p5531_p9 }
 0x253   : > { %p5394_p8 = por %p5393_p0, %p5392_p2 }
 0x254   : > { %p5390_p13 = pneg %p5389_p10 }
 0x256   : > { %p5395_p12 = pnand %p5394_p8, %p5390_p13 }
 0x258   : > { %5398 = shalt.err (!%p5395_p12)
}
 0x259   : > { %5228 = dma.vmem_to_hbm [thread:$0]  (%p5531_p9), %s3794_s23, 256, %s3791_s5, %s3777_s4  }
 0x25a PF: > { %s3805_s19 = sand.u32 1, %s5433_s12   ;;  %p7929_p1 = scmp.ge.s32.totalorder %s5453_s17, 2 }
 0x25b   : > { %s3806_s21 = scalar_lea.sflag [#allocation4], %s3805_s19 }
 0x25c   : > { %p5235_p3 = pnand %p7929_p1, %p5538_p11 }
 0x25e   : > { %p5236_p5 = pneg %p5235_p3 }
 0x260   : > { %5428 = dma.done.wait (%p5236_p5), %s3806_s21, 256  }
 0x261   : > { %5430 = vsyncadd (%p5236_p5), %s3806_s21, 4294967040  ;;  %s19_s17 = sadd.s32 1, %s5453_s17   ;;  %s7930_s12 = smov %s5437_s13 }
 0x262   : > { %p16_p6 = scmp.ge.s32.totalorder %s19_s17, 4   ;;  %s7931_s13 = smov %s5441_s14 }
 0x263   : > { %s7932_s14 = smov %s5536_s26  ;;  %s7933_s15 = smov %s5449_s16 }
 0x264   : > { %s7934_s16 = smov %s7936_s20  ;;  %18 = sbr.rel (!%p16_p6) target bundleno = 6 (0x6), region = 134 }
 0x269   :  { %3811 = vsyncpa [#allocation3], 1 }
 0x26a   :  { %3813 = vsyncpa [#allocation3 + $0x1], 1 }
 0x26b   :  { %3814 = vsyncpa [#allocation4], 1 }
 0x26c   :  { %3816 = vsyncpa [#allocation4 + $0x1], 1 }

</bundles_post_ra>
